<compile_context>
chip_gen: v7x
topology: tpu7x:2x2x1
jax: 0.10.0
libtpu: 0.0.40
codegen_flags: <defaults>
</compile_context>

<pallas_src>
import functools

import jax
import jax.numpy as jnp
from jax.experimental import pallas as pl
from jax.experimental.pallas import tpu as pltpu

BN_EPS = 1e-5


# ----------------------------------------------------------------------------
# generation-aware VMEM budget / tile-size helpers
# ----------------------------------------------------------------------------
def _vmem_capacity():
    try:
        info = pltpu.get_tpu_info()
        cap = int(getattr(info, "vmem_capacity_bytes", 0) or 0)
        if cap > 0:
            return cap
    except Exception:
        pass
    return 64 * 1024 * 1024          # conservative (v7x per-TensorCore) fallback


_VMEM_CAP = _vmem_capacity()
_VMEM_LIMIT = min(int(_VMEM_CAP * 0.85), 100 * 1024 * 1024)
_TILE_BUDGET = int(_VMEM_CAP * 0.35)   # approx per-call working-set target


def _pick_rows(total, bytes_per_row, step):
    # largest divisor of `total` that is a multiple of `step` and fits the budget.
    cands = [d for d in range(step, total + 1, step) if total % d == 0]
    if not cands:
        return total
    best = cands[0]
    for d in cands:
        if d * bytes_per_row <= _TILE_BUDGET:
            best = d
    return best


def _conv_row_bytes(ow, cin_total, cout, src_row_bytes):
    # assembled bf16 tile + bf16 (th,ow,3*cin) dj-patch + f32 acc + bf16 out (x2 buf)
    # + double-buffered source input rows.
    return int(ow * (2 * cin_total + 6 * cin_total + 4 * cout + 4 * cout)
               + 2 * src_row_bytes)


def _upconv_row_bytes(w, cin, cout, in_itemsize):
    return int(w * (2 * cin * in_itemsize + 2 * cin + 16 * cout + 16 * cout))


# ----------------------------------------------------------------------------
# Pallas kernels
# ----------------------------------------------------------------------------
def _upconv_kernel(x_ref, w_ref, b_ref, o_ref, *, tu, w_in, cout):
    # ConvTranspose2d(k=2, s=2): out[n, 2i+di, 2j+dj, oc] = x[n,i,j,:] @ W[:,di,dj,oc] + b.
    # One bf16 MXU matmul per tile; the pixel-shuffle interleave is expressed with
    # lane slices + major-dim reshapes only and stored through a (1,tu,2,W,2C) block.
    cin = x_ref.shape[-1]
    c = cout
    x = x_ref[0].reshape(tu * w_in, cin).astype(jnp.bfloat16)
    y = jnp.dot(x, w_ref[...], preferred_element_type=jnp.float32) + b_ref[...]
    # columns of y are ordered (di, dj, oc)
    y00 = y[:, 0 * c:1 * c].reshape(tu, w_in, c)    # di=0, dj=0
    y01 = y[:, 1 * c:2 * c].reshape(tu, w_in, c)    # di=0, dj=1
    y10 = y[:, 2 * c:3 * c].reshape(tu, w_in, c)    # di=1, dj=0
    y11 = y[:, 3 * c:4 * c].reshape(tu, w_in, c)    # di=1, dj=1
    r0 = jnp.concatenate([y00, y01], axis=-1)       # (tu, W, 2C): (j, (dj, oc))
    r1 = jnp.concatenate([y10, y11], axis=-1)
    out = jnp.concatenate([r0[:, None], r1[:, None]], axis=1)   # (tu, 2, W, 2C)
    o_ref[...] = out[None].astype(o_ref.dtype)


def _conv_bn_stats_kernel(*refs, th, ow, cin, cout, nh, apply_bn_relu, two_src):
    # 3x3 "same" conv (no bias) on a row tile.  Emits the RAW conv output plus
    # per-tile (sum, sumsq) for the cross-tile (global) BatchNorm statistics.
    # If apply_bn_relu: the streamed-in input is the raw previous conv output and
    # BN+ReLU of the previous layer is applied on the fly (fused pass 2 of the
    # previous two-pass BN).  If two_src: the two sources (up, skip) are
    # concatenated along channels in VMEM (fused torch.cat).
    if two_src:
        (up_m, up_t, up_b, sk_m, sk_t, sk_b,
         w_ref, mu_ref, sc_ref, bet_ref, y_ref, st_ref) = refs
    else:
        (up_m, up_t, up_b,
         w_ref, mu_ref, sc_ref, bet_ref, y_ref, st_ref) = refs

    h = pl.program_id(1)
    top_on = (h > 0).astype(jnp.bfloat16)        # zero-gate the conv padding rows
    bot_on = (h < nh - 1).astype(jnp.bfloat16)

    def prep(v, gate):
        if apply_bn_relu:
            vf = v.astype(jnp.float32)
            v = jnp.maximum((vf - mu_ref[...]) * sc_ref[...] + bet_ref[...], 0.0)
        v = v.astype(jnp.bfloat16)
        if gate is not None:
            v = v * gate                         # gate AFTER the activation
        return v

    def gather(m_ref, t_ref, b_ref):
        top = prep(t_ref[0, 7:8], top_on)        # last row of the 8-row block above
        mid = prep(m_ref[0], None)               # (th, ow, c)
        bot = prep(b_ref[0, 0:1], bot_on)        # first row of the 8-row block below
        return jnp.concatenate([top, mid, bot], axis=0)   # (th+2, ow, c)

    x = gather(up_m, up_t, up_b)
    if two_src:
        x = jnp.concatenate([x, gather(sk_m, sk_t, sk_b)], axis=-1)   # fused concat

    # column zero-padding in VMEM (no jnp.pad pass over HBM).
    zc = jnp.zeros((th + 2, 1, cin), jnp.bfloat16)
    z = jnp.concatenate([zc, x, zc], axis=1)                          # (th+2, ow+2, cin)

    # 3x3 conv as 3 accumulated MXU matmuls (one per kw tap, K = 3*cin each);
    # the kh row shifts are outer-dim slices (free) concatenated along channels.
    acc = jnp.zeros((th * ow, cout), jnp.float32)
    for dj in range(3):
        taps = [z[di:di + th, dj:dj + ow, :] for di in range(3)]
        patch = jnp.concatenate(taps, axis=-1).reshape(th * ow, 3 * cin)
        acc = acc + jnp.dot(patch, w_ref[dj], preferred_element_type=jnp.float32)

    y_ref[...] = acc.reshape(1, th, ow, cout).astype(y_ref.dtype)
    s1 = jnp.sum(acc, axis=0)
    s2 = jnp.sum(acc * acc, axis=0)
    st_ref[...] = jnp.stack([s1, s2], axis=0).reshape(1, 1, 2, cout)


def _bn_relu_kernel(y_ref, mu_ref, sc_ref, bt_ref, o_ref):
    # Final BatchNorm (global stats) + ReLU on a lane-dense (rows, OW*C) view.
    y = y_ref[...].astype(jnp.float32)
    o_ref[...] = jnp.maximum((y - mu_ref[...]) * sc_ref[...] + bt_ref[...], 0.0)


# ----------------------------------------------------------------------------
# pallas_call wrappers
# ----------------------------------------------------------------------------
def _upconv(x, wt, bt_up):
    # wt: (Cin, 2, 2, C) (ConvTranspose2d weight pre-transposed to (in, kh, kw, out)).
    N, H, W, Cin = x.shape
    C = wt.shape[-1]
    tu = _pick_rows(H, _upconv_row_bytes(W, Cin, C, x.dtype.itemsize), 1)
    w2d = wt.reshape(Cin, 4 * C).astype(jnp.bfloat16)       # cols = (di, dj, oc)
    brow = jnp.tile(bt_up, 4)[None, :].astype(jnp.float32)  # (1, 4*C)
    kernel = functools.partial(_upconv_kernel, tu=tu, w_in=W, cout=C)
    out5 = pl.pallas_call(
        kernel,
        grid=(N, H // tu),
        in_specs=[
            pl.BlockSpec((1, tu, W, Cin), lambda n, h: (n, h, 0, 0)),
            pl.BlockSpec((Cin, 4 * C), lambda n, h: (0, 0)),
            pl.BlockSpec((1, 4 * C), lambda n, h: (0, 0)),
        ],
        out_specs=pl.BlockSpec((1, tu, 2, W, 2 * C), lambda n, h: (n, h, 0, 0, 0)),
        out_shape=jax.ShapeDtypeStruct((N, H, 2, W, 2 * C), jnp.bfloat16),
        compiler_params=pltpu.CompilerParams(
            dimension_semantics=("parallel", "parallel"),
            vmem_limit_bytes=_VMEM_LIMIT),
    )(x, w2d, brow)
    # free row-major reshape to NHWC (the interleave already happened in-kernel)
    return out5.reshape(N, 2 * H, 2 * W, C)


def _conv_stats(srcs, w_stack, mu, sc, bet, *, apply_bn_relu):
    # srcs: list of (N, OH, OW, C_src) activations concatenated along channels
    # INSIDE the kernel.  Returns raw conv (bf16) and per-tile (sum, sumsq) stats.
    N, OH, OW, _ = srcs[0].shape
    assert OH % 8 == 0, "row dim must be a multiple of 8 for the halo blocks"
    cin = sum(int(s.shape[-1]) for s in srcs)
    cout = int(w_stack.shape[-1])
    src_row_bytes = sum(OW * int(s.shape[-1]) * s.dtype.itemsize for s in srcs)
    th = _pick_rows(OH, _conv_row_bytes(OW, cin, cout, src_row_bytes), 8)
    nh = OH // th
    hb = th // 8
    nhb = OH // 8

    def main_spec(c):
        return pl.BlockSpec((1, th, OW, c), lambda n, h: (n, h, 0, 0))

    def top_spec(c):
        # 8-row block holding the single halo row above the tile (clamped at edge).
        return pl.BlockSpec((1, 8, OW, c),
                            lambda n, h: (n, jnp.maximum(h * hb - 1, 0), 0, 0))

    def bot_spec(c):
        # 8-row block holding the single halo row below the tile (clamped at edge).
        return pl.BlockSpec((1, 8, OW, c),
                            lambda n, h: (n, jnp.minimum((h + 1) * hb, nhb - 1), 0, 0))

    in_specs, ops = [], []
    for s in srcs:
        c = int(s.shape[-1])
        in_specs += [main_spec(c), top_spec(c), bot_spec(c)]
        ops += [s, s, s]
    in_specs += [
        pl.BlockSpec((3, 3 * cin, cout), lambda n, h: (0, 0, 0)),
        pl.BlockSpec((1, cin), lambda n, h: (0, 0)),
        pl.BlockSpec((1, cin), lambda n, h: (0, 0)),
        pl.BlockSpec((1, cin), lambda n, h: (0, 0)),
    ]
    ops += [w_stack, mu, sc, bet]

    kernel = functools.partial(
        _conv_bn_stats_kernel, th=th, ow=OW, cin=cin, cout=cout, nh=nh,
        apply_bn_relu=apply_bn_relu, two_src=(len(srcs) == 2))

    y, st = pl.pallas_call(
        kernel,
        grid=(N, nh),
        in_specs=in_specs,
        out_specs=(
            pl.BlockSpec((1, th, OW, cout), lambda n, h: (n, h, 0, 0)),
            pl.BlockSpec((1, 1, 2, cout), lambda n, h: (n, h, 0, 0)),
        ),
        out_shape=(
            jax.ShapeDtypeStruct((N, OH, OW, cout), jnp.bfloat16),
            jax.ShapeDtypeStruct((N, nh, 2, cout), jnp.float32),
        ),
        compiler_params=pltpu.CompilerParams(
            dimension_semantics=("parallel", "parallel"),
            vmem_limit_bytes=_VMEM_LIMIT),
    )(*ops)
    return y, st


def _bn_relu_apply(y_flat, mu, sc, bet, ow):
    # y_flat: (N*OH, OW*C) bf16 (a free reshape of the raw conv2 output).
    R, D = y_flat.shape
    mu_r = jnp.tile(mu, (1, ow))
    sc_r = jnp.tile(sc, (1, ow))
    be_r = jnp.tile(bet, (1, ow))
    tr = _pick_rows(R, D * 16, 8)
    return pl.pallas_call(
        _bn_relu_kernel,
        grid=(R // tr,),
        in_specs=[
            pl.BlockSpec((tr, D), lambda i: (i, 0)),
            pl.BlockSpec((1, D), lambda i: (0, 0)),
            pl.BlockSpec((1, D), lambda i: (0, 0)),
            pl.BlockSpec((1, D), lambda i: (0, 0)),
        ],
        out_specs=pl.BlockSpec((tr, D), lambda i: (i, 0)),
        out_shape=jax.ShapeDtypeStruct((R, D), jnp.float32),
        compiler_params=pltpu.CompilerParams(
            dimension_semantics=("parallel",),
            vmem_limit_bytes=_VMEM_LIMIT),
    )(y_flat, mu_r, sc_r, be_r)


def _bn_affine(stats, gamma, beta, count):
    # Reduce per-tile (sum, sumsq) -> global training-mode BN mean / scale.
    # TODO(synk): E[x^2]-E[x]^2 in f32 can cancel for very large counts; a Welford
    # merge would be safer at training scale.
    s = jnp.sum(stats, axis=(0, 1))                      # (2, C)
    mean = s[0] / count
    var = jnp.maximum(s[1] / count - mean * mean, 0.0)   # biased variance
    scale = gamma * jax.lax.rsqrt(var + BN_EPS)
    return mean[None, :], scale[None, :], beta[None, :]


@jax.jit
def decoder_block_forward(x, skip, params):
    wt, bt_up, w1, g1, b1, w2, g2, b2 = params
    N, H, W, _ = x.shape
    C = wt.shape[-1]
    OH, OW = 2 * H, 2 * W
    count = N * OH * OW

    # self.up(inputs): ConvTranspose2d with fused pixel-shuffle.
    up = _upconv(x, wt, bt_up)                                 # (N, OH, OW, C) bf16

    # per-kw weight stacks: w_stack[dj] is (3*cin, cout) with rows ordered (kh, cin).
    w1s = w1.transpose(1, 0, 2, 3).reshape(3, 3 * 2 * C, C).astype(jnp.bfloat16)
    w2s = w2.transpose(1, 0, 2, 3).reshape(3, 3 * C, C).astype(jnp.bfloat16)
    ident = (jnp.zeros((1, 2 * C), jnp.float32),
             jnp.ones((1, 2 * C), jnp.float32),
             jnp.zeros((1, 2 * C), jnp.float32))

    # conv1 on the (up, skip) concat (fused in-kernel) -> raw output + BN stats.
    y1_raw, st1 = _conv_stats([up, skip], w1s, *ident, apply_bn_relu=False)
    mu1, sc1, bt1 = _bn_affine(st1, g1, b1, count)

    # conv2: BN1+ReLU applied on the fly to conv1's streamed raw output.
    y2_raw, st2 = _conv_stats([y1_raw], w2s, mu1, sc1, bt1, apply_bn_relu=True)
    mu2, sc2, bt2 = _bn_affine(st2, g2, b2, count)

    # final BN2 + ReLU, tiled elementwise pass on a lane-dense (rows, OW*C) view.
    out = _bn_relu_apply(y2_raw.reshape(N * OH, OW * C), mu2, sc2, bt2, OW)
    return out.reshape(N, OH, OW, C)


# ----------------------------------------------------------------------------
# Pure-JAX reference
# ----------------------------------------------------------------------------
def reference_forward(x, skip, params, lowp=None):
    """lowp=None  -> exact f32 (PyTorch semantics).
       lowp=bf16  -> mirrors the kernel's bf16 MXU inputs / bf16 intermediates."""
    r = (lambda a: a) if lowp is None else (
        lambda a: a.astype(lowp).astype(jnp.float32))
    wt, bt_up, w1, g1, b1, w2, g2, b2 = params
    N, H, W, _ = x.shape
    C = wt.shape[-1]

    up = jnp.einsum("nhwc,cijo->nhwijo", r(x), r(wt))
    up = up.transpose(0, 1, 3, 2, 4, 5).reshape(N, 2 * H, 2 * W, C) + bt_up
    cat = jnp.concatenate([r(up), r(skip)], axis=-1)

    def conv3x3(z, w):
        return jax.lax.conv_general_dilated(
            r(z), r(w), (1, 1), "SAME",
            dimension_numbers=("NHWC", "HWIO", "NHWC"))

    def bn_relu(y_raw, g, b):
        mean = jnp.mean(y_raw, axis=(0, 1, 2), keepdims=True)
        var = jnp.mean(jnp.square(y_raw - mean), axis=(0, 1, 2), keepdims=True)
        scale = g.reshape(1, 1, 1, -1) * jax.lax.rsqrt(var + BN_EPS)
        return jnp.maximum((r(y_raw) - mean) * scale + b.reshape(1, 1, 1, -1), 0.0)

    y1 = conv3x3(cat, w1)
    a1 = bn_relu(y1, g1, b1)
    y2 = conv3x3(a1, w2)
    return bn_relu(y2, g2, b2)


def init_params(key, in_c, out_c):
    ks = jax.random.split(key, 8)
    wt = 0.1 * jax.random.normal(ks[0], (in_c, 2, 2, out_c), jnp.float32)
    bt = 0.1 * jax.random.normal(ks[1], (out_c,), jnp.float32)
    w1 = 0.1 * jax.random.normal(ks[2], (3, 3, 2 * out_c, out_c), jnp.float32)
    g1 = 1.0 + 0.1 * jax.random.normal(ks[3], (out_c,), jnp.float32)
    b1 = 0.1 * jax.random.normal(ks[4], (out_c,), jnp.float32)
    w2 = 0.1 * jax.random.normal(ks[5], (3, 3, out_c, out_c), jnp.float32)
    g2 = 1.0 + 0.1 * jax.random.normal(ks[6], (out_c,), jnp.float32)
    b2 = 0.1 * jax.random.normal(ks[7], (out_c,), jnp.float32)
    # TODO(synk): BatchNorm running-stat updates (train-time side effect) are not
    # modeled; they do not affect the forward output.
    return (wt, bt, w1, g1, b1, w2, g2, b2)


if __name__ == "__main__":
    N, in_c, out_c, H, W = 2, 8, 4, 8, 8   # decoder input HxW, skip is 2Hx2W
    key = jax.random.PRNGKey(0)
    kx, ks, kp = jax.random.split(key, 3)
    x = jax.random.normal(kx, (N, H, W, in_c), jnp.float32)            # NHWC
    skip = jax.random.normal(ks, (N, 2 * H, 2 * W, out_c), jnp.float32)
    params = init_params(kp, in_c, out_c)

    out = jax.block_until_ready(decoder_block_forward(x, skip, params))
    assert out.shape == (N, 2 * H, 2 * W, out_c), out.shape
    assert bool(jnp.all(jnp.isfinite(out)))

    # Tight check against a reference mirroring the kernel's bf16 dataflow, plus a
    # looser sanity check against pure-f32 PyTorch semantics.
    ref_matched = reference_forward(x, skip, params, lowp=jnp.bfloat16)
    ref_f32 = reference_forward(x, skip, params)
    err_matched = float(jnp.max(jnp.abs(out - ref_matched)))
    err_f32 = float(jnp.max(jnp.abs(out - ref_f32)))
    assert err_matched < 2e-2, f"matched-precision max abs error {err_matched}"
    assert err_f32 < 1e-1, f"f32-reference max abs error {err_f32}"
    print("KERNEL_OK")
</pallas_src>

<mosaic_0001>
module attributes {stable_mosaic.version = 11 : i64} {
  func.func @_upconv_kernel(%arg0: i32, %arg1: i32, %arg2: memref<1x8x8x8xf32, #tpu.memory_space<vmem>>, %arg3: memref<8x16xbf16, #tpu.memory_space<vmem>>, %arg4: memref<1x16xf32, #tpu.memory_space<vmem>>, %arg5: memref<1x8x2x8x8xbf16, #tpu.memory_space<vmem>>) attributes {dimension_semantics = [#tpu.dimension_semantics<parallel>, #tpu.dimension_semantics<parallel>], iteration_bounds = array<i64: 2, 1>, scalar_prefetch = 0 : i64, scratch_operands = 0 : i64, tpu.core_type = #tpu.core_type<tc>, window_params = [{transform_indices = @transform_0, window_bounds = array<i64: 1, 8, 8, 8>}, {pipeline_mode = #tpu.pipeline_mode<synchronous>, transform_indices = @transform_1, window_bounds = array<i64: 8, 16>}, {pipeline_mode = #tpu.pipeline_mode<synchronous>, transform_indices = @transform_2, window_bounds = array<i64: 1, 16>}, {transform_indices = @transform_3, window_bounds = array<i64: 1, 8, 2, 8, 8>}]} {
    %c0 = arith.constant 0 : index
    %c0_0 = arith.constant 0 : index
    %c0_1 = arith.constant 0 : index
    %c0_2 = arith.constant 0 : index
    %0 = vector.load %arg2[%c0, %c0_0, %c0_1, %c0_2] : memref<1x8x8x8xf32, #tpu.memory_space<vmem>>, vector<1x8x8x8xf32>
    %1 = vector.shape_cast %0 : vector<1x8x8x8xf32> to vector<8x8x8xf32>
    %2 = vector.shape_cast %1 : vector<8x8x8xf32> to vector<64x8xf32>
    %3 = arith.truncf %2 : vector<64x8xf32> to vector<64x8xbf16>
    %c0_3 = arith.constant 0 : index
    %c0_4 = arith.constant 0 : index
    %4 = vector.load %arg3[%c0_3, %c0_4] : memref<8x16xbf16, #tpu.memory_space<vmem>>, vector<8x16xbf16>
    %cst = arith.constant dense<0.000000e+00> : vector<64x16xf32>
    %5 = tpu.matmul %3, %4, %cst {dimension_numbers = #tpu.dot_dimension_numbers<[1], [0], [0], [1], [0, 0, 1, 1], [], []>} : vector<64x8xbf16>, vector<8x16xbf16>, vector<64x16xf32> -> vector<64x16xf32>
    %c0_5 = arith.constant 0 : index
    %c0_6 = arith.constant 0 : index
    %6 = vector.load %arg4[%c0_5, %c0_6] : memref<1x16xf32, #tpu.memory_space<vmem>>, vector<1x16xf32>
    %7 = vector.broadcast %6 : vector<1x16xf32> to vector<64x16xf32>
    %8 = arith.addf %5, %7 : vector<64x16xf32>
    %9 = vector.extract_strided_slice %8 {offsets = [0, 0], sizes = [64, 4], strides = [1, 1]} : vector<64x16xf32> to vector<64x4xf32>
    %10 = vector.shape_cast %9 : vector<64x4xf32> to vector<8x8x4xf32>
    %11 = vector.extract_strided_slice %8 {offsets = [0, 4], sizes = [64, 4], strides = [1, 1]} : vector<64x16xf32> to vector<64x4xf32>
    %12 = vector.shape_cast %11 : vector<64x4xf32> to vector<8x8x4xf32>
    %13 = vector.extract_strided_slice %8 {offsets = [0, 8], sizes = [64, 4], strides = [1, 1]} : vector<64x16xf32> to vector<64x4xf32>
    %14 = vector.shape_cast %13 : vector<64x4xf32> to vector<8x8x4xf32>
    %15 = vector.extract_strided_slice %8 {offsets = [0, 12], sizes = [64, 4], strides = [1, 1]} : vector<64x16xf32> to vector<64x4xf32>
    %16 = vector.shape_cast %15 : vector<64x4xf32> to vector<8x8x4xf32>
    %17 = tpu.concatenate %10, %12 in 2 : vector<8x8x4xf32>, vector<8x8x4xf32> -> vector<8x8x8xf32>
    %18 = tpu.concatenate %14, %16 in 2 : vector<8x8x4xf32>, vector<8x8x4xf32> -> vector<8x8x8xf32>
    %19 = vector.shape_cast %17 : vector<8x8x8xf32> to vector<8x1x8x8xf32>
    %20 = vector.shape_cast %18 : vector<8x8x8xf32> to vector<8x1x8x8xf32>
    %21 = tpu.concatenate %19, %20 in 1 : vector<8x1x8x8xf32>, vector<8x1x8x8xf32> -> vector<8x2x8x8xf32>
    %22 = vector.shape_cast %21 : vector<8x2x8x8xf32> to vector<1x8x2x8x8xf32>
    %23 = arith.truncf %22 : vector<1x8x2x8x8xf32> to vector<1x8x2x8x8xbf16>
    %c0_7 = arith.constant 0 : index
    %c0_8 = arith.constant 0 : index
    %c0_9 = arith.constant 0 : index
    %c0_10 = arith.constant 0 : index
    %c0_11 = arith.constant 0 : index
    %24 = vector.load %arg5[%c0_7, %c0_8, %c0_9, %c0_10, %c0_11] : memref<1x8x2x8x8xbf16, #tpu.memory_space<vmem>>, vector<1x8x2x8x8xbf16>
    tpu.vector_store %arg5[%c0_7, %c0_8, %c0_9, %c0_10, %c0_11], %23 {strides = array<i32>} : memref<1x8x2x8x8xbf16, #tpu.memory_space<vmem>>, vector<1x8x2x8x8xbf16>,
    return
  }
  func.func @transform_0(%arg0: i32, %arg1: i32) -> (i32, i32, i32, i32) {
    %c0_i32 = arith.constant 0 : i32
    %c0_i32_0 = arith.constant 0 : i32
    %c0_i32_1 = arith.constant 0 : i32
    return %arg0, %arg1, %c0_i32, %c0_i32_0 : i32, i32, i32, i32
  }
  func.func @transform_1(%arg0: i32, %arg1: i32) -> (i32, i32) {
    %c0_i32 = arith.constant 0 : i32
    %c0_i32_0 = arith.constant 0 : i32
    %c0_i32_1 = arith.constant 0 : i32
    return %c0_i32, %c0_i32_0 : i32, i32
  }
  func.func @transform_2(%arg0: i32, %arg1: i32) -> (i32, i32) {
    %c0_i32 = arith.constant 0 : i32
    %c0_i32_0 = arith.constant 0 : i32
    %c0_i32_1 = arith.constant 0 : i32
    return %c0_i32, %c0_i32_0 : i32, i32
  }
  func.func @transform_3(%arg0: i32, %arg1: i32) -> (i32, i32, i32, i32, i32) {
    %c0_i32 = arith.constant 0 : i32
    %c0_i32_0 = arith.constant 0 : i32
    %c0_i32_1 = arith.constant 0 : i32
    %c0_i32_2 = arith.constant 0 : i32
    return %arg0, %arg1, %c0_i32, %c0_i32_0, %c0_i32_1 : i32, i32, i32, i32, i32
  }
}

module attributes {stable_mosaic.version = 11 : i64} {
  func.func @_conv_bn_stats_kernel(%arg0: i32, %arg1: i32, %arg2: memref<1x16x16x4xbf16, #tpu.memory_space<vmem>>, %arg3: memref<1x8x16x4xbf16, #tpu.memory_space<vmem>>, %arg4: memref<1x8x16x4xbf16, #tpu.memory_space<vmem>>, %arg5: memref<1x16x16x4xf32, #tpu.memory_space<vmem>>, %arg6: memref<1x8x16x4xf32, #tpu.memory_space<vmem>>, %arg7: memref<1x8x16x4xf32, #tpu.memory_space<vmem>>, %arg8: memref<3x24x4xbf16, #tpu.memory_space<vmem>>, %arg9: memref<1x8xf32, #tpu.memory_space<vmem>>, %arg10: memref<1x8xf32, #tpu.memory_space<vmem>>, %arg11: memref<1x8xf32, #tpu.memory_space<vmem>>, %arg12: memref<1x16x16x4xbf16, #tpu.memory_space<vmem>>, %arg13: memref<1x1x2x4xf32, #tpu.memory_space<vmem>>) attributes {dimension_semantics = [#tpu.dimension_semantics<parallel>, #tpu.dimension_semantics<parallel>], iteration_bounds = array<i64: 2, 1>, scalar_prefetch = 0 : i64, scratch_operands = 0 : i64, tpu.core_type = #tpu.core_type<tc>, window_params = [{transform_indices = @transform_0, window_bounds = array<i64: 1, 16, 16, 4>}, {transform_indices = @transform_1, window_bounds = array<i64: 1, 8, 16, 4>}, {transform_indices = @transform_2, window_bounds = array<i64: 1, 8, 16, 4>}, {transform_indices = @transform_3, window_bounds = array<i64: 1, 16, 16, 4>}, {transform_indices = @transform_4, window_bounds = array<i64: 1, 8, 16, 4>}, {transform_indices = @transform_5, window_bounds = array<i64: 1, 8, 16, 4>}, {pipeline_mode = #tpu.pipeline_mode<synchronous>, transform_indices = @transform_6, window_bounds = array<i64: 3, 24, 4>}, {pipeline_mode = #tpu.pipeline_mode<synchronous>, transform_indices = @transform_7, window_bounds = array<i64: 1, 8>}, {pipeline_mode = #tpu.pipeline_mode<synchronous>, transform_indices = @transform_8, window_bounds = array<i64: 1, 8>}, {pipeline_mode = #tpu.pipeline_mode<synchronous>, transform_indices = @transform_9, window_bounds = array<i64: 1, 8>}, {transform_indices = @transform_10, window_bounds = array<i64: 1, 16, 16, 4>}, {transform_indices = @transform_11, window_bounds = array<i64: 1, 1, 2, 4>}]} {
    %c0_i32 = arith.constant 0 : i32
    %0 = arith.cmpi sgt, %arg1, %c0_i32 : i32
    %1 = arith.extui %0 : i1 to i32
    %2 = arith.sitofp %1 : i32 to f32
    %3 = arith.truncf %2 : f32 to bf16
    %c0_i32_0 = arith.constant 0 : i32
    %4 = arith.cmpi slt, %arg1, %c0_i32_0 : i32
    %5 = arith.extui %4 : i1 to i32
    %6 = arith.sitofp %5 : i32 to f32
    %7 = arith.truncf %6 : f32 to bf16
    %c0 = arith.constant 0 : index
    %c7 = arith.constant 7 : index
    %c0_1 = arith.constant 0 : index
    %c0_2 = arith.constant 0 : index
    %8 = vector.load %arg3[%c0, %c7, %c0_1, %c0_2] : memref<1x8x16x4xbf16, #tpu.memory_space<vmem>>, vector<1x1x16x4xbf16>
    %9 = vector.shape_cast %8 : vector<1x1x16x4xbf16> to vector<1x16x4xbf16>
    %10 = vector.broadcast %3 : bf16 to vector<1x16x4xbf16>
    %11 = arith.mulf %9, %10 : vector<1x16x4xbf16>
    %c0_3 = arith.constant 0 : index
    %c0_4 = arith.constant 0 : index
    %c0_5 = arith.constant 0 : index
    %c0_6 = arith.constant 0 : index
    %12 = vector.load %arg2[%c0_3, %c0_4, %c0_5, %c0_6] : memref<1x16x16x4xbf16, #tpu.memory_space<vmem>>, vector<1x16x16x4xbf16>
    %13 = vector.shape_cast %12 : vector<1x16x16x4xbf16> to vector<16x16x4xbf16>
    %c0_7 = arith.constant 0 : index
    %c0_8 = arith.constant 0 : index
    %c0_9 = arith.constant 0 : index
    %c0_10 = arith.constant 0 : index
    %14 = vector.load %arg4[%c0_7, %c0_8, %c0_9, %c0_10] : memref<1x8x16x4xbf16, #tpu.memory_space<vmem>>, vector<1x1x16x4xbf16>
    %15 = vector.shape_cast %14 : vector<1x1x16x4xbf16> to vector<1x16x4xbf16>
    %16 = vector.broadcast %7 : bf16 to vector<1x16x4xbf16>
    %17 = arith.mulf %15, %16 : vector<1x16x4xbf16>
    %18 = tpu.concatenate %11, %13, %17 in 0 : vector<1x16x4xbf16>, vector<16x16x4xbf16>, vector<1x16x4xbf16> -> vector<18x16x4xbf16>
    %c0_11 = arith.constant 0 : index
    %c7_12 = arith.constant 7 : index
    %c0_13 = arith.constant 0 : index
    %c0_14 = arith.constant 0 : index
    %19 = vector.load %arg6[%c0_11, %c7_12, %c0_13, %c0_14] : memref<1x8x16x4xf32, #tpu.memory_space<vmem>>, vector<1x1x16x4xf32>
    %20 = vector.shape_cast %19 : vector<1x1x16x4xf32> to vector<1x16x4xf32>
    %21 = arith.truncf %20 : vector<1x16x4xf32> to vector<1x16x4xbf16>
    %22 = vector.broadcast %3 : bf16 to vector<1x16x4xbf16>
    %23 = arith.mulf %21, %22 : vector<1x16x4xbf16>
    %c0_15 = arith.constant 0 : index
    %c0_16 = arith.constant 0 : index
    %c0_17 = arith.constant 0 : index
    %c0_18 = arith.constant 0 : index
    %24 = vector.load %arg5[%c0_15, %c0_16, %c0_17, %c0_18] : memref<1x16x16x4xf32, #tpu.memory_space<vmem>>, vector<1x16x16x4xf32>
    %25 = vector.shape_cast %24 : vector<1x16x16x4xf32> to vector<16x16x4xf32>
    %26 = arith.truncf %25 : vector<16x16x4xf32> to vector<16x16x4xbf16>
    %c0_19 = arith.constant 0 : index
    %c0_20 = arith.constant 0 : index
    %c0_21 = arith.constant 0 : index
    %c0_22 = arith.constant 0 : index
    %27 = vector.load %arg7[%c0_19, %c0_20, %c0_21, %c0_22] : memref<1x8x16x4xf32, #tpu.memory_space<vmem>>, vector<1x1x16x4xf32>
    %28 = vector.shape_cast %27 : vector<1x1x16x4xf32> to vector<1x16x4xf32>
    %29 = arith.truncf %28 : vector<1x16x4xf32> to vector<1x16x4xbf16>
    %30 = vector.broadcast %7 : bf16 to vector<1x16x4xbf16>
    %31 = arith.mulf %29, %30 : vector<1x16x4xbf16>
    %32 = tpu.concatenate %23, %26, %31 in 0 : vector<1x16x4xbf16>, vector<16x16x4xbf16>, vector<1x16x4xbf16> -> vector<18x16x4xbf16>
    %33 = tpu.concatenate %18, %32 in 2 : vector<18x16x4xbf16>, vector<18x16x4xbf16> -> vector<18x16x8xbf16>
    %cst = arith.constant 0.000000e+00 : bf16
    %34 = vector.broadcast %cst : bf16 to vector<18x1x8xbf16>
    %35 = tpu.concatenate %34, %33, %34 in 1 : vector<18x1x8xbf16>, vector<18x16x8xbf16>, vector<18x1x8xbf16> -> vector<18x18x8xbf16>
    %cst_23 = arith.constant 0.000000e+00 : f32
    %36 = vector.broadcast %cst_23 : f32 to vector<256x4xf32>
    %37 = vector.extract_strided_slice %35 {offsets = [0, 0, 0], sizes = [16, 16, 8], strides = [1, 1, 1]} : vector<18x18x8xbf16> to vector<16x16x8xbf16>
    %38 = vector.extract_strided_slice %35 {offsets = [1, 0, 0], sizes = [16, 16, 8], strides = [1, 1, 1]} : vector<18x18x8xbf16> to vector<16x16x8xbf16>
    %39 = vector.extract_strided_slice %35 {offsets = [2, 0, 0], sizes = [16, 16, 8], strides = [1, 1, 1]} : vector<18x18x8xbf16> to vector<16x16x8xbf16>
    %40 = tpu.concatenate %37, %38, %39 in 2 : vector<16x16x8xbf16>, vector<16x16x8xbf16>, vector<16x16x8xbf16> -> vector<16x16x24xbf16>
    %41 = vector.shape_cast %40 : vector<16x16x24xbf16> to vector<256x24xbf16>
    %c0_24 = arith.constant 0 : index
    %c0_25 = arith.constant 0 : index
    %c0_26 = arith.constant 0 : index
    %42 = vector.load %arg8[%c0_24, %c0_25, %c0_26] : memref<3x24x4xbf16, #tpu.memory_space<vmem>>, vector<1x24x4xbf16>
    %43 = vector.shape_cast %42 : vector<1x24x4xbf16> to vector<24x4xbf16>
    %cst_27 = arith.constant dense<0.000000e+00> : vector<256x4xf32>
    %44 = tpu.matmul %41, %43, %cst_27 {dimension_numbers = #tpu.dot_dimension_numbers<[1], [0], [0], [1], [0, 0, 1, 1], [], []>} : vector<256x24xbf16>, vector<24x4xbf16>, vector<256x4xf32> -> vector<256x4xf32>
    %45 = arith.addf %36, %44 : vector<256x4xf32>
    %46 = vector.extract_strided_slice %35 {offsets = [0, 1, 0], sizes = [16, 16, 8], strides = [1, 1, 1]} : vector<18x18x8xbf16> to vector<16x16x8xbf16>
    %47 = vector.extract_strided_slice %35 {offsets = [1, 1, 0], sizes = [16, 16, 8], strides = [1, 1, 1]} : vector<18x18x8xbf16> to vector<16x16x8xbf16>
    %48 = vector.extract_strided_slice %35 {offsets = [2, 1, 0], sizes = [16, 16, 8], strides = [1, 1, 1]} : vector<18x18x8xbf16> to vector<16x16x8xbf16>
    %49 = tpu.concatenate %46, %47, %48 in 2 : vector<16x16x8xbf16>, vector<16x16x8xbf16>, vector<16x16x8xbf16> -> vector<16x16x24xbf16>
    %50 = vector.shape_cast %49 : vector<16x16x24xbf16> to vector<256x24xbf16>
    %c1 = arith.constant 1 : index
    %c0_28 = arith.constant 0 : index
    %c0_29 = arith.constant 0 : index
    %51 = vector.load %arg8[%c1, %c0_28, %c0_29] : memref<3x24x4xbf16, #tpu.memory_space<vmem>>, vector<1x24x4xbf16>
    %52 = vector.shape_cast %51 : vector<1x24x4xbf16> to vector<24x4xbf16>
    %cst_30 = arith.constant dense<0.000000e+00> : vector<256x4xf32>
    %53 = tpu.matmul %50, %52, %cst_30 {dimension_numbers = #tpu.dot_dimension_numbers<[1], [0], [0], [1], [0, 0, 1, 1], [], []>} : vector<256x24xbf16>, vector<24x4xbf16>, vector<256x4xf32> -> vector<256x4xf32>
    %54 = arith.addf %45, %53 : vector<256x4xf32>
    %55 = vector.extract_strided_slice %35 {offsets = [0, 2, 0], sizes = [16, 16, 8], strides = [1, 1, 1]} : vector<18x18x8xbf16> to vector<16x16x8xbf16>
    %56 = vector.extract_strided_slice %35 {offsets = [1, 2, 0], sizes = [16, 16, 8], strides = [1, 1, 1]} : vector<18x18x8xbf16> to vector<16x16x8xbf16>
    %57 = vector.extract_strided_slice %35 {offsets = [2, 2, 0], sizes = [16, 16, 8], strides = [1, 1, 1]} : vector<18x18x8xbf16> to vector<16x16x8xbf16>
    %58 = tpu.concatenate %55, %56, %57 in 2 : vector<16x16x8xbf16>, vector<16x16x8xbf16>, vector<16x16x8xbf16> -> vector<16x16x24xbf16>
    %59 = vector.shape_cast %58 : vector<16x16x24xbf16> to vector<256x24xbf16>
    %c2 = arith.constant 2 : index
    %c0_31 = arith.constant 0 : index
    %c0_32 = arith.constant 0 : index
    %60 = vector.load %arg8[%c2, %c0_31, %c0_32] : memref<3x24x4xbf16, #tpu.memory_space<vmem>>, vector<1x24x4xbf16>
    %61 = vector.shape_cast %60 : vector<1x24x4xbf16> to vector<24x4xbf16>
    %cst_33 = arith.constant dense<0.000000e+00> : vector<256x4xf32>
    %62 = tpu.matmul %59, %61, %cst_33 {dimension_numbers = #tpu.dot_dimension_numbers<[1], [0], [0], [1], [0, 0, 1, 1], [], []>} : vector<256x24xbf16>, vector<24x4xbf16>, vector<256x4xf32> -> vector<256x4xf32>
    %63 = arith.addf %54, %62 : vector<256x4xf32>
    %64 = vector.shape_cast %63 : vector<256x4xf32> to vector<1x16x16x4xf32>
    %65 = arith.truncf %64 : vector<1x16x16x4xf32> to vector<1x16x16x4xbf16>
    %c0_34 = arith.constant 0 : index
    %c0_35 = arith.constant 0 : index
    %c0_36 = arith.constant 0 : index
    %c0_37 = arith.constant 0 : index
    %66 = vector.load %arg12[%c0_34, %c0_35, %c0_36, %c0_37] : memref<1x16x16x4xbf16, #tpu.memory_space<vmem>>, vector<1x16x16x4xbf16>
    tpu.vector_store %arg12[%c0_34, %c0_35, %c0_36, %c0_37], %65 {strides = array<i32>} : memref<1x16x16x4xbf16, #tpu.memory_space<vmem>>, vector<1x16x16x4xbf16>,
    %cst_38 = arith.constant dense<0.000000e+00> : vector<4xf32>
    %67 = vector.multi_reduction <add>, %63, %cst_38 [0] : vector<256x4xf32> to vector<4xf32>
    %68 = arith.mulf %63, %63 : vector<256x4xf32>
    %cst_39 = arith.constant dense<0.000000e+00> : vector<4xf32>
    %69 = vector.multi_reduction <add>, %68, %cst_39 [0] : vector<256x4xf32> to vector<4xf32>
    %70 = vector.shape_cast %67 : vector<4xf32> to vector<1x4xf32>
    %71 = vector.shape_cast %69 : vector<4xf32> to vector<1x4xf32>
    %72 = tpu.concatenate %70, %71 in 0 : vector<1x4xf32>, vector<1x4xf32> -> vector<2x4xf32>
    %73 = vector.shape_cast %72 : vector<2x4xf32> to vector<1x1x2x4xf32>
    %c0_40 = arith.constant 0 : index
    %c0_41 = arith.constant 0 : index
    %c0_42 = arith.constant 0 : index
    %c0_43 = arith.constant 0 : index
    %74 = vector.load %arg13[%c0_40, %c0_41, %c0_42, %c0_43] : memref<1x1x2x4xf32, #tpu.memory_space<vmem>>, vector<1x1x2x4xf32>
    tpu.vector_store %arg13[%c0_40, %c0_41, %c0_42, %c0_43], %73 {strides = array<i32>} : memref<1x1x2x4xf32, #tpu.memory_space<vmem>>, vector<1x1x2x4xf32>,
    return
  }
  func.func @transform_0(%arg0: i32, %arg1: i32) -> (i32, i32, i32, i32) {
    %c0_i32 = arith.constant 0 : i32
    %c0_i32_0 = arith.constant 0 : i32
    %c0_i32_1 = arith.constant 0 : i32
    return %arg0, %arg1, %c0_i32, %c0_i32_0 : i32, i32, i32, i32
  }
  func.func @transform_1(%arg0: i32, %arg1: i32) -> (i32, i32, i32, i32) {
    %c2_i32 = arith.constant 2 : i32
    %0 = arith.muli %arg1, %c2_i32 : i32
    %c1_i32 = arith.constant 1 : i32
    %1 = arith.subi %0, %c1_i32 : i32
    %c0_i32 = arith.constant 0 : i32
    %2 = arith.maxsi %1, %c0_i32 : i32
    %c0_i32_0 = arith.constant 0 : i32
    %c0_i32_1 = arith.constant 0 : i32
    %c0_i32_2 = arith.constant 0 : i32
    return %arg0, %2, %c0_i32_0, %c0_i32_1 : i32, i32, i32, i32
  }
  func.func @transform_2(%arg0: i32, %arg1: i32) -> (i32, i32, i32, i32) {
    %c1_i32 = arith.constant 1 : i32
    %0 = arith.addi %arg1, %c1_i32 : i32
    %c2_i32 = arith.constant 2 : i32
    %1 = arith.muli %0, %c2_i32 : i32
    %c1_i32_0 = arith.constant 1 : i32
    %2 = arith.minsi %1, %c1_i32_0 : i32
    %c0_i32 = arith.constant 0 : i32
    %c0_i32_1 = arith.constant 0 : i32
    %c0_i32_2 = arith.constant 0 : i32
    return %arg0, %2, %c0_i32, %c0_i32_1 : i32, i32, i32, i32
  }
  func.func @transform_3(%arg0: i32, %arg1: i32) -> (i32, i32, i32, i32) {
    %c0_i32 = arith.constant 0 : i32
    %c0_i32_0 = arith.constant 0 : i32
    %c0_i32_1 = arith.constant 0 : i32
    return %arg0, %arg1, %c0_i32, %c0_i32_0 : i32, i32, i32, i32
  }
  func.func @transform_4(%arg0: i32, %arg1: i32) -> (i32, i32, i32, i32) {
    %c2_i32 = arith.constant 2 : i32
    %0 = arith.muli %arg1, %c2_i32 : i32
    %c1_i32 = arith.constant 1 : i32
    %1 = arith.subi %0, %c1_i32 : i32
    %c0_i32 = arith.constant 0 : i32
    %2 = arith.maxsi %1, %c0_i32 : i32
    %c0_i32_0 = arith.constant 0 : i32
    %c0_i32_1 = arith.constant 0 : i32
    %c0_i32_2 = arith.constant 0 : i32
    return %arg0, %2, %c0_i32_0, %c0_i32_1 : i32, i32, i32, i32
  }
  func.func @transform_5(%arg0: i32, %arg1: i32) -> (i32, i32, i32, i32) {
    %c1_i32 = arith.constant 1 : i32
    %0 = arith.addi %arg1, %c1_i32 : i32
    %c2_i32 = arith.constant 2 : i32
    %1 = arith.muli %0, %c2_i32 : i32
    %c1_i32_0 = arith.constant 1 : i32
    %2 = arith.minsi %1, %c1_i32_0 : i32
    %c0_i32 = arith.constant 0 : i32
    %c0_i32_1 = arith.constant 0 : i32
    %c0_i32_2 = arith.constant 0 : i32
    return %arg0, %2, %c0_i32, %c0_i32_1 : i32, i32, i32, i32
  }
  func.func @transform_6(%arg0: i32, %arg1: i32) -> (i32, i32, i32) {
    %c0_i32 = arith.constant 0 : i32
    %c0_i32_0 = arith.constant 0 : i32
    %c0_i32_1 = arith.constant 0 : i32
    %c0_i32_2 = arith.constant 0 : i32
    return %c0_i32, %c0_i32_0, %c0_i32_1 : i32, i32, i32
  }
  func.func @transform_7(%arg0: i32, %arg1: i32) -> (i32, i32) {
    %c0_i32 = arith.constant 0 : i32
    %c0_i32_0 = arith.constant 0 : i32
    %c0_i32_1 = arith.constant 0 : i32
    return %c0_i32, %c0_i32_0 : i32, i32
  }
  func.func @transform_8(%arg0: i32, %arg1: i32) -> (i32, i32) {
    %c0_i32 = arith.constant 0 : i32
    %c0_i32_0 = arith.constant 0 : i32
    %c0_i32_1 = arith.constant 0 : i32
    return %c0_i32, %c0_i32_0 : i32, i32
  }
  func.func @transform_9(%arg0: i32, %arg1: i32) -> (i32, i32) {
    %c0_i32 = arith.constant 0 : i32
    %c0_i32_0 = arith.constant 0 : i32
    %c0_i32_1 = arith.constant 0 : i32
    return %c0_i32, %c0_i32_0 : i32, i32
  }
  func.func @transform_10(%arg0: i32, %arg1: i32) -> (i32, i32, i32, i32) {
    %c0_i32 = arith.constant 0 : i32
    %c0_i32_0 = arith.constant 0 : i32
    %c0_i32_1 = arith.constant 0 : i32
    return %arg0, %arg1, %c0_i32, %c0_i32_0 : i32, i32, i32, i32
  }
  func.func @transform_11(%arg0: i32, %arg1: i32) -> (i32, i32, i32, i32) {
    %c0_i32 = arith.constant 0 : i32
    %c0_i32_0 = arith.constant 0 : i32
    %c0_i32_1 = arith.constant 0 : i32
    return %arg0, %arg1, %c0_i32, %c0_i32_0 : i32, i32, i32, i32
  }
}

module attributes {stable_mosaic.version = 11 : i64} {
  func.func @_conv_bn_stats_kernel(%arg0: i32, %arg1: i32, %arg2: memref<1x16x16x4xbf16, #tpu.memory_space<vmem>>, %arg3: memref<1x8x16x4xbf16, #tpu.memory_space<vmem>>, %arg4: memref<1x8x16x4xbf16, #tpu.memory_space<vmem>>, %arg5: memref<3x12x4xbf16, #tpu.memory_space<vmem>>, %arg6: memref<1x4xf32, #tpu.memory_space<vmem>>, %arg7: memref<1x4xf32, #tpu.memory_space<vmem>>, %arg8: memref<1x4xf32, #tpu.memory_space<vmem>>, %arg9: memref<1x16x16x4xbf16, #tpu.memory_space<vmem>>, %arg10: memref<1x1x2x4xf32, #tpu.memory_space<vmem>>) attributes {dimension_semantics = [#tpu.dimension_semantics<parallel>, #tpu.dimension_semantics<parallel>], iteration_bounds = array<i64: 2, 1>, scalar_prefetch = 0 : i64, scratch_operands = 0 : i64, tpu.core_type = #tpu.core_type<tc>, window_params = [{transform_indices = @transform_0, window_bounds = array<i64: 1, 16, 16, 4>}, {transform_indices = @transform_1, window_bounds = array<i64: 1, 8, 16, 4>}, {transform_indices = @transform_2, window_bounds = array<i64: 1, 8, 16, 4>}, {pipeline_mode = #tpu.pipeline_mode<synchronous>, transform_indices = @transform_3, window_bounds = array<i64: 3, 12, 4>}, {pipeline_mode = #tpu.pipeline_mode<synchronous>, transform_indices = @transform_4, window_bounds = array<i64: 1, 4>}, {pipeline_mode = #tpu.pipeline_mode<synchronous>, transform_indices = @transform_5, window_bounds = array<i64: 1, 4>}, {pipeline_mode = #tpu.pipeline_mode<synchronous>, transform_indices = @transform_6, window_bounds = array<i64: 1, 4>}, {transform_indices = @transform_7, window_bounds = array<i64: 1, 16, 16, 4>}, {transform_indices = @transform_8, window_bounds = array<i64: 1, 1, 2, 4>}]} {
    %c0_i32 = arith.constant 0 : i32
    %0 = arith.cmpi sgt, %arg1, %c0_i32 : i32
    %1 = arith.extui %0 : i1 to i32
    %2 = arith.sitofp %1 : i32 to f32
    %3 = arith.truncf %2 : f32 to bf16
    %c0_i32_0 = arith.constant 0 : i32
    %4 = arith.cmpi slt, %arg1, %c0_i32_0 : i32
    %5 = arith.extui %4 : i1 to i32
    %6 = arith.sitofp %5 : i32 to f32
    %7 = arith.truncf %6 : f32 to bf16
    %c0 = arith.constant 0 : index
    %c7 = arith.constant 7 : index
    %c0_1 = arith.constant 0 : index
    %c0_2 = arith.constant 0 : index
    %8 = vector.load %arg3[%c0, %c7, %c0_1, %c0_2] : memref<1x8x16x4xbf16, #tpu.memory_space<vmem>>, vector<1x1x16x4xbf16>
    %9 = vector.shape_cast %8 : vector<1x1x16x4xbf16> to vector<1x16x4xbf16>
    %10 = arith.extf %9 : vector<1x16x4xbf16> to vector<1x16x4xf32>
    %c0_3 = arith.constant 0 : index
    %c0_4 = arith.constant 0 : index
    %11 = vector.load %arg6[%c0_3, %c0_4] : memref<1x4xf32, #tpu.memory_space<vmem>>, vector<1x4xf32>
    %12 = vector.shape_cast %11 : vector<1x4xf32> to vector<1x1x4xf32>
    %13 = vector.broadcast %12 : vector<1x1x4xf32> to vector<1x16x4xf32>
    %14 = arith.subf %10, %13 : vector<1x16x4xf32>
    %c0_5 = arith.constant 0 : index
    %c0_6 = arith.constant 0 : index
    %15 = vector.load %arg7[%c0_5, %c0_6] : memref<1x4xf32, #tpu.memory_space<vmem>>, vector<1x4xf32>
    %16 = vector.shape_cast %15 : vector<1x4xf32> to vector<1x1x4xf32>
    %17 = vector.broadcast %16 : vector<1x1x4xf32> to vector<1x16x4xf32>
    %18 = arith.mulf %14, %17 : vector<1x16x4xf32>
    %c0_7 = arith.constant 0 : index
    %c0_8 = arith.constant 0 : index
    %19 = vector.load %arg8[%c0_7, %c0_8] : memref<1x4xf32, #tpu.memory_space<vmem>>, vector<1x4xf32>
    %20 = vector.shape_cast %19 : vector<1x4xf32> to vector<1x1x4xf32>
    %21 = vector.broadcast %20 : vector<1x1x4xf32> to vector<1x16x4xf32>
    %22 = arith.addf %18, %21 : vector<1x16x4xf32>
    %cst = arith.constant 0.000000e+00 : f32
    %23 = vector.broadcast %cst : f32 to vector<1x16x4xf32>
    %24 = arith.maximumf %22, %23 : vector<1x16x4xf32>
    %25 = arith.truncf %24 : vector<1x16x4xf32> to vector<1x16x4xbf16>
    %26 = vector.broadcast %3 : bf16 to vector<1x16x4xbf16>
    %27 = arith.mulf %25, %26 : vector<1x16x4xbf16>
    %c0_9 = arith.constant 0 : index
    %c0_10 = arith.constant 0 : index
    %c0_11 = arith.constant 0 : index
    %c0_12 = arith.constant 0 : index
    %28 = vector.load %arg2[%c0_9, %c0_10, %c0_11, %c0_12] : memref<1x16x16x4xbf16, #tpu.memory_space<vmem>>, vector<1x16x16x4xbf16>
    %29 = vector.shape_cast %28 : vector<1x16x16x4xbf16> to vector<16x16x4xbf16>
    %30 = arith.extf %29 : vector<16x16x4xbf16> to vector<16x16x4xf32>
    %c0_13 = arith.constant 0 : index
    %c0_14 = arith.constant 0 : index
    %31 = vector.load %arg6[%c0_13, %c0_14] : memref<1x4xf32, #tpu.memory_space<vmem>>, vector<1x4xf32>
    %32 = vector.shape_cast %31 : vector<1x4xf32> to vector<1x1x4xf32>
    %33 = vector.broadcast %32 : vector<1x1x4xf32> to vector<16x16x4xf32>
    %34 = arith.subf %30, %33 : vector<16x16x4xf32>
    %c0_15 = arith.constant 0 : index
    %c0_16 = arith.constant 0 : index
    %35 = vector.load %arg7[%c0_15, %c0_16] : memref<1x4xf32, #tpu.memory_space<vmem>>, vector<1x4xf32>
    %36 = vector.shape_cast %35 : vector<1x4xf32> to vector<1x1x4xf32>
    %37 = vector.broadcast %36 : vector<1x1x4xf32> to vector<16x16x4xf32>
    %38 = arith.mulf %34, %37 : vector<16x16x4xf32>
    %c0_17 = arith.constant 0 : index
    %c0_18 = arith.constant 0 : index
    %39 = vector.load %arg8[%c0_17, %c0_18] : memref<1x4xf32, #tpu.memory_space<vmem>>, vector<1x4xf32>
    %40 = vector.shape_cast %39 : vector<1x4xf32> to vector<1x1x4xf32>
    %41 = vector.broadcast %40 : vector<1x1x4xf32> to vector<16x16x4xf32>
    %42 = arith.addf %38, %41 : vector<16x16x4xf32>
    %cst_19 = arith.constant 0.000000e+00 : f32
    %43 = vector.broadcast %cst_19 : f32 to vector<16x16x4xf32>
    %44 = arith.maximumf %42, %43 : vector<16x16x4xf32>
    %45 = arith.truncf %44 : vector<16x16x4xf32> to vector<16x16x4xbf16>
    %c0_20 = arith.constant 0 : index
    %c0_21 = arith.constant 0 : index
    %c0_22 = arith.constant 0 : index
    %c0_23 = arith.constant 0 : index
    %46 = vector.load %arg4[%c0_20, %c0_21, %c0_22, %c0_23] : memref<1x8x16x4xbf16, #tpu.memory_space<vmem>>, vector<1x1x16x4xbf16>
    %47 = vector.shape_cast %46 : vector<1x1x16x4xbf16> to vector<1x16x4xbf16>
    %48 = arith.extf %47 : vector<1x16x4xbf16> to vector<1x16x4xf32>
    %c0_24 = arith.constant 0 : index
    %c0_25 = arith.constant 0 : index
    %49 = vector.load %arg6[%c0_24, %c0_25] : memref<1x4xf32, #tpu.memory_space<vmem>>, vector<1x4xf32>
    %50 = vector.shape_cast %49 : vector<1x4xf32> to vector<1x1x4xf32>
    %51 = vector.broadcast %50 : vector<1x1x4xf32> to vector<1x16x4xf32>
    %52 = arith.subf %48, %51 : vector<1x16x4xf32>
    %c0_26 = arith.constant 0 : index
    %c0_27 = arith.constant 0 : index
    %53 = vector.load %arg7[%c0_26, %c0_27] : memref<1x4xf32, #tpu.memory_space<vmem>>, vector<1x4xf32>
    %54 = vector.shape_cast %53 : vector<1x4xf32> to vector<1x1x4xf32>
    %55 = vector.broadcast %54 : vector<1x1x4xf32> to vector<1x16x4xf32>
    %56 = arith.mulf %52, %55 : vector<1x16x4xf32>
    %c0_28 = arith.constant 0 : index
    %c0_29 = arith.constant 0 : index
    %57 = vector.load %arg8[%c0_28, %c0_29] : memref<1x4xf32, #tpu.memory_space<vmem>>, vector<1x4xf32>
    %58 = vector.shape_cast %57 : vector<1x4xf32> to vector<1x1x4xf32>
    %59 = vector.broadcast %58 : vector<1x1x4xf32> to vector<1x16x4xf32>
    %60 = arith.addf %56, %59 : vector<1x16x4xf32>
    %cst_30 = arith.constant 0.000000e+00 : f32
    %61 = vector.broadcast %cst_30 : f32 to vector<1x16x4xf32>
    %62 = arith.maximumf %60, %61 : vector<1x16x4xf32>
    %63 = arith.truncf %62 : vector<1x16x4xf32> to vector<1x16x4xbf16>
    %64 = vector.broadcast %7 : bf16 to vector<1x16x4xbf16>
    %65 = arith.mulf %63, %64 : vector<1x16x4xbf16>
    %66 = tpu.concatenate %27, %45, %65 in 0 : vector<1x16x4xbf16>, vector<16x16x4xbf16>, vector<1x16x4xbf16> -> vector<18x16x4xbf16>
    %cst_31 = arith.constant 0.000000e+00 : bf16
    %67 = vector.broadcast %cst_31 : bf16 to vector<18x1x4xbf16>
    %68 = tpu.concatenate %67, %66, %67 in 1 : vector<18x1x4xbf16>, vector<18x16x4xbf16>, vector<18x1x4xbf16> -> vector<18x18x4xbf16>
    %cst_32 = arith.constant 0.000000e+00 : f32
    %69 = vector.broadcast %cst_32 : f32 to vector<256x4xf32>
    %70 = vector.extract_strided_slice %68 {offsets = [0, 0, 0], sizes = [16, 16, 4], strides = [1, 1, 1]} : vector<18x18x4xbf16> to vector<16x16x4xbf16>
    %71 = vector.extract_strided_slice %68 {offsets = [1, 0, 0], sizes = [16, 16, 4], strides = [1, 1, 1]} : vector<18x18x4xbf16> to vector<16x16x4xbf16>
    %72 = vector.extract_strided_slice %68 {offsets = [2, 0, 0], sizes = [16, 16, 4], strides = [1, 1, 1]} : vector<18x18x4xbf16> to vector<16x16x4xbf16>
    %73 = tpu.concatenate %70, %71, %72 in 2 : vector<16x16x4xbf16>, vector<16x16x4xbf16>, vector<16x16x4xbf16> -> vector<16x16x12xbf16>
    %74 = vector.shape_cast %73 : vector<16x16x12xbf16> to vector<256x12xbf16>
    %c0_33 = arith.constant 0 : index
    %c0_34 = arith.constant 0 : index
    %c0_35 = arith.constant 0 : index
    %75 = vector.load %arg5[%c0_33, %c0_34, %c0_35] : memref<3x12x4xbf16, #tpu.memory_space<vmem>>, vector<1x12x4xbf16>
    %76 = vector.shape_cast %75 : vector<1x12x4xbf16> to vector<12x4xbf16>
    %cst_36 = arith.constant dense<0.000000e+00> : vector<256x4xf32>
    %77 = tpu.matmul %74, %76, %cst_36 {dimension_numbers = #tpu.dot_dimension_numbers<[1], [0], [0], [1], [0, 0, 1, 1], [], []>} : vector<256x12xbf16>, vector<12x4xbf16>, vector<256x4xf32> -> vector<256x4xf32>
    %78 = arith.addf %69, %77 : vector<256x4xf32>
    %79 = vector.extract_strided_slice %68 {offsets = [0, 1, 0], sizes = [16, 16, 4], strides = [1, 1, 1]} : vector<18x18x4xbf16> to vector<16x16x4xbf16>
    %80 = vector.extract_strided_slice %68 {offsets = [1, 1, 0], sizes = [16, 16, 4], strides = [1, 1, 1]} : vector<18x18x4xbf16> to vector<16x16x4xbf16>
    %81 = vector.extract_strided_slice %68 {offsets = [2, 1, 0], sizes = [16, 16, 4], strides = [1, 1, 1]} : vector<18x18x4xbf16> to vector<16x16x4xbf16>
    %82 = tpu.concatenate %79, %80, %81 in 2 : vector<16x16x4xbf16>, vector<16x16x4xbf16>, vector<16x16x4xbf16> -> vector<16x16x12xbf16>
    %83 = vector.shape_cast %82 : vector<16x16x12xbf16> to vector<256x12xbf16>
    %c1 = arith.constant 1 : index
    %c0_37 = arith.constant 0 : index
    %c0_38 = arith.constant 0 : index
    %84 = vector.load %arg5[%c1, %c0_37, %c0_38] : memref<3x12x4xbf16, #tpu.memory_space<vmem>>, vector<1x12x4xbf16>
    %85 = vector.shape_cast %84 : vector<1x12x4xbf16> to vector<12x4xbf16>
    %cst_39 = arith.constant dense<0.000000e+00> : vector<256x4xf32>
    %86 = tpu.matmul %83, %85, %cst_39 {dimension_numbers = #tpu.dot_dimension_numbers<[1], [0], [0], [1], [0, 0, 1, 1], [], []>} : vector<256x12xbf16>, vector<12x4xbf16>, vector<256x4xf32> -> vector<256x4xf32>
    %87 = arith.addf %78, %86 : vector<256x4xf32>
    %88 = vector.extract_strided_slice %68 {offsets = [0, 2, 0], sizes = [16, 16, 4], strides = [1, 1, 1]} : vector<18x18x4xbf16> to vector<16x16x4xbf16>
    %89 = vector.extract_strided_slice %68 {offsets = [1, 2, 0], sizes = [16, 16, 4], strides = [1, 1, 1]} : vector<18x18x4xbf16> to vector<16x16x4xbf16>
    %90 = vector.extract_strided_slice %68 {offsets = [2, 2, 0], sizes = [16, 16, 4], strides = [1, 1, 1]} : vector<18x18x4xbf16> to vector<16x16x4xbf16>
    %91 = tpu.concatenate %88, %89, %90 in 2 : vector<16x16x4xbf16>, vector<16x16x4xbf16>, vector<16x16x4xbf16> -> vector<16x16x12xbf16>
    %92 = vector.shape_cast %91 : vector<16x16x12xbf16> to vector<256x12xbf16>
    %c2 = arith.constant 2 : index
    %c0_40 = arith.constant 0 : index
    %c0_41 = arith.constant 0 : index
    %93 = vector.load %arg5[%c2, %c0_40, %c0_41] : memref<3x12x4xbf16, #tpu.memory_space<vmem>>, vector<1x12x4xbf16>
    %94 = vector.shape_cast %93 : vector<1x12x4xbf16> to vector<12x4xbf16>
    %cst_42 = arith.constant dense<0.000000e+00> : vector<256x4xf32>
    %95 = tpu.matmul %92, %94, %cst_42 {dimension_numbers = #tpu.dot_dimension_numbers<[1], [0], [0], [1], [0, 0, 1, 1], [], []>} : vector<256x12xbf16>, vector<12x4xbf16>, vector<256x4xf32> -> vector<256x4xf32>
    %96 = arith.addf %87, %95 : vector<256x4xf32>
    %97 = vector.shape_cast %96 : vector<256x4xf32> to vector<1x16x16x4xf32>
    %98 = arith.truncf %97 : vector<1x16x16x4xf32> to vector<1x16x16x4xbf16>
    %c0_43 = arith.constant 0 : index
    %c0_44 = arith.constant 0 : index
    %c0_45 = arith.constant 0 : index
    %c0_46 = arith.constant 0 : index
    %99 = vector.load %arg9[%c0_43, %c0_44, %c0_45, %c0_46] : memref<1x16x16x4xbf16, #tpu.memory_space<vmem>>, vector<1x16x16x4xbf16>
    tpu.vector_store %arg9[%c0_43, %c0_44, %c0_45, %c0_46], %98 {strides = array<i32>} : memref<1x16x16x4xbf16, #tpu.memory_space<vmem>>, vector<1x16x16x4xbf16>,
    %cst_47 = arith.constant dense<0.000000e+00> : vector<4xf32>
    %100 = vector.multi_reduction <add>, %96, %cst_47 [0] : vector<256x4xf32> to vector<4xf32>
    %101 = arith.mulf %96, %96 : vector<256x4xf32>
    %cst_48 = arith.constant dense<0.000000e+00> : vector<4xf32>
    %102 = vector.multi_reduction <add>, %101, %cst_48 [0] : vector<256x4xf32> to vector<4xf32>
    %103 = vector.shape_cast %100 : vector<4xf32> to vector<1x4xf32>
    %104 = vector.shape_cast %102 : vector<4xf32> to vector<1x4xf32>
    %105 = tpu.concatenate %103, %104 in 0 : vector<1x4xf32>, vector<1x4xf32> -> vector<2x4xf32>
    %106 = vector.shape_cast %105 : vector<2x4xf32> to vector<1x1x2x4xf32>
    %c0_49 = arith.constant 0 : index
    %c0_50 = arith.constant 0 : index
    %c0_51 = arith.constant 0 : index
    %c0_52 = arith.constant 0 : index
    %107 = vector.load %arg10[%c0_49, %c0_50, %c0_51, %c0_52] : memref<1x1x2x4xf32, #tpu.memory_space<vmem>>, vector<1x1x2x4xf32>
    tpu.vector_store %arg10[%c0_49, %c0_50, %c0_51, %c0_52], %106 {strides = array<i32>} : memref<1x1x2x4xf32, #tpu.memory_space<vmem>>, vector<1x1x2x4xf32>,
    return
  }
  func.func @transform_0(%arg0: i32, %arg1: i32) -> (i32, i32, i32, i32) {
    %c0_i32 = arith.constant 0 : i32
    %c0_i32_0 = arith.constant 0 : i32
    %c0_i32_1 = arith.constant 0 : i32
    return %arg0, %arg1, %c0_i32, %c0_i32_0 : i32, i32, i32, i32
  }
  func.func @transform_1(%arg0: i32, %arg1: i32) -> (i32, i32, i32, i32) {
    %c2_i32 = arith.constant 2 : i32
    %0 = arith.muli %arg1, %c2_i32 : i32
    %c1_i32 = arith.constant 1 : i32
    %1 = arith.subi %0, %c1_i32 : i32
    %c0_i32 = arith.constant 0 : i32
    %2 = arith.maxsi %1, %c0_i32 : i32
    %c0_i32_0 = arith.constant 0 : i32
    %c0_i32_1 = arith.constant 0 : i32
    %c0_i32_2 = arith.constant 0 : i32
    return %arg0, %2, %c0_i32_0, %c0_i32_1 : i32, i32, i32, i32
  }
  func.func @transform_2(%arg0: i32, %arg1: i32) -> (i32, i32, i32, i32) {
    %c1_i32 = arith.constant 1 : i32
    %0 = arith.addi %arg1, %c1_i32 : i32
    %c2_i32 = arith.constant 2 : i32
    %1 = arith.muli %0, %c2_i32 : i32
    %c1_i32_0 = arith.constant 1 : i32
    %2 = arith.minsi %1, %c1_i32_0 : i32
    %c0_i32 = arith.constant 0 : i32
    %c0_i32_1 = arith.constant 0 : i32
    %c0_i32_2 = arith.constant 0 : i32
    return %arg0, %2, %c0_i32, %c0_i32_1 : i32, i32, i32, i32
  }
  func.func @transform_3(%arg0: i32, %arg1: i32) -> (i32, i32, i32) {
    %c0_i32 = arith.constant 0 : i32
    %c0_i32_0 = arith.constant 0 : i32
    %c0_i32_1 = arith.constant 0 : i32
    %c0_i32_2 = arith.constant 0 : i32
    return %c0_i32, %c0_i32_0, %c0_i32_1 : i32, i32, i32
  }
  func.func @transform_4(%arg0: i32, %arg1: i32) -> (i32, i32) {
    %c0_i32 = arith.constant 0 : i32
    %c0_i32_0 = arith.constant 0 : i32
    %c0_i32_1 = arith.constant 0 : i32
    return %c0_i32, %c0_i32_0 : i32, i32
  }
  func.func @transform_5(%arg0: i32, %arg1: i32) -> (i32, i32) {
    %c0_i32 = arith.constant 0 : i32
    %c0_i32_0 = arith.constant 0 : i32
    %c0_i32_1 = arith.constant 0 : i32
    return %c0_i32, %c0_i32_0 : i32, i32
  }
  func.func @transform_6(%arg0: i32, %arg1: i32) -> (i32, i32) {
    %c0_i32 = arith.constant 0 : i32
    %c0_i32_0 = arith.constant 0 : i32
    %c0_i32_1 = arith.constant 0 : i32
    return %c0_i32, %c0_i32_0 : i32, i32
  }
  func.func @transform_7(%arg0: i32, %arg1: i32) -> (i32, i32, i32, i32) {
    %c0_i32 = arith.constant 0 : i32
    %c0_i32_0 = arith.constant 0 : i32
    %c0_i32_1 = arith.constant 0 : i32
    return %arg0, %arg1, %c0_i32, %c0_i32_0 : i32, i32, i32, i32
  }
  func.func @transform_8(%arg0: i32, %arg1: i32) -> (i32, i32, i32, i32) {
    %c0_i32 = arith.constant 0 : i32
    %c0_i32_0 = arith.constant 0 : i32
    %c0_i32_1 = arith.constant 0 : i32
    return %arg0, %arg1, %c0_i32, %c0_i32_0 : i32, i32, i32, i32
  }
}

module attributes {stable_mosaic.version = 11 : i64} {
  func.func @_bn_relu_kernel(%arg0: i32, %arg1: memref<32x64xbf16, #tpu.memory_space<vmem>>, %arg2: memref<1x64xf32, #tpu.memory_space<vmem>>, %arg3: memref<1x64xf32, #tpu.memory_space<vmem>>, %arg4: memref<1x64xf32, #tpu.memory_space<vmem>>, %arg5: memref<32x64xf32, #tpu.memory_space<vmem>>) attributes {dimension_semantics = [#tpu.dimension_semantics<parallel>], iteration_bounds = array<i64: 1>, scalar_prefetch = 0 : i64, scratch_operands = 0 : i64, tpu.core_type = #tpu.core_type<tc>, window_params = [{transform_indices = @transform_0, window_bounds = array<i64: 32, 64>}, {pipeline_mode = #tpu.pipeline_mode<synchronous>, transform_indices = @transform_1, window_bounds = array<i64: 1, 64>}, {pipeline_mode = #tpu.pipeline_mode<synchronous>, transform_indices = @transform_2, window_bounds = array<i64: 1, 64>}, {pipeline_mode = #tpu.pipeline_mode<synchronous>, transform_indices = @transform_3, window_bounds = array<i64: 1, 64>}, {transform_indices = @transform_4, window_bounds = array<i64: 32, 64>}]} {
    %c0 = arith.constant 0 : index
    %c0_0 = arith.constant 0 : index
    %0 = vector.load %arg1[%c0, %c0_0] : memref<32x64xbf16, #tpu.memory_space<vmem>>, vector<32x64xbf16>
    %1 = arith.extf %0 : vector<32x64xbf16> to vector<32x64xf32>
    %c0_1 = arith.constant 0 : index
    %c0_2 = arith.constant 0 : index
    %2 = vector.load %arg2[%c0_1, %c0_2] : memref<1x64xf32, #tpu.memory_space<vmem>>, vector<1x64xf32>
    %3 = vector.broadcast %2 : vector<1x64xf32> to vector<32x64xf32>
    %4 = arith.subf %1, %3 : vector<32x64xf32>
    %c0_3 = arith.constant 0 : index
    %c0_4 = arith.constant 0 : index
    %5 = vector.load %arg3[%c0_3, %c0_4] : memref<1x64xf32, #tpu.memory_space<vmem>>, vector<1x64xf32>
    %6 = vector.broadcast %5 : vector<1x64xf32> to vector<32x64xf32>
    %7 = arith.mulf %4, %6 : vector<32x64xf32>
    %c0_5 = arith.constant 0 : index
    %c0_6 = arith.constant 0 : index
    %8 = vector.load %arg4[%c0_5, %c0_6] : memref<1x64xf32, #tpu.memory_space<vmem>>, vector<1x64xf32>
    %9 = vector.broadcast %8 : vector<1x64xf32> to vector<32x64xf32>
    %10 = arith.addf %7, %9 : vector<32x64xf32>
    %cst = arith.constant 0.000000e+00 : f32
    %11 = vector.broadcast %cst : f32 to vector<32x64xf32>
    %12 = arith.maximumf %10, %11 : vector<32x64xf32>
    %c0_7 = arith.constant 0 : index
    %c0_8 = arith.constant 0 : index
    %13 = vector.load %arg5[%c0_7, %c0_8] : memref<32x64xf32, #tpu.memory_space<vmem>>, vector<32x64xf32>
    tpu.vector_store %arg5[%c0_7, %c0_8], %12 {strides = array<i32>} : memref<32x64xf32, #tpu.memory_space<vmem>>, vector<32x64xf32>,
    return
  }
  func.func @transform_0(%arg0: i32) -> (i32, i32) {
    %c0_i32 = arith.constant 0 : i32
    %c0_i32_0 = arith.constant 0 : i32
    return %arg0, %c0_i32 : i32, i32
  }
  func.func @transform_1(%arg0: i32) -> (i32, i32) {
    %c0_i32 = arith.constant 0 : i32
    %c0_i32_0 = arith.constant 0 : i32
    %c0_i32_1 = arith.constant 0 : i32
    return %c0_i32, %c0_i32_0 : i32, i32
  }
  func.func @transform_2(%arg0: i32) -> (i32, i32) {
    %c0_i32 = arith.constant 0 : i32
    %c0_i32_0 = arith.constant 0 : i32
    %c0_i32_1 = arith.constant 0 : i32
    return %c0_i32, %c0_i32_0 : i32, i32
  }
  func.func @transform_3(%arg0: i32) -> (i32, i32) {
    %c0_i32 = arith.constant 0 : i32
    %c0_i32_0 = arith.constant 0 : i32
    %c0_i32_1 = arith.constant 0 : i32
    return %c0_i32, %c0_i32_0 : i32, i32
  }
  func.func @transform_4(%arg0: i32) -> (i32, i32) {
    %c0_i32 = arith.constant 0 : i32
    %c0_i32_0 = arith.constant 0 : i32
    return %arg0, %c0_i32 : i32, i32
  }
}

</mosaic_0001>

<bundles_post_ra>
// kernel: tile.20
= control target key start
LH: loop header
LB: loop body
LE: loop exit
PB: predicated region body
PF: predicated region fallthrough
CT: control target
= control target key end

     0   :  { %s22_s0 = inlined_call_operand.vmem [shape: f32[4], index: 0, kind: input, shape index: {}]   ;;  %s23_s1 = inlined_call_operand.vmem [shape: f32[4,4], index: 1, kind: output, shape index: {}]  }
   0x1   :  { %v4_v0 = vld [vmem:[%s22_s0] ss:$0 sm:$0xff] }
   0x2   :  { %5 = vst [vmem:[%s23_s1] sm:$0xf] %v4_v0 }

// kernel: tile.21
= control target key start
LH: loop header
LB: loop body
LE: loop exit
PB: predicated region body
PF: predicated region fallthrough
CT: control target
= control target key end

     0   :  { %vm7_vm0 = vcmask 31744   ;;  %s37_s8 = smov 4   ;;  %s38_s9 = smov 8   ;;  %vm13_vm1 = vcmask 130144   ;;  %vm19_vm2 = vcmask 97344   ;;  %vm25_vm3 = vcmask 64544   ;;  %s55_s0 = inlined_call_operand.vmem [shape: f32[4,4], index: 0, kind: input, shape index: {}]   ;;  %s56_s1 = inlined_call_operand.vmem [shape: f32[1,16], index: 1, kind: output, shape index: {}]  }
   0x1   :  { %v4_v0 = vld [vmem:[%s55_s0] sm:$0xf]  ;;  %s36_s0 = smov 12  }
   0x2   :  { %5 = vst [vmem:[#allocation1] sm:$0xf] %v4_v0 }
   0x9   :  { %v10_v1 = vld [vmem:[#allocation1 + $0x3] sm:$0x1]   ;;  %v22_v2 = vld [vmem:[#allocation1 + $0x1] sm:$0x1]   ;;  %v6_v3 = vld [vmem:[#allocation1] sm:$0x1]  }
   0xa   :  { %11 = vrot.lane.b32.xlu0 %v10_v1, %s36_s0  ;;  %23 = vrot.lane.b32.xlu1 %v22_v2, %s37_s8  ;;  %v16_v4 = vld [vmem:[#allocation1 + $0x2] sm:$0x1]   ;;  %8 = vst.msk [vmem:[#allocation0] sm:$0x1] %vm7_vm0, %v6_v3  }
   0xe   :  { %17 = vrot.lane.b32.xlu0 %v16_v4, %s38_s9 }
  0x7c   :  { %v12_v5 = vpop.permute.xlu0 %11   ;;  %v24_v6 = vpop.permute.xlu1 %23  }
  0x7d   :  { %14 = vst.msk [vmem:[#allocation0] sm:$0x1] %vm13_vm1, %v12_v5  }
  0x80   :  { %v18_v7 = vpop.permute.xlu0 %17  }
  0x81   :  { %20 = vst.msk [vmem:[#allocation0] sm:$0x1] %vm19_vm2, %v18_v7  }
  0x82   :  { %26 = vst.msk [vmem:[#allocation0] sm:$0x1] %vm25_vm3, %v24_v6  }
  0x89   :  { %v30_v8 = vld [vmem:[#allocation0] sm:$0x1] }
  0x8a   :  { %32 = vst [vmem:[%s56_s1] sm:$0x1] %v30_v8 }

// kernel: decoder_block_forward.4
= control target key start
LH: loop header
LB: loop body
LE: loop exit
PB: predicated region body
PF: predicated region fallthrough
CT: control target
= control target key end

     0   :  { %s600_s12 = smov 0   ;;  %s602_s13 = smov 0   ;;  %s673_s0 = inlined_call_operand.vmem [shape: f32[2,8,8,8], index: 0, kind: input, shape index: {}]   ;;  %s674_s1 = inlined_call_operand.vmem [shape: bf16[8,16], index: 1, kind: input, shape index: {}]   ;;  %s675_s2 = inlined_call_operand.vmem [shape: f32[1,16], index: 2, kind: input, shape index: {}]   ;;  %s676_s3 = inlined_call_operand.vmem [shape: bf16[2,8,2,8,8], index: 3, kind: output, shape index: {}]  }
   0x1   :  { %s604_s14 = smov 0  }
   0x2 LB: > { %s25_s15 = sadd.s32 1, %s573_s13  ;;  %p477_p0 = scmp.ge.s32.totalorder %s577_s14, 1  ;;  %s577_s14 = sphi %s604_s14, %s13_s14   ;;  %s573_s13 = sphi %s602_s13, %s678_s13   ;;  %s569_s12 = sphi %s600_s12, %s677_s12  }
   0x3   : > { %p27_p1 = scmp.ge.s32.totalorder %s25_s15, 2  ;;  %p158_p2 = scmp.lt.s32.totalorder %s577_s14, 3 }
   0x5   : > { %s680_s15 = smov (%p27_p1, %s25_s15), 0  ;;  %p159_p3 = pnand %p477_p0, %p158_p2 }
   0x6   : > { %v225_v0 = vld [vmem:[%s674_s1] sm:$0xf] (!%p159_p3)  ;;  %vm246_vm0 = vcmask (!%p159_p3), 1043456   ;;  %p192_p4 = scmp.lt.s32.totalorder (!%p159_p3), %s569_s12, 1  ;;  %vm233_vm1 = vcmask (!%p159_p3), 64512   ;;  %vm363_vm2 = vcmask (!%p159_p3), 60416  }
   0x7   : > { %162 = sbr.rel (%p159_p3) target bundleno = 366 (0x16e), region = 32  ;;  %508 = vmatprep.subr.msk.bf16.mxu0 (!%p159_p3), %vm246_vm0, %v225_v0  ;;  %509 = vmatprep.subr.msk.bf16.mxu1 (!%p159_p3), %vm246_vm0, %v225_v0  ;;  %v248_v1 = vsel (!%p159_p3), %vm246_vm0, %v225_v0, 0  ;;  %v482_v14 = vld [vmem:[%s675_s2] ss:$0 sm:$0xff] (!%p159_p3)  ;;  %s579_s27 = smov (!%p159_p3), 120  }
   0x8   : > { %497 = vmatpush3.bf16.msra.mxu0 (!%p159_p3), %v248_v1  ;;  %507 = vmatpush3.bf16.msra.mxu1 (!%p159_p3), %v248_v1 }
   0xe   : > { %s682_s12 = smov (!%p192_p4, %s569_s12), 1 }
   0xf   : > { %s489_s18 = sshll.u32 %s682_s12, 6 }
  0x10   : > { %s199_s21 = scalar_lea.vmem %s673_s0, %s489_s18  ;;  %s630_s26 = scalar_lea.vmem %s676_s3, %s489_s18 }
  0x11   : > { %v213_v2 = vld [vmem:[%s199_s21] sm:$0xff]  ;;  %v214_v3 = vld [vmem:[%s199_s21 + $0x8] sm:$0xff]  ;;  %v215_v7 = vld [vmem:[%s199_s21 + $0x10] sm:$0xff] }
  0x12   : > { %v217_v4 = vld [vmem:[%s199_s21 + $0x20] sm:$0xff]  ;;  %v221_v5 = vpack.c.bf16 %v214_v3, %v213_v2  ;;  %v218_v6 = vld [vmem:[%s199_s21 + $0x28] sm:$0xff]  ;;  %v216_v8 = vld [vmem:[%s199_s21 + $0x18] sm:$0xff] }
  0x13   : > { %v223_v9 = vpack.c.bf16 %v218_v6, %v217_v4  ;;  %v222_v10 = vpack.c.bf16 %v216_v8, %v215_v7  ;;  %v219_v11 = vld [vmem:[%s199_s21 + $0x30] sm:$0xff]  ;;  %v220_v12 = vld [vmem:[%s199_s21 + $0x38] sm:$0xff] }
  0x14   : > { %498 = vmatprep.mubr.msk.bf16.mxu0 %vm233_vm1, %v221_v5  ;;  %v224_v13 = vpack.c.bf16 %v220_v12, %v219_v11 }
  0x15   : > { %502 = vmatprep.mubr.msk.bf16.mxu1 %vm233_vm1, %v223_v9  ;;  %499 = vmatmul.mubr.msk.bf16.vlgmr.msra.gmra.mrb[0].mxu0 %vm233_vm1, %v222_v10 }
  0x16   : > { %503 = vmatmul.mubr.msk.bf16.vlgmr.msra.gmra.mrb[0].mxu1 %vm233_vm1, %v224_v13 }
  0xe8   : > { %v500_v15 = vpop.f32.mrb[0].mxu0 }
  0xe9   : > { %v293_v16 = vadd.f32 %v500_v15, %v482_v14  ;;  %v504_v17 = vpop.f32.mrb[0].mxu1  ;;  %v284_v18 = vpop.f32.mrb[1].mxu0 }
  0xea   : > { %v309_v19 = vadd.f32 %v504_v17, %v482_v14  ;;  %v285_v20 = vadd.f32 %v482_v14, %v284_v18  ;;  %v300_v21 = vpop.f32.mrb[1].mxu1  ;;  %v501_v22 = vpop.f32.mrb[2].mxu0 }
  0xeb   : > { %v351_v23 = vpack.c.bf16 %v293_v16, %v293_v16  ;;  %v301_v24 = vadd.f32 %v482_v14, %v300_v21  ;;  %v296_v25 = vadd.f32 %v501_v22, %v482_v14  ;;  %v505_v26 = vpop.f32.mrb[2].mxu1  ;;  %v287_v27 = vpop.f32.mrb[3].mxu0 }
  0xec   : > { %v359_v28 = vpack.c.bf16 %v309_v19, %v309_v19  ;;  %v347_v29 = vpack.c.bf16 %v285_v20, %v285_v20  ;;  %v312_v30 = vadd.f32 %v505_v26, %v482_v14  ;;  %v288_v31 = vadd.f32 %v482_v14, %v287_v27  ;;  %v303_v32 = vpop.f32.mrb[3].mxu1 }
  0xed   : > { %368 = vst.msk [vmem:[%s630_s26 + $0x10] sm:$0xf] %vm363_vm2, %v351_v23  ;;  %v355_v33 = vpack.c.bf16 %v301_v24, %v301_v24  ;;  %v540_v34 = vpack.i.bf16 %v296_v25, %v293_v16  ;;  %v353_v35 = vpack.c.bf16 %v296_v25, %v296_v25  ;;  %v304_v36 = vadd.f32 %v482_v14, %v303_v32 }
  0xee   : > { %376 = vst.msk [vmem:[%s630_s26 + $0x30] sm:$0xf] %vm363_vm2, %v359_v28  ;;  %364 = vst.msk [vmem:[%s630_s26] sm:$0xf] %vm363_vm2, %v347_v29  ;;  %v550_v37 = vpack.i.bf16 %v312_v30, %v309_v19  ;;  %v361_v38 = vpack.c.bf16 %v312_v30, %v312_v30  ;;  %v349_v39 = vpack.c.bf16 %v288_v31, %v288_v31 }
  0xef   : > { %v535_v40 = vpack.i.bf16 %v288_v31, %v285_v20  ;;  %372 = vst.msk [vmem:[%s630_s26 + $0x20] sm:$0xf] %vm363_vm2, %v355_v33  ;;  %370 = vst.msk [vmem:[%s630_s26 + $0x18] sm:$0xf] %vm363_vm2, %v353_v35  ;;  %v357_v41 = vpack.c.bf16 %v304_v36, %v304_v36  ;;  %v545_v42 = vpack.i.bf16 %v304_v36, %v301_v24 }
  0xf0   : > { %378 = vst.msk [vmem:[%s630_s26 + $0x38] sm:$0xf] %vm363_vm2, %v361_v38  ;;  %366 = vst.msk [vmem:[%s630_s26 + $0x8] sm:$0xf] %vm363_vm2, %v349_v39 }
  0xf1   : > { %536 = vrot.lane.b32.xlu0 %v535_v40, %s579_s27  ;;  %374 = vst.msk [vmem:[%s630_s26 + $0x28] sm:$0xf] %vm363_vm2, %v357_v41  ;;  %546 = vrot.lane.b32.xlu1 %v545_v42, %s579_s27 }
  0xf5   : > { %541 = vrot.lane.b32.xlu0 %v540_v34, %s579_s27  ;;  %551 = vrot.lane.b32.xlu1 %v550_v37, %s579_s27 }
 0x163   : > { %v537_v43 = vpop.permute.xlu0 %536  ;;  %v547_v44 = vpop.permute.xlu1 %546 }
 0x164   : > { %v539_v45 = vunpack.i.h.bf16 %v537_v43  ;;  %v538_v46 = vunpack.i.l.bf16 %v537_v43  ;;  %v549_v47 = vunpack.i.h.bf16 %v547_v44  ;;  %v548_v48 = vunpack.i.l.bf16 %v547_v44 }
 0x166   : > { %v350_v49 = vpack.c.bf16 %v539_v45, %v539_v45  ;;  %v348_v50 = vpack.c.bf16 %v538_v46, %v538_v46  ;;  %v358_v51 = vpack.c.bf16 %v549_v47, %v549_v47  ;;  %v356_v52 = vpack.c.bf16 %v548_v48, %v548_v48 }
 0x167   : > { %v542_v53 = vpop.permute.xlu0 %541  ;;  %v552_v54 = vpop.permute.xlu1 %551 }
 0x168   : > { %367 = vst.msk [vmem:[%s630_s26 + $0xc] sm:$0xf] %vm363_vm2, %v350_v49  ;;  %365 = vst.msk [vmem:[%s630_s26 + $0x4] sm:$0xf] %vm363_vm2, %v348_v50  ;;  %v544_v55 = vunpack.i.h.bf16 %v542_v53  ;;  %v543_v56 = vunpack.i.l.bf16 %v542_v53  ;;  %v554_v57 = vunpack.i.h.bf16 %v552_v54  ;;  %v553_v58 = vunpack.i.l.bf16 %v552_v54 }
 0x169   : > { %375 = vst.msk [vmem:[%s630_s26 + $0x2c] sm:$0xf] %vm363_vm2, %v358_v51  ;;  %373 = vst.msk [vmem:[%s630_s26 + $0x24] sm:$0xf] %vm363_vm2, %v356_v52 }
 0x16a   : > { %v354_v59 = vpack.c.bf16 %v544_v55, %v544_v55  ;;  %v352_v60 = vpack.c.bf16 %v543_v56, %v543_v56  ;;  %v362_v61 = vpack.c.bf16 %v554_v57, %v554_v57  ;;  %v360_v62 = vpack.c.bf16 %v553_v58, %v553_v58 }
 0x16c   : > { %371 = vst.msk [vmem:[%s630_s26 + $0x1c] sm:$0xf] %vm363_vm2, %v354_v59  ;;  %369 = vst.msk [vmem:[%s630_s26 + $0x14] sm:$0xf] %vm363_vm2, %v352_v60 }
 0x16d   : > { %379 = vst.msk [vmem:[%s630_s26 + $0x3c] sm:$0xf] %vm363_vm2, %v362_v61  ;;  %377 = vst.msk [vmem:[%s630_s26 + $0x34] sm:$0xf] %vm363_vm2, %v360_v62 }
 0x16e PF: > { %s13_s14 = sadd.s32 1, %s577_s14   ;;  %s677_s12 = smov %s573_s13 }
 0x16f   : > { %p10_p5 = scmp.ge.s32.totalorder %s13_s14, 4   ;;  %s678_s13 = smov %s680_s15 }
 0x171   :  { %12 = sbr.rel (!%p10_p5) target bundleno = 2 (0x2), region = 62 }

// kernel: decoder_block_forward.7
= control target key start
LH: loop header
LB: loop body
LE: loop exit
PB: predicated region body
PF: predicated region fallthrough
CT: control target
= control target key end

     0   :  { %vm62_vm0 = vcmask 523264   ;;  %s135_s0 = inlined_call_operand.vmem [shape: bf16[32,64], index: 0, kind: input, shape index: {}]   ;;  %s136_s1 = inlined_call_operand.vmem [shape: f32[1,64], index: 1, kind: input, shape index: {}]   ;;  %s137_s2 = inlined_call_operand.vmem [shape: f32[1,64], index: 2, kind: input, shape index: {}]   ;;  %s138_s3 = inlined_call_operand.vmem [shape: f32[1,64], index: 3, kind: input, shape index: {}]   ;;  %s139_s4 = inlined_call_operand.vmem [shape: f32[32,64], index: 4, kind: output, shape index: {}]  }
   0x1   :  { %v75_v0 = vld [vmem:[%s135_s0] sm:$0xff]   ;;  %v82_v4 = vld [vmem:[%s135_s0 + $0x8] sm:$0xff]  }
   0x2   :  { %v71_v1 = vld [vmem:[%s136_s1] ss:$0 sm:$0xff]  ;;  %v76_v2 = vunpack.c.l.bf16 %v75_v0  ;;  %v77_v3 = vunpack.c.h.bf16 %v75_v0  ;;  %v80_v6 = vunpack.c.l.bf16 %v82_v4  ;;  %v81_v7 = vunpack.c.h.bf16 %v82_v4 }
   0x3   :  { %v72_v5 = vld [vmem:[%s137_s2] ss:$0 sm:$0xff] }
   0x4   :  { %v32_v8 = vsub.f32 %v76_v2, %v71_v1  ;;  %v33_v9 = vsub.f32 %v77_v3, %v71_v1  ;;  %v73_v10 = vld [vmem:[%s138_s3] ss:$0 sm:$0xff]  ;;  %v34_v11 = vsub.f32 %v80_v6, %v71_v1  ;;  %v35_v12 = vsub.f32 %v81_v7, %v71_v1 }
   0x6   :  { %v43_v13 = vmul.f32 %v72_v5, %v32_v8  ;;  %v44_v14 = vmul.f32 %v72_v5, %v33_v9  ;;  %v45_v15 = vmul.f32 %v72_v5, %v34_v11  ;;  %v46_v16 = vmul.f32 %v72_v5, %v35_v12 }
   0x8   :  { %v54_v17 = vadd.f32 %v73_v10, %v43_v13  ;;  %v55_v18 = vadd.f32 %v73_v10, %v44_v14  ;;  %v56_v19 = vadd.f32 %v73_v10, %v45_v15  ;;  %v57_v20 = vadd.f32 %v73_v10, %v46_v16 }
   0xa   :  { %v58_v21 = vmax.f32 %v54_v17, 0.0  ;;  %v59_v22 = vmax.f32 %v55_v18, 0.0  ;;  %v60_v23 = vmax.f32 %v56_v19, 0.0  ;;  %v61_v24 = vmax.f32 %v57_v20, 0.0 }
   0xc   :  { %63 = vst.msk [vmem:[%s139_s4] sm:$0xff] %vm62_vm0, %v58_v21  ;;  %64 = vst.msk [vmem:[%s139_s4 + $0x8] sm:$0xff] %vm62_vm0, %v59_v22 }
   0xd   :  { %65 = vst.msk [vmem:[%s139_s4 + $0x10] sm:$0xff] %vm62_vm0, %v60_v23  ;;  %66 = vst.msk [vmem:[%s139_s4 + $0x18] sm:$0xff] %vm62_vm0, %v61_v24 }

// kernel: decoder_block_forward.5
= control target key start
LH: loop header
LB: loop body
LE: loop exit
PB: predicated region body
PF: predicated region fallthrough
CT: control target
= control target key end

     0   :  { %s3656_s17 = smov 0   ;;  %s3658_s18 = smov 0   ;;  %s4777_s0 = inlined_call_operand.vmem [shape: bf16[2,16,16,4], index: 0, kind: input, shape index: {}, may-alias: {0,1,2}]   ;;  %s4778_s1 = inlined_call_operand.vmem [shape: bf16[2,16,16,4], index: 1, kind: input, shape index: {}, may-alias: {0,1,2}]   ;;  %s4779_s2 = inlined_call_operand.vmem [shape: bf16[2,16,16,4], index: 2, kind: input, shape index: {}, may-alias: {0,1,2}]   ;;  %s4780_s3 = inlined_call_operand.vmem [shape: f32[2,16,16,4], index: 3, kind: input, shape index: {}, may-alias: {3,4,5}]   ;;  %s4781_s4 = inlined_call_operand.vmem [shape: f32[2,16,16,4], index: 4, kind: input, shape index: {}, may-alias: {3,4,5}]   ;;  %s4782_s5 = inlined_call_operand.vmem [shape: f32[2,16,16,4], index: 5, kind: input, shape index: {}, may-alias: {3,4,5}]   ;;  %s4783_s6 = inlined_call_operand.vmem [shape: bf16[3,24,4], index: 6, kind: input, shape index: {}]   ;;  %s4784_s7 = inlined_call_operand.vmem [shape: f32[1,8], index: 7, kind: input, shape index: {}, may-alias: {7,9}]   ;;  %s4785_s8 = inlined_call_operand.vmem [shape: f32[1,8], index: 8, kind: input, shape index: {}]   ;;  %s4786_s9 = inlined_call_operand.vmem [shape: f32[1,8], index: 9, kind: input, shape index: {}, may-alias: {7,9}]   ;;  %s4787_s10 = inlined_call_operand.vmem [shape: bf16[2,16,16,4], index: 10, kind: output, shape index: {0}]   ;;  %s4788_s11 = inlined_call_operand.vmem [shape: f32[2,1,2,4], index: 11, kind: output, shape index: {1}]  }
   0x1   :  { %s3660_s19 = smov 0  }
   0x2 LB: > { %s34_s7 = sadd.s32 1, %s3587_s18  ;;  %p3111_p0 = scmp.ge.s32.totalorder %s3591_s19, 1  ;;  %s3591_s19 = sphi %s3660_s19, %s22_s19   ;;  %s3587_s18 = sphi %s3658_s18, %s4813_s18   ;;  %s3583_s17 = sphi %s3656_s17, %s4812_s17  }
   0x3   : > { %p36_p1 = scmp.ge.s32.totalorder %s34_s7, 2  ;;  %p518_p2 = scmp.lt.s32.totalorder %s3591_s19, 3 }
   0x5   : > { %s4815_s7 = smov (%p36_p1, %s34_s7), 0  ;;  %p519_p3 = pnand %p3111_p0, %p518_p2 }
   0x7   : > { %522 = sbr.rel (%p519_p3) target bundleno = 664 (0x298), region = 60 }
   0xe   : > { %p642_p4 = scmp.lt.s32.totalorder %s3583_s17, 1  ;;  %s3593_s22 = smov 4   ;;  %vm1034_vm0 = vcmask 31744   ;;  %vm1233_vm1 = vcmask 1040384   ;;  %vm1234_vm2 = vsmask.f32 256 }
   0xf   : > { %vm3763_vm3 = vmand %vm1233_vm1, %vm1234_vm2  ;;  %s3594_s15 = smov 8   ;;  %s3595_s16 = smov 16   ;;  %vm1822_vm4 = vcmask 1043456   ;;  %vm1353_vm5 = vcmask 64512   ;;  %vm1402_vm6 = vcmask 130048   ;;  %vm1773_vm7 = vcmask 195584  }
  0x10   : > { %s4817_s17 = smov (!%p642_p4, %s3583_s17), 1  ;;  %vm1599_vm8 = vsmask.f32 7424  ;;  %vm2224_vm9 = vcmask 1046528   ;;  %vm2658_vm10 = vcmask 27648   ;;  %vm2863_vm11 = vcmask 25600  }
  0x11   : > { %s3677_s8 = sshll.u32 %s4817_s17, 8  ;;  %s3700_s23 = sshll.u32 %s4817_s17, 7 }
  0x12   : > { %s3683_s21 = scalar_lea.vmem %s4780_s3, %s3677_s8  ;;  %s3712_s26 = scalar_lea.vmem %s4777_s0, %s3700_s23 }
  0x13   : > { %v838_v0 = vld [vmem:[%s3683_s21] sm:$0xff]  ;;  %v839_v1 = vld [vmem:[%s3683_s21 + $0x8] sm:$0xff]  ;;  %v840_v2 = vld [vmem:[%s3683_s21 + $0x10] sm:$0xff]  ;;  %s3250_s27 = sadd.s32 128, %s3677_s8  ;;  %s714_s30 = scalar_lea.vmem %s4781_s4, %s3677_s8 }
  0x14   : > { %v870_v3 = vpack.c.bf16 %v839_v1, %v838_v0  ;;  %v841_v4 = vld [vmem:[%s3683_s21 + $0x18] sm:$0xff]  ;;  %v842_v5 = vld [vmem:[%s3683_s21 + $0x20] sm:$0xff]  ;;  %v843_v6 = vld [vmem:[%s3683_s21 + $0x28] sm:$0xff]  ;;  %s733_s14 = scalar_lea.vmem %s4782_s5, %s3250_s27  ;;  %s665_s8 = scalar_lea.vmem %s4778_s1, %s3700_s23 }
  0x15   : > { %v872_v7 = vpack.c.bf16 %v843_v6, %v842_v5  ;;  %v844_v8 = vld [vmem:[%s3683_s21 + $0x30] sm:$0xff]  ;;  %v845_v9 = vld [vmem:[%s3683_s21 + $0x38] sm:$0xff]  ;;  %v871_v10 = vpack.c.bf16 %v841_v4, %v840_v2  ;;  %v846_v12 = vld [vmem:[%s3683_s21 + $0x40] sm:$0xff] }
  0x16   : > { %1000 = vrot.lane.b32.xlu0 %v870_v3, %s3593_s22  ;;  %v873_v11 = vpack.c.bf16 %v845_v9, %v844_v8  ;;  %v847_v13 = vld [vmem:[%s3683_s21 + $0x48] sm:$0xff]  ;;  %v848_v14 = vld [vmem:[%s3683_s21 + $0x50] sm:$0xff]  ;;  %v849_v15 = vld [vmem:[%s3683_s21 + $0x58] sm:$0xff] }
  0x17   : > { %1004 = vrot.lane.b32.xlu1 %v872_v7, %s3593_s22  ;;  %v874_v16 = vpack.c.bf16 %v847_v13, %v846_v12  ;;  %v875_v17 = vpack.c.bf16 %v849_v15, %v848_v14  ;;  %v850_v18 = vld [vmem:[%s3683_s21 + $0x60] sm:$0xff]  ;;  %v851_v19 = vld [vmem:[%s3683_s21 + $0x68] sm:$0xff]  ;;  %v852_v20 = vld [vmem:[%s3683_s21 + $0x70] sm:$0xff] }
  0x18   : > { %v853_v21 = vld [vmem:[%s3683_s21 + $0x78] sm:$0xff]  ;;  %v876_v22 = vpack.c.bf16 %v851_v19, %v850_v18  ;;  %v854_v24 = vld [vmem:[%s3683_s21 + $0x80] sm:$0xff]  ;;  %v855_v25 = vld [vmem:[%s3683_s21 + $0x88] sm:$0xff] }
  0x19   : > { %v877_v23 = vpack.c.bf16 %v853_v21, %v852_v20  ;;  %v856_v26 = vld [vmem:[%s3683_s21 + $0x90] sm:$0xff]  ;;  %v857_v27 = vld [vmem:[%s3683_s21 + $0x98] sm:$0xff]  ;;  %v858_v28 = vld [vmem:[%s3683_s21 + $0xa0] sm:$0xff]  ;;  %v878_v29 = vpack.c.bf16 %v855_v25, %v854_v24 }
  0x1a   : > { %1002 = vrot.lane.b32.xlu0 %v871_v10, %s3593_s22  ;;  %v859_v30 = vld [vmem:[%s3683_s21 + $0xa8] sm:$0xff]  ;;  %v879_v31 = vpack.c.bf16 %v857_v27, %v856_v26  ;;  %v860_v32 = vld [vmem:[%s3683_s21 + $0xb0] sm:$0xff]  ;;  %v861_v33 = vld [vmem:[%s3683_s21 + $0xb8] sm:$0xff] }
  0x1b   : > { %1006 = vrot.lane.b32.xlu1 %v873_v11, %s3593_s22  ;;  %v862_v34 = vld [vmem:[%s3683_s21 + $0xc0] sm:$0xff]  ;;  %v880_v35 = vpack.c.bf16 %v859_v30, %v858_v28  ;;  %v863_v36 = vld [vmem:[%s3683_s21 + $0xc8] sm:$0xff]  ;;  %v881_v37 = vpack.c.bf16 %v861_v33, %v860_v32  ;;  %v864_v38 = vld [vmem:[%s3683_s21 + $0xd0] sm:$0xff] }
  0x1c   : > { %v865_v39 = vld [vmem:[%s3683_s21 + $0xd8] sm:$0xff]  ;;  %v866_v40 = vld [vmem:[%s3683_s21 + $0xe0] sm:$0xff]  ;;  %v867_v41 = vld [vmem:[%s3683_s21 + $0xe8] sm:$0xff]  ;;  %v882_v44 = vpack.c.bf16 %v863_v36, %v862_v34 }
  0x1d   : > { %v3129_v42 = vld [vmem:[%s714_s30 + $0x70] sm:$0xff]  ;;  %v3130_v43 = vld [vmem:[%s714_s30 + $0x78] sm:$0xff]  ;;  %v886_v47 = vld [vmem:[%s733_s14] sm:$0xff]  ;;  %v883_v48 = vpack.c.bf16 %v865_v39, %v864_v38  ;;  %v884_v50 = vpack.c.bf16 %v867_v41, %v866_v40  ;;  %s3246_s30 = sadd.s32 64, %s3700_s23 }
  0x1e   : > { %1008 = vrot.lane.b32.xlu0 %v874_v16, %s3593_s22  ;;  %v868_v45 = vld [vmem:[%s3683_s21 + $0xf0] sm:$0xff]  ;;  %v869_v46 = vld [vmem:[%s3683_s21 + $0xf8] sm:$0xff]  ;;  %v887_v49 = vld [vmem:[%s733_s14 + $0x8] sm:$0xff]  ;;  %v836_v51 = vpack.c.bf16 %v3130_v43, %v3129_v42  ;;  %s684_s14 = scalar_lea.vmem %s4779_s2, %s3246_s30 }
  0x1f   : > { %1010 = vrot.lane.b32.xlu1 %v875_v17, %s3593_s22  ;;  %v885_v52 = vpack.c.bf16 %v869_v46, %v868_v45  ;;  %v888_v53 = vpack.c.bf16 %v887_v49, %v886_v47  ;;  %v3547_v56 = vld [vmem:[%s3712_s26] sm:$0xff]   ;;  %v3549_v57 = vld [vmem:[%s3712_s26 + $0x10] sm:$0xff]   ;;  %v3548_v60 = vld [vmem:[%s3712_s26 + $0x8] sm:$0xff]  }
  0x20   : > { %v837_v54 = vmul.bf16 0.0, %v836_v51  ;;  %v3550_v1 = vld [vmem:[%s3712_s26 + $0x18] sm:$0xff]   ;;  %v3551_v10 = vld [vmem:[%s3712_s26 + $0x20] sm:$0xff]   ;;  %v3552_v17 = vld [vmem:[%s3712_s26 + $0x28] sm:$0xff]  }
  0x21   : > { %v889_v55 = vmul.bf16 0.0, %v888_v53  ;;  %v3556_v41 = vld [vmem:[%s3712_s26 + $0x48] sm:$0xff]   ;;  %v3557_v47 = vld [vmem:[%s3712_s26 + $0x50] sm:$0xff]   ;;  %v3558_v53 = vld [vmem:[%s3712_s26 + $0x58] sm:$0xff]  }
  0x22   : > { %1012 = vrot.lane.b32.xlu0 %v876_v22, %s3593_s22  ;;  %v3568_v0 = vld [vmem:[%s4783_s6 + $0x20] ss:$0 sps:$4 sm:$0xff]  }
  0x23   : > { %1014 = vrot.lane.b32.xlu1 %v877_v23, %s3593_s22  ;;  %v3553_v23 = vld [vmem:[%s3712_s26 + $0x30] sm:$0xff]  }
  0x26   : > { %1016 = vrot.lane.b32.xlu0 %v878_v29, %s3593_s22  ;;  %v3554_v29 = vld [vmem:[%s3712_s26 + $0x38] sm:$0xff]  }
  0x27   : > { %1018 = vrot.lane.b32.xlu1 %v879_v31, %s3593_s22 }
  0x2a   : > { %1020 = vrot.lane.b32.xlu0 %v880_v35, %s3593_s22  ;;  %v3555_v35 = vld [vmem:[%s3712_s26 + $0x40] sm:$0xff]  }
  0x2b   : > { %1022 = vrot.lane.b32.xlu1 %v881_v37, %s3593_s22 }
  0x2e   : > { %1024 = vrot.lane.b32.xlu0 %v882_v44, %s3593_s22 }
  0x2f   : > { %1026 = vrot.lane.b32.xlu1 %v883_v48, %s3593_s22 }
  0x32   : > { %1028 = vrot.lane.b32.xlu0 %v884_v50, %s3593_s22 }
  0x33   : > { %1030 = vrot.lane.b32.xlu1 %v885_v52, %s3593_s22 }
  0x36   : > { %998 = vrot.lane.b32.xlu0 %v837_v54, %s3593_s22 }
  0x37   : > { %1032 = vrot.lane.b32.xlu1 %v889_v55, %s3593_s22  ;;  %s4599_s22 = scalar_lea.vmem %s4787_s10, %s3700_s23  ;;  %s3126_s23 = sshll.u32 %s4817_s17, 1 }
  0x38   : > { %s756_s27 = scalar_lea.vmem %s4788_s11, %s3126_s23 }
  0x88   : > { %v1001_v58 = vpop.permute.xlu0 %1000 }
  0x89   : > { %v3755_v59 = vsel %vm1034_vm0, %v3547_v56, %v1001_v58  ;;  %v1005_v61 = vpop.permute.xlu1 %1004 }
  0x8a   : > { %v1095_v62 = vshrl.u32 %v3755_v59, 16  ;;  %v3760_v63 = vsel %vm1034_vm0, %v3549_v57, %v1005_v61 }
  0x8b   : > { %v1107_v7 = vshrl.u32 %v3760_v63, 16 }
  0x8c   : > { %v3768_v2 = vrot.slane %v1095_v62, 7  ;;  %v1003_v3 = vpop.permute.xlu0 %1002 }
  0x8d   : > { %v3771_v4 = vsel %vm1034_vm0, %v3548_v60, %v1003_v3  ;;  %v1007_v5 = vpop.permute.xlu1 %1006  ;;  %v3788_v13 = vrot.slane %v1107_v7, 7  ;;  %v3559_v60 = vld [vmem:[%s3712_s26 + $0x60] sm:$0xff]  }
  0x8e   : > { %v1101_v6 = vshrl.u32 %v3771_v4, 16  ;;  %v3778_v8 = vsel %vm3763_vm3, %v3768_v2, 0  ;;  %v3783_v9 = vsel %vm1034_vm0, %v3550_v1, %v1007_v5  ;;  %v3927_v5 = vld [vmem:[%s4783_s6] sm:$0xff]  }
  0x8f   : > { %1454 = vrot.lane.b32.xlu0 %v3778_v8, %s3594_s15  ;;  %v1113_v14 = vshrl.u32 %v3783_v9, 16  ;;  %v3807_v18 = vsel %vm3763_vm3, %v3788_v13, 0  ;;  %3376 = vmatprep.subr.bf16.mxu0 %v3927_v5 }
  0x90   : > { %v3786_v11 = vrot.slane %v1101_v6, 7  ;;  %v1009_v12 = vpop.permute.xlu0 %1008  ;;  %3377 = vmatpush3.bf16.msra.mxu0 %v3927_v5 }
  0x91   : > { %v3801_v16 = vsel %vm1034_vm0, %v3551_v10, %v1009_v12  ;;  %v1011_v19 = vpop.permute.xlu1 %1010  ;;  %v3809_v20 = vrot.slane %v1113_v14, 7  ;;  %v3949_v14 = vld [vmem:[%s4783_s6 + $0x8] ss:$0 sps:$4 sm:$0xff]  }
  0x92   : > { %v3794_v15 = vsel %vm3763_vm3, %v3786_v11, 0  ;;  %v1119_v21 = vshrl.u32 %v3801_v16, 16  ;;  %v3817_v22 = vsel %vm1034_vm0, %v3552_v17, %v1011_v19  ;;  %v1098_v17 = vshll.u32 %v3755_v59, 16  ;;  %3517 = vmatprep.subr.msk.bf16.mxu0 %vm1822_vm4, %v3949_v14 }
  0x93   : > { %1456 = vrot.lane.b32.xlu1 %v3794_v15, %s3594_s15  ;;  %1487 = vrot.lane.b32.xlu0 %v3794_v15, %s3595_s16  ;;  %v3823_v24 = vsel %vm3763_vm3, %v3809_v20, 0  ;;  %v1125_v27 = vshrl.u32 %v3817_v22, 16 }
  0x94   : > { %v1013_v25 = vpop.permute.xlu0 %1012  ;;  %v3825_v26 = vrot.slane %v1119_v21, 7  ;;  %v3965_v21 = vsel %vm1822_vm4, %v3949_v14, 0  ;;  %v1100_v59 = vor.u32 %v1098_v17, %v3768_v2  ;;  %v1110_v2 = vshll.u32 %v3760_v63, 16 }
  0x95   : > { %v3833_v28 = vsel %vm1034_vm0, %v3553_v23, %v1013_v25  ;;  %v1015_v31 = vpop.permute.xlu1 %1014  ;;  %v3841_v32 = vrot.slane %v1125_v27, 7  ;;  %3379 = vmatpush3.bf16.msra.mxu0 %v3965_v21  ;;  %v3565_v23 = vld [vmem:[%s4783_s6 + $0xc] sm:$0xff]   ;;  %v1104_v27 = vshll.u32 %v3771_v4, 16 }
  0x96   : > { %v3839_v30 = vsel %vm3763_vm3, %v3825_v26, 0  ;;  %v1131_v33 = vshrl.u32 %v3833_v28, 16  ;;  %v3849_v34 = vsel %vm1034_vm0, %v3554_v29, %v1015_v31  ;;  %3340 = vmatprep.subr.bf16.mxu1 %v3565_v23  ;;  %v3566_v31 = vld [vmem:[%s4783_s6 + $0x14] ss:$0 sps:$4 sm:$0xff]  }
  0x97   : > { %1489 = vrot.lane.b32.xlu1 %v3807_v18, %s3595_s16  ;;  %1458 = vrot.lane.b32.xlu0 %v3807_v18, %s3594_s15  ;;  %v3855_v36 = vsel %vm3763_vm3, %v3841_v32, 0  ;;  %v1137_v39 = vshrl.u32 %v3849_v34, 16  ;;  %v1824_v4 = vsel %vm1822_vm4, %v3566_v31, 0 }
  0x98   : > { %v1017_v37 = vpop.permute.xlu0 %1016  ;;  %v3857_v38 = vrot.slane %v1131_v33, 7  ;;  %3341 = vmatpush3.bf16.msra.mxu1 %v3565_v23  ;;  %v3990_v33 = vsel %vm3763_vm3, 0, %v1100_v59 }
  0x99   : > { %v3865_v40 = vsel %vm1034_vm0, %v3555_v35, %v1017_v37  ;;  %v1019_v43 = vpop.permute.xlu1 %1018  ;;  %v3873_v44 = vrot.slane %v1137_v39, 7  ;;  %v1106_v35 = vor.u32 %v1104_v27, %v3786_v11  ;;  %3516 = vmatprep.subr.msk.bf16.mxu1 %vm1822_vm4, %v3566_v31  ;;  %v1116_v37 = vshll.u32 %v3783_v9, 16 }
  0x9a   : > { %v3871_v42 = vsel %vm3763_vm3, %v3857_v38, 0  ;;  %v1143_v45 = vshrl.u32 %v3865_v40, 16  ;;  %v3881_v46 = vsel %vm1034_vm0, %v3556_v41, %v1019_v43  ;;  %v1112_v39 = vor.u32 %v1110_v2, %v3788_v13 }
  0x9b   : > { %1460 = vrot.lane.b32.xlu1 %v3823_v24, %s3594_s15  ;;  %1491 = vrot.lane.b32.xlu0 %v3823_v24, %s3595_s16  ;;  %v3887_v48 = vsel %vm3763_vm3, %v3873_v44, 0  ;;  %v1149_v51 = vshrl.u32 %v3881_v46, 16  ;;  %v4002_v63 = vsel %vm3763_vm3, 0, %v1106_v35  ;;  %v1122_v11 = vshll.u32 %v3801_v16, 16  ;;  %v825_v35 = vld [vmem:[%s684_s14] sm:$0xf] }
  0x9c   : > { %v1021_v49 = vpop.permute.xlu0 %1020  ;;  %v3889_v50 = vrot.slane %v1143_v45, 7  ;;  %3343 = vmatpush3.bf16.msra.mxu1 %v1824_v4  ;;  %v4013_v41 = vsel %vm3763_vm3, 0, %v1112_v39  ;;  %v1118_v9 = vor.u32 %v1116_v37, %v3809_v20  ;;  %v1128_v13 = vshll.u32 %v3817_v22, 16  ;;  %v826_v4 = vld [vmem:[%s684_s14 + $0x4] sm:$0xf] }
  0x9d   : > { %v3897_v52 = vsel %vm1034_vm0, %v3557_v47, %v1021_v49  ;;  %v1023_v55 = vpop.permute.xlu1 %1022  ;;  %v3905_v56 = vrot.slane %v1149_v51, 7  ;;  %3448 = vmatprep.subr.bf16.mxu1 %v3927_v5  ;;  %v1124_v16 = vor.u32 %v1122_v11, %v3825_v26  ;;  %v1134_v20 = vshll.u32 %v3833_v28, 16  ;;  %v4049_v49 = vld [vmem:[%s4783_s6 + $0x18] sm:$0xff]  }
  0x9e   : > { %v3903_v54 = vsel %vm3763_vm3, %v3889_v50, 0  ;;  %v1155_v57 = vshrl.u32 %v3897_v52, 16  ;;  %v3913_v58 = vsel %vm1034_vm0, %v3558_v53, %v1023_v55  ;;  %v4023_v43 = vsel %vm3763_vm3, 0, %v1118_v9  ;;  %3412 = vmatprep.subr.bf16.mxu0 %v4049_v49 }
  0x9f   : > { %1493 = vrot.lane.b32.xlu1 %v3839_v30, %s3595_s16  ;;  %1462 = vrot.lane.b32.xlu0 %v3839_v30, %s3594_s15  ;;  %v3919_v61 = vsel %vm3763_vm3, %v3905_v56, 0  ;;  %v1161_v3 = vshrl.u32 %v3913_v58, 16  ;;  %v4033_v45 = vsel %vm3763_vm3, 0, %v1124_v16  ;;  %v1130_v22 = vor.u32 %v1128_v13, %v3841_v32 }
  0xa0   : > { %v1025_v62 = vpop.permute.xlu0 %1024  ;;  %v3921_v1 = vrot.slane %v1155_v57, 7  ;;  %v1140_v26 = vshll.u32 %v3849_v34, 16  ;;  %v1136_v28 = vor.u32 %v1134_v20, %v3857_v38  ;;  %v1146_v32 = vshll.u32 %v3865_v40, 16 }
  0xa1   : > { %v3934_v6 = vsel %vm1034_vm0, %v3559_v60, %v1025_v62  ;;  %v3943_v10 = vrot.slane %v1161_v3, 7  ;;  %v4043_v47 = vsel %vm3763_vm3, 0, %v1130_v22  ;;  %v1152_v51 = vshll.u32 %v3881_v46, 16  ;;  %v1027_v57 = vpop.permute.xlu1 %1026  ;;  %v3561_v3 = vld [vmem:[%s3712_s26 + $0x70] sm:$0xff]  }
  0xa2   : > { %v3939_v7 = vsel %vm3763_vm3, %v3921_v1, 0  ;;  %v1167_v12 = vshrl.u32 %v3934_v6, 16  ;;  %v4059_v34 = vsel %vm3763_vm3, 0, %v1136_v28  ;;  %v1142_v38 = vor.u32 %v1140_v26, %v3873_v44 }
  0xa3   : > { %1464 = vrot.lane.b32.xlu1 %v3855_v36, %s3594_s15  ;;  %1495 = vrot.lane.b32.xlu0 %v3855_v36, %s3595_s16  ;;  %v3959_v19 = vsel %vm3763_vm3, %v3943_v10, 0  ;;  %v1148_v40 = vor.u32 %v1146_v32, %v3889_v50  ;;  %v1158_v44 = vshll.u32 %v3897_v52, 16  ;;  %v1154_v46 = vor.u32 %v1152_v51, %v3905_v56  ;;  %v3560_v50 = vld [vmem:[%s3712_s26 + $0x68] sm:$0xff]  }
  0xa4   : > { %4798 = vst [vmem:[#allocation2_spill] sm:$0xff] %v3959_v19  ;;  %v3971_v25 = vrot.slane %v1167_v12, 7  ;;  %v4069_v53 = vsel %vm3763_vm3, 0, %v1142_v38  ;;  %v1164_v60 = vshll.u32 %v3913_v58, 16  ;;  %v1079_v56 = vsel %vm1034_vm0, %v3560_v50, %v1027_v57  ;;  %v1029_v12 = vpop.permute.xlu0 %1028 }
  0xa5   : > { %v4079_v55 = vsel %vm3763_vm3, 0, %v1148_v40  ;;  %v4090_v52 = vsel %vm3763_vm3, 0, %v1154_v46  ;;  %v1160_v62 = vor.u32 %v1158_v44, %v3921_v1  ;;  %v1170_v17 = vshll.u32 %v3934_v6, 16  ;;  %v1031_v13 = vpop.permute.xlu1 %1030 }
  0xa6   : > { %v3982_v29 = vsel %vm3763_vm3, %v3971_v25, 0  ;;  %v1173_v23 = vshrl.u32 %v1079_v56, 16  ;;  %v1166_v59 = vor.u32 %v1164_v60, %v3943_v10  ;;  %v1082_v1 = vsel %vm1034_vm0, %v3561_v3, %v1029_v12 }
  0xa7   : > { %1497 = vrot.lane.b32.xlu1 %v3871_v42, %s3595_s16  ;;  %1466 = vrot.lane.b32.xlu0 %v3871_v42, %s3594_s15  ;;  %4799 = vst [vmem:[#allocation3_spill] sm:$0xff] %v3982_v29  ;;  %v4102_v58 = vsel %vm3763_vm3, 0, %v1160_v62  ;;  %v1176_v27 = vshll.u32 %v1079_v56, 16  ;;  %v1179_v10 = vshrl.u32 %v1082_v1, 16  ;;  %v1172_v2 = vor.u32 %v1170_v17, %v3971_v25  ;;  %v3562_v25 = vld [vmem:[%s3712_s26 + $0x78] sm:$0xff]  }
  0xa8   : > { %v1175_v6 = vrot.slane %v1173_v23, 7  ;;  %v4116_v31 = vsel %vm3763_vm3, 0, %v1166_v59  ;;  %v1182_v39 = vshll.u32 %v1082_v1, 16  ;;  %v831_v16 = vmul.bf16 0.0, %v825_v35  ;;  %v999_v62 = vpop.permute.xlu0 %998 }
  0xa9   : > { %v1181_v37 = vrot.slane %v1179_v10, 7  ;;  %v4125_v11 = vsel %vm3763_vm3, 0, %v1172_v2  ;;  %v832_v20 = vmul.bf16 0.0, %v826_v4  ;;  %v1085_v28 = vsel %vm1034_vm0, %v3562_v25, %v1031_v13  ;;  %v1033_v38 = vpop.permute.xlu1 %1032 }
  0xaa   : > { %4800 = vst [vmem:[#allocation4_spill] sm:$0xff] %v4125_v11  ;;  %v1178_v9 = vor.u32 %v1176_v27, %v1175_v6  ;;  %v1185_v40 = vshrl.u32 %v1085_v28, 16  ;;  %v1188_v50 = vshll.u32 %v1085_v28, 16  ;;  %v4152_v57 = vsel %vm3763_vm3, %v1175_v6, 0 }
  0xab   : > { %1468 = vrot.lane.b32.xlu1 %v3887_v48, %s3594_s15  ;;  %1499 = vrot.lane.b32.xlu0 %v3887_v48, %s3595_s16  ;;  %v1184_v26 = vor.u32 %v1182_v39, %v1181_v37  ;;  %v3148_v32 = vcombine.low %v831_v16, %v832_v20  ;;  %4803 = vst [vmem:[#allocation7_spill] sm:$0xff] %v4152_v57  ;;  %v4160_v12 = vsel %vm3763_vm3, %v1181_v37, 0 }
  0xac   : > { %v4134_v22 = vsel %vm3763_vm3, 0, %v1178_v9  ;;  %v1187_v46 = vrot.slane %v1185_v40, 7  ;;  %4804 = vst [vmem:[#allocation8_spill] sm:$0xff] %v4160_v12 }
  0xad   : > { %4801 = vst [vmem:[#allocation5_spill] sm:$0xff] %v4134_v22  ;;  %v4143_v51 = vsel %vm3763_vm3, 0, %v1184_v26  ;;  %v1088_v44 = vsel %vm1034_vm0, %v3148_v32, %v1033_v38  ;;  %v3127_v32 = vld [vmem:[%s665_s8 + $0x38] sm:$0xf]  ;;  %v3128_v38 = vld [vmem:[%s665_s8 + $0x3c] sm:$0xf] }
  0xae   : > { %4802 = vst [vmem:[#allocation6_spill] sm:$0xff] %v4143_v51  ;;  %v1191_v60 = vshrl.u32 %v1088_v44, 16  ;;  %v1194_v3 = vshll.u32 %v1088_v44, 16  ;;  %v1190_v17 = vor.u32 %v1188_v50, %v1187_v46  ;;  %v1270_v4 = vsel %vm3763_vm3, %v1187_v46, 0 }
  0xaf   : > { %1501 = vrot.lane.b32.xlu1 %v3903_v54, %s3595_s16  ;;  %1470 = vrot.lane.b32.xlu0 %v3903_v54, %s3594_s15  ;;  %v791_v40 = vmul.bf16 0.0, %v3127_v32  ;;  %v792_v44 = vmul.bf16 0.0, %v3128_v38 }
  0xb0   : > { %v1193_v56 = vrot.slane %v1191_v60, 7  ;;  %v1252_v59 = vsel %vm3763_vm3, 0, %v1190_v17 }
  0xb1   : > { %v3131_v60 = vcombine.low %v791_v40, %v792_v44 }
  0xb2   : > { %v1196_v1 = vor.u32 %v1194_v3, %v1193_v56  ;;  %v1271_v9 = vsel %vm3763_vm3, %v1193_v56, 0 }
  0xb3   : > { %1472 = vrot.lane.b32.xlu1 %v3919_v61, %s3594_s15  ;;  %1503 = vrot.lane.b32.xlu0 %v3919_v61, %s3595_s16  ;;  %v1037_v17 = vsel %vm1034_vm0, %v3131_v60, %v999_v62 }
  0xb4   : > { %v1253_v10 = vsel %vm3763_vm3, 0, %v1196_v1  ;;  %v1092_v38 = vshll.u32 %v1037_v17, 16 }
  0xb7   : > { %1505 = vrot.lane.b32.xlu1 %v3939_v7, %s3595_s16  ;;  %1474 = vrot.lane.b32.xlu0 %v3939_v7, %s3594_s15 }
  0xbb   : > { %1476 = vrot.lane.b32.xlu1 %v3959_v19, %s3594_s15  ;;  %1507 = vrot.lane.b32.xlu0 %v3959_v19, %s3595_s16 }
  0xbf   : > { %1509 = vrot.lane.b32.xlu1 %v3982_v29, %s3595_s16  ;;  %1288 = vrot.lane.b32.xlu0 %v3990_v33, %s3594_s15 }
  0xc3   : > { %1290 = vrot.lane.b32.xlu1 %v4002_v63, %s3594_s15  ;;  %1321 = vrot.lane.b32.xlu0 %v4002_v63, %s3595_s16 }
  0xc7   : > { %1323 = vrot.lane.b32.xlu1 %v4013_v41, %s3595_s16  ;;  %1292 = vrot.lane.b32.xlu0 %v4013_v41, %s3594_s15 }
  0xcb   : > { %1294 = vrot.lane.b32.xlu1 %v4023_v43, %s3594_s15  ;;  %1325 = vrot.lane.b32.xlu0 %v4023_v43, %s3595_s16 }
  0xcf   : > { %1327 = vrot.lane.b32.xlu1 %v4033_v45, %s3595_s16  ;;  %1296 = vrot.lane.b32.xlu0 %v4033_v45, %s3594_s15 }
  0xd3   : > { %1298 = vrot.lane.b32.xlu1 %v4043_v47, %s3594_s15  ;;  %1329 = vrot.lane.b32.xlu0 %v4043_v47, %s3595_s16 }
  0xd7   : > { %1331 = vrot.lane.b32.xlu1 %v4059_v34, %s3595_s16  ;;  %1300 = vrot.lane.b32.xlu0 %v4059_v34, %s3594_s15 }
  0xdb   : > { %1302 = vrot.lane.b32.xlu1 %v4069_v53, %s3594_s15  ;;  %1333 = vrot.lane.b32.xlu0 %v4069_v53, %s3595_s16 }
  0xdf   : > { %1335 = vrot.lane.b32.xlu1 %v4079_v55, %s3595_s16  ;;  %1304 = vrot.lane.b32.xlu0 %v4079_v55, %s3594_s15 }
  0xe3   : > { %1306 = vrot.lane.b32.xlu1 %v4090_v52, %s3594_s15  ;;  %1337 = vrot.lane.b32.xlu0 %v4090_v52, %s3595_s16 }
  0xe7   : > { %1339 = vrot.lane.b32.xlu1 %v4102_v58, %s3595_s16  ;;  %1308 = vrot.lane.b32.xlu0 %v4102_v58, %s3594_s15 }
  0xeb   : > { %1310 = vrot.lane.b32.xlu1 %v4116_v31, %s3594_s15  ;;  %1341 = vrot.lane.b32.xlu0 %v4116_v31, %s3595_s16 }
  0xef   : > { %1343 = vrot.lane.b32.xlu1 %v4125_v11, %s3595_s16  ;;  %1312 = vrot.lane.b32.xlu0 %v4125_v11, %s3594_s15 }
  0xf3   : > { %1314 = vrot.lane.b32.xlu1 %v4134_v22, %s3594_s15  ;;  %1345 = vrot.lane.b32.xlu0 %v4134_v22, %s3595_s16 }
  0xf7   : > { %1347 = vrot.lane.b32.xlu1 %v4143_v51, %s3595_s16  ;;  %1478 = vrot.lane.b32.xlu0 %v3982_v29, %s3594_s15 }
  0xfb   : > { %1480 = vrot.lane.b32.xlu1 %v4152_v57, %s3594_s15  ;;  %1511 = vrot.lane.b32.xlu0 %v4152_v57, %s3595_s16 }
  0xff   : > { %1513 = vrot.lane.b32.xlu1 %v4160_v12, %s3595_s16  ;;  %1316 = vrot.lane.b32.xlu0 %v4143_v51, %s3594_s15 }
 0x101   : > { %v1455_v23 = vpop.permute.xlu0 %1454 }
 0x103   : > { %1318 = vrot.lane.b32.xlu1 %v1252_v59, %s3594_s15  ;;  %1349 = vrot.lane.b32.xlu0 %v1252_v59, %s3595_s16 }
 0x105   : > { %v1457_v27 = vpop.permute.xlu1 %1456  ;;  %v1488_v6 = vpop.permute.xlu0 %1487 }
 0x107   : > { %1351 = vrot.lane.b32.xlu1 %v1253_v10, %s3595_s16  ;;  %1482 = vrot.lane.b32.xlu0 %v4160_v12, %s3594_s15  ;;  %v1089_v10 = vshrl.u32 %v1037_v17, 16 }
 0x109   : > { %v1490_v2 = vpop.permute.xlu1 %1489  ;;  %v4175_v35 = vpop.permute.xlu0 %1458  ;;  %v1091_v32 = vrot.slane %v1089_v10, 7 }
 0x10b   : > { %1484 = vrot.lane.b32.xlu1 %v1270_v4, %s3594_s15  ;;  %1515 = vrot.lane.b32.xlu0 %v1270_v4, %s3595_s16  ;;  %v1094_v44 = vor.u32 %v1092_v38, %v1091_v32  ;;  %v1254_v57 = vsel %vm3763_vm3, %v1091_v32, 0  ;;  %v1524_v32 = vsel %vm1353_vm5, %v3778_v8, %v1457_v27 }
 0x10c   : > { %v1521_v51 = vsel %vm1353_vm5, %v1254_v57, %v1455_v23  ;;  %v4243_v57 = vsel %vm1402_vm6, %v1524_v32, %v1490_v2  ;;  %v2335_v32 = vsel %vm1822_vm4, %v3568_v0, 0 }
 0x10d   : > { %v4181_v37 = vpop.permute.xlu1 %1460  ;;  %v4183_v39 = vpop.permute.xlu0 %1491  ;;  %v4231_v22 = vsel %vm1402_vm6, %v1521_v51, %v1488_v6  ;;  %v1236_v17 = vsel %vm3763_vm3, 0, %v1094_v44  ;;  %v1616_v2 = vshll.u32 %v4243_v57, 16 }
 0x10e   : > { %v1606_v11 = vshll.u32 %v4231_v22, 16 }
 0x10f   : > { %1517 = vrot.lane.b32.xlu1 %v1271_v9, %s3595_s16 }
 0x111   : > { %v4188_v13 = vpop.permute.xlu1 %1493  ;;  %v4190_v25 = vpop.permute.xlu0 %1462 }
 0x115   : > { %v4192_v16 = vpop.permute.xlu1 %1464  ;;  %v4194_v20 = vpop.permute.xlu0 %1495 }
 0x119   : > { %v4200_v26 = vpop.permute.xlu1 %1497  ;;  %v4202_v28 = vpop.permute.xlu0 %1466 }
 0x11d   : > { %v4204_v46 = vpop.permute.xlu1 %1468  ;;  %v4206_v50 = vpop.permute.xlu0 %1499 }
 0x121   : > { %v4208_v56 = vpop.permute.xlu1 %1501  ;;  %v4210_v3 = vpop.permute.xlu0 %1470 }
 0x125   : > { %v4213_v59 = vpop.permute.xlu1 %1472  ;;  %v4215_v1 = vpop.permute.xlu0 %1503 }
 0x129   : > { %v4217_v4 = vpop.permute.xlu1 %1505  ;;  %v4219_v9 = vpop.permute.xlu0 %1474 }
 0x12d   : > { %v4221_v12 = vpop.permute.xlu1 %1476  ;;  %v4223_v40 = vpop.permute.xlu0 %1507 }
 0x131   : > { %v4227_v62 = vpop.permute.xlu1 %1509  ;;  %v1289_v60 = vpop.permute.xlu0 %1288 }
 0x132   : > { %v1356_v10 = vsel %vm1353_vm5, %v1236_v17, %v1289_v60  ;;  %v1608_v60 = vrot.slane %v1606_v11, 1  ;;  %v1527_v17 = vsel %vm1353_vm5, %v3794_v15, %v4175_v35 }
 0x135   : > { %v1291_v38 = vpop.permute.xlu1 %1290  ;;  %v1322_v29 = vpop.permute.xlu0 %1321 }
 0x136   : > { %v4239_v19 = vsel %vm1402_vm6, %v1356_v10, %v1322_v29  ;;  %v1359_v8 = vsel %vm1353_vm5, %v3990_v33, %v1291_v38  ;;  %v4266_v38 = vsel %vm1402_vm6, %v1527_v17, %v4183_v39  ;;  %v1530_v39 = vsel %vm1353_vm5, %v3807_v18, %v4181_v37 }
 0x137   : > { %v1602_v51 = vshll.u32 %v4239_v19, 16  ;;  %3380 = vmatprep.mubr.msk.bf16.mxu0 %vm1773_vm7, %v4239_v19  ;;  %v1600_v29 = vshrl.u32 %v4239_v19, 16 }
 0x139   : > { %v1604_v23 = vrot.slane %v1602_v51, 1  ;;  %v1324_v27 = vpop.permute.xlu1 %1323  ;;  %v1293_v6 = vpop.permute.xlu0 %1292 }
 0x13a   : > { %v4256_v44 = vsel %vm1402_vm6, %v1359_v8, %v1324_v27  ;;  %v1362_v15 = vsel %vm1353_vm5, %v4002_v63, %v1293_v6  ;;  %v4285_v63 = vsel %vm1402_vm6, %v1530_v39, %v4188_v13 }
 0x13b   : > { %v1612_v10 = vshll.u32 %v4256_v44, 16  ;;  %3381 = vmatmul.mubr.msk.bf16.vlgmr.msra.gmra.mrb[0].mxu0 %vm1773_vm7, %v4256_v44  ;;  %v1605_v33 = vor.u32 %v1604_v23, %v1600_v29  ;;  %v1610_v11 = vshrl.u32 %v4256_v44, 16  ;;  %v1618_v29 = vrot.slane %v1616_v2, 1 }
 0x13c   : > { %3413 = vmatpush3.bf16.msra.mxu0 %v4049_v49  ;;  %v1626_v23 = vshll.u32 %v4266_v38, 16  ;;  %v1636_v13 = vshll.u32 %v4285_v63, 16 }
 0x13d   : > { %v1614_v51 = vrot.slane %v1612_v10, 1  ;;  %v1295_v35 = vpop.permute.xlu1 %1294  ;;  %v1326_v8 = vpop.permute.xlu0 %1325  ;;  %v1609_v27 = vsel %vm1599_vm8, %v1605_v33, %v1608_v60  ;;  %3519 = vmatprep.subr.msk.bf16.mxu0 %vm1822_vm4, %v3568_v0 }
 0x13e   : > { %v4279_v49 = vsel %vm1402_vm6, %v1362_v15, %v1326_v8  ;;  %3344 = vmatprep.mubr.msk.bf16.mxu1 %vm1773_vm7, %v1609_v27  ;;  %v1365_v18 = vsel %vm1353_vm5, %v4013_v41, %v1295_v35  ;;  %v1638_v39 = vrot.slane %v1636_v13, 1 }
 0x13f   : > { %v1615_v6 = vor.u32 %v1614_v51, %v1610_v11  ;;  %v1622_v60 = vshll.u32 %v4279_v49, 16  ;;  %3384 = vmatprep.mubr.msk.bf16.mxu0 %vm1773_vm7, %v4279_v49  ;;  %v1620_v37 = vshrl.u32 %v4279_v49, 16  ;;  %v1628_v11 = vrot.slane %v1626_v23, 1 }
 0x140   : > { %3415 = vmatpush3.bf16.msra.mxu0 %v2335_v32  ;;  %v1533_v32 = vsel %vm1353_vm5, %v3823_v24, %v4190_v25 }
 0x141   : > { %v1624_v0 = vrot.slane %v1622_v60, 1  ;;  %v1328_v2 = vpop.permute.xlu1 %1327  ;;  %v1297_v17 = vpop.permute.xlu0 %1296  ;;  %v1619_v10 = vsel %vm1599_vm8, %v1615_v6, %v1618_v29  ;;  %v4308_v15 = vsel %vm1402_vm6, %v1533_v32, %v4194_v20 }
 0x142   : > { %v4296_v33 = vsel %vm1402_vm6, %v1365_v18, %v1328_v2  ;;  %3345 = vmatmul.mubr.msk.bf16.vlgmr.msra.gmra.mrb[0].mxu1 %vm1773_vm7, %v1619_v10  ;;  %v1368_v24 = vsel %vm1353_vm5, %v4023_v43, %v1297_v17  ;;  %v1539_v2 = vsel %vm1353_vm5, %v3855_v36, %v4202_v28  ;;  %v1542_v36 = vsel %vm1353_vm5, %v3871_v42, %v4204_v46 }
 0x143   : > { %v1625_v41 = vor.u32 %v1624_v0, %v1620_v37  ;;  %v1632_v51 = vshll.u32 %v4296_v33, 16  ;;  %3385 = vmatmul.mubr.msk.bf16.gmra.mrb[4].mxu0 %vm1773_vm7, %v4296_v33  ;;  %3450 = vmatpush3.bf16.msra.mxu1 %v3927_v5  ;;  %v1630_v35 = vshrl.u32 %v4296_v33, 16  ;;  %v1536_v5 = vsel %vm1353_vm5, %v3839_v30, %v4192_v16 }
 0x144   : > { %3518 = vmatprep.subr.msk.bf16.mxu1 %vm1822_vm4, %v3949_v14  ;;  %v1646_v14 = vshll.u32 %v4308_v15, 16  ;;  %v4326_v23 = vsel %vm1402_vm6, %v1536_v5, %v4200_v26  ;;  %v1545_v42 = vsel %vm1353_vm5, %v3887_v48, %v4210_v3 }
 0x145   : > { %v1634_v8 = vrot.slane %v1632_v51, 1  ;;  %v1299_v25 = vpop.permute.xlu1 %1298  ;;  %v1330_v27 = vpop.permute.xlu0 %1329  ;;  %v1629_v29 = vsel %vm1599_vm8, %v1625_v41, %v1628_v11  ;;  %v1656_v26 = vshll.u32 %v4326_v23, 16 }
 0x146   : > { %v4320_v20 = vsel %vm1402_vm6, %v1368_v24, %v1330_v27  ;;  %3348 = vmatprep.mubr.msk.bf16.mxu1 %vm1773_vm7, %v1629_v29  ;;  %v1371_v30 = vsel %vm1353_vm5, %v4033_v45, %v1299_v25  ;;  %v4346_v45 = vsel %vm1402_vm6, %v1539_v2, %v4206_v50  ;;  %v4361_v24 = vsel %vm1402_vm6, %v1542_v36, %v4208_v56 }
 0x147   : > { %v1635_v43 = vor.u32 %v1634_v8, %v1630_v35  ;;  %v1642_v6 = vshll.u32 %v4320_v20, 16  ;;  %3388 = vmatprep.mubr.msk.bf16.mxu0 %vm1773_vm7, %v4320_v20  ;;  %3451 = vmatpush3.bf16.msra.mxu1 %v3965_v21  ;;  %v1640_v16 = vshrl.u32 %v4320_v20, 16  ;;  %v1648_v21 = vrot.slane %v1646_v14, 1 }
 0x148   : > { %v1658_v35 = vrot.slane %v1656_v26, 1  ;;  %v1666_v8 = vshll.u32 %v4346_v45, 16  ;;  %v2226_v56 = vrot.slane %v4231_v22, 1  ;;  %v4377_v29 = vsel %vm1402_vm6, %v1545_v42, %v4215_v1 }
 0x149   : > { %v1644_v60 = vrot.slane %v1642_v6, 1  ;;  %v1332_v18 = vpop.permute.xlu1 %1331  ;;  %v1301_v37 = vpop.permute.xlu0 %1300  ;;  %v1639_v0 = vsel %vm1599_vm8, %v1635_v43, %v1638_v39  ;;  %v1676_v43 = vshll.u32 %v4361_v24, 16  ;;  %v1551_v42 = vsel %vm1353_vm5, %v3919_v61, %v4219_v9 }
 0x14a   : > { %v4341_v17 = vsel %vm1402_vm6, %v1371_v30, %v1332_v18  ;;  %3349 = vmatmul.mubr.msk.bf16.gmra.mrb[4].mxu1 %vm1773_vm7, %v1639_v0  ;;  %v1374_v32 = vsel %vm1353_vm5, %v4043_v47, %v1301_v37  ;;  %v2225_v47 = vrot.slane %v4239_v19, 1  ;;  %v1668_v22 = vrot.slane %v1666_v8, 1 }
 0x14b   : > { %v1645_v10 = vor.u32 %v1644_v60, %v1640_v16  ;;  %v1652_v13 = vshll.u32 %v4341_v17, 16  ;;  %3389 = vmatmul.mubr.msk.bf16.gmra.mrb[8].mxu0 %vm1773_vm7, %v4341_v17  ;;  %v1650_v28 = vshrl.u32 %v4341_v17, 16  ;;  %v1686_v16 = vshll.u32 %v4377_v29, 16 }
 0x14d   : > { %v1654_v11 = vrot.slane %v1652_v13, 1  ;;  %v1303_v41 = vpop.permute.xlu1 %1302  ;;  %v1334_v51 = vpop.permute.xlu0 %1333  ;;  %v1649_v50 = vsel %vm1599_vm8, %v1645_v10, %v1648_v21  ;;  %v1678_v21 = vrot.slane %v1676_v43, 1  ;;  %v1548_v10 = vsel %vm1353_vm5, %v3903_v54, %v4213_v59 }
 0x14e   : > { %v4364_v25 = vsel %vm1402_vm6, %v1374_v32, %v1334_v51  ;;  %3352 = vmatprep.mubr.msk.bf16.mxu1 %vm1773_vm7, %v1649_v50  ;;  %v1377_v39 = vsel %vm1353_vm5, %v4059_v34, %v1303_v41  ;;  %v2227_v34 = vsel %vm2224_vm9, %v2225_v47, %v2226_v56  ;;  %v2228_v13 = vrot.slane %v4256_v44, 1 }
 0x14f   : > { %v1655_v46 = vor.u32 %v1654_v11, %v1650_v28  ;;  %v1662_v27 = vshll.u32 %v4364_v25, 16  ;;  %3392 = vmatprep.mubr.msk.bf16.mxu0 %vm1773_vm7, %v4364_v25  ;;  %v1660_v48 = vshrl.u32 %v4364_v25, 16  ;;  %v4408_v28 = vsel %vm1402_vm6, %v1548_v10, %v4217_v4 }
 0x150   : > { %v2229_v41 = vrot.slane %v4243_v57, 1  ;;  %v2232_v54 = vrot.slane %v4266_v38, 1  ;;  %v1688_v59 = vrot.slane %v1686_v16, 1  ;;  %v4429_v38 = vsel %vm1402_vm6, %v1551_v42, %v4223_v40 }
 0x151   : > { %v1664_v3 = vrot.slane %v1662_v27, 1  ;;  %v1336_v19 = vpop.permute.xlu1 %1335  ;;  %v1305_v5 = vpop.permute.xlu0 %1304  ;;  %v1659_v14 = vsel %vm1599_vm8, %v1655_v46, %v1658_v35  ;;  %v1554_v43 = vsel %vm1353_vm5, %v3939_v7, %v4221_v12 }
 0x152   : > { %v4385_v6 = vsel %vm1402_vm6, %v1377_v39, %v1336_v19  ;;  %3353 = vmatmul.mubr.msk.bf16.gmra.mrb[8].mxu1 %vm1773_vm7, %v1659_v14  ;;  %v1380_v37 = vsel %vm1353_vm5, %v4069_v53, %v1305_v5  ;;  %v2231_v53 = vrot.slane %v4279_v49, 1  ;;  %v1696_v49 = vshll.u32 %v4408_v28, 16 }
 0x153   : > { %v1665_v1 = vor.u32 %v1664_v3, %v1660_v48  ;;  %v1672_v30 = vshll.u32 %v4385_v6, 16  ;;  %3393 = vmatmul.mubr.msk.bf16.gmra.mrb[12].mxu0 %vm1773_vm7, %v4385_v6  ;;  %v1670_v60 = vshrl.u32 %v4385_v6, 16  ;;  %v1706_v19 = vshll.u32 %v4429_v38, 16 }
 0x154   : > { %3416 = vmatprep.mubr.msk.bf16.mxu0 %vm1773_vm7, %v2227_v34  ;;  %v2233_v27 = vsel %vm2224_vm9, %v2231_v53, %v2232_v54  ;;  %v1698_v3 = vrot.slane %v1696_v49, 1  ;;  %v2234_v5 = vrot.slane %v4296_v33, 1  ;;  %v2238_v34 = vrot.slane %v4308_v15, 1 }
 0x155   : > { %v1674_v18 = vrot.slane %v1672_v30, 1  ;;  %v1307_v0 = vpop.permute.xlu1 %1306  ;;  %v1338_v26 = vpop.permute.xlu0 %1337  ;;  %v1669_v2 = vsel %vm1599_vm8, %v1665_v1, %v1668_v22  ;;  %v2235_v30 = vrot.slane %v4285_v63, 1  ;;  %v4454_v33 = vsel %vm1402_vm6, %v1554_v43, %v4227_v62 }
 0x156   : > { %v4403_v36 = vsel %vm1402_vm6, %v1380_v37, %v1338_v26  ;;  %3356 = vmatprep.mubr.msk.bf16.mxu1 %vm1773_vm7, %v1669_v2  ;;  %v1383_v44 = vsel %vm1353_vm5, %v4079_v55, %v1307_v0  ;;  %v2230_v55 = vsel %vm2224_vm9, %v2228_v13, %v2229_v41  ;;  %v1708_v37 = vrot.slane %v1706_v19, 1 }
 0x157   : > { %v1675_v11 = vor.u32 %v1674_v18, %v1670_v60  ;;  %v1682_v32 = vshll.u32 %v4403_v36, 16  ;;  %v1680_v51 = vshrl.u32 %v4403_v36, 16  ;;  %v2236_v63 = vsel %vm2224_vm9, %v2234_v5, %v2235_v30 }
 0x158   : > { %v1716_v62 = vshll.u32 %v4454_v33, 16  ;;  %v2250_v19 = vrot.slane %v4377_v29, 1 }
 0x159   : > { %v1684_v50 = vrot.slane %v1682_v32, 1  ;;  %v1340_v35 = vpop.permute.xlu1 %1339  ;;  %v1309_v8 = vpop.permute.xlu0 %1308  ;;  %v1679_v4 = vsel %vm1599_vm8, %v1675_v11, %v1678_v21  ;;  %v2240_v32 = vrot.slane %v4341_v17, 1 }
 0x15a   : > { %v4423_v57 = vsel %vm1402_vm6, %v1383_v44, %v1340_v35  ;;  %3357 = vmatmul.mubr.msk.bf16.gmra.mrb[12].mxu1 %vm1773_vm7, %v1679_v4  ;;  %v1386_v56 = vsel %vm1353_vm5, %v4090_v52, %v1309_v8  ;;  %v2237_v52 = vrot.slane %v4320_v20, 1  ;;  %v1718_v54 = vrot.slane %v1716_v62, 1 }
 0x15b   : > { %v1685_v47 = vor.u32 %v1684_v50, %v1680_v51  ;;  %v1692_v46 = vshll.u32 %v4423_v57, 16  ;;  %3417 = vmatmul.mubr.msk.bf16.vlgmr.msra.gmra.mrb[0].mxu0 %vm1773_vm7, %v2230_v55  ;;  %v1690_v61 = vshrl.u32 %v4423_v57, 16  ;;  %v2241_v51 = vrot.slane %v4326_v23, 1 }
 0x15c   : > { %3420 = vmatprep.mubr.msk.bf16.mxu0 %vm1773_vm7, %v2233_v27  ;;  %v2239_v26 = vsel %vm2224_vm9, %v2237_v52, %v2238_v34  ;;  %v2244_v50 = vrot.slane %v4346_v45, 1  ;;  %v4807_v52 = vld [vmem:[#allocation3_spill] sm:$0xff] }
 0x15d   : > { %v1694_v9 = vrot.slane %v1692_v46, 1  ;;  %v1311_v39 = vpop.permute.xlu1 %1310  ;;  %v1342_v48 = vpop.permute.xlu0 %1341  ;;  %v1689_v40 = vsel %vm1599_vm8, %v1685_v47, %v1688_v59  ;;  %v2243_v59 = vrot.slane %v4364_v25, 1  ;;  %v2242_v25 = vsel %vm2224_vm9, %v2240_v32, %v2241_v51  ;;  %v4806_v47 = vld [vmem:[#allocation2_spill] sm:$0xff] }
 0x15e   : > { %v4442_v14 = vsel %vm1402_vm6, %v1386_v56, %v1342_v48  ;;  %3360 = vmatprep.mubr.msk.bf16.mxu1 %vm1773_vm7, %v1689_v40  ;;  %v1389_v16 = vsel %vm1353_vm5, %v4102_v58, %v1311_v39  ;;  %v2249_v39 = vrot.slane %v4403_v36, 1 }
 0x15f   : > { %v1695_v22 = vor.u32 %v1694_v9, %v1690_v61  ;;  %v1702_v1 = vshll.u32 %v4442_v14, 16  ;;  %v1700_v60 = vshrl.u32 %v4442_v14, 16  ;;  %v2245_v23 = vsel %vm2224_vm9, %v2243_v59, %v2244_v50 }
 0x160   : > { %v2246_v9 = vrot.slane %v4385_v6, 1  ;;  %v2251_v29 = vsel %vm2224_vm9, %v2249_v39, %v2250_v19 }
 0x161   : > { %v1704_v18 = vrot.slane %v1702_v1, 1  ;;  %v1344_v7 = vpop.permute.xlu1 %1343  ;;  %v1313_v12 = vpop.permute.xlu0 %1312  ;;  %v1699_v20 = vsel %vm1599_vm8, %v1695_v22, %v1698_v3  ;;  %v2247_v3 = vrot.slane %v4361_v24, 1 }
 0x162   : > { %v4461_v0 = vsel %vm1402_vm6, %v1389_v16, %v1344_v7  ;;  %3361 = vmatmul.mubr.msk.bf16.gmra.mrb[16].mxu1 %vm1773_vm7, %v1699_v20  ;;  %v1392_v10 = vsel %vm1353_vm5, %v4116_v31, %v1313_v12  ;;  %v4805_v31 = vld [vmem:[#allocation4_spill] sm:$0xff]  ;;  %v4808_v20 = vld [vmem:[#allocation5_spill] sm:$0xff] }
 0x163   : > { %v1705_v15 = vor.u32 %v1704_v18, %v1700_v60  ;;  %v1712_v58 = vshll.u32 %v4461_v0, 16  ;;  %3421 = vmatmul.mubr.msk.bf16.gmra.mrb[4].mxu0 %vm1773_vm7, %v2236_v63  ;;  %v1710_v2 = vshrl.u32 %v4461_v0, 16  ;;  %v2248_v16 = vsel %vm2224_vm9, %v2246_v9, %v2247_v3 }
 0x164   : > { %3424 = vmatprep.mubr.msk.bf16.mxu0 %vm1773_vm7, %v2239_v26  ;;  %v2255_v26 = vrot.slane %v4442_v14, 1 }
 0x165   : > { %v1714_v21 = vrot.slane %v1712_v58, 1  ;;  %v1315_v13 = vpop.permute.xlu1 %1314  ;;  %v1346_v53 = vpop.permute.xlu0 %1345  ;;  %v1709_v11 = vsel %vm1599_vm8, %v1705_v15, %v1708_v37  ;;  %v2252_v15 = vrot.slane %v4423_v57, 1 }
 0x166   : > { %v4476_v41 = vsel %vm1402_vm6, %v1392_v10, %v1346_v53  ;;  %3364 = vmatprep.mubr.msk.bf16.mxu1 %vm1773_vm7, %v1709_v11  ;;  %v1395_v35 = vsel %vm1353_vm5, %v4805_v31, %v1315_v13  ;;  %v2256_v10 = vrot.slane %v4429_v38, 1  ;;  %v4809_v13 = vld [vmem:[#allocation6_spill] sm:$0xff]  ;;  %v4810_v38 = vld [vmem:[#allocation7_spill] sm:$0xff] }
 0x167   : > { %v1715_v44 = vor.u32 %v1714_v21, %v1710_v2  ;;  %v1722_v8 = vshll.u32 %v4476_v41, 16  ;;  %v1720_v48 = vshrl.u32 %v4476_v41, 16  ;;  %v2253_v21 = vrot.slane %v4408_v28, 1 }
 0x168   : > { %v2257_v51 = vsel %vm2224_vm9, %v2255_v26, %v2256_v10 }
 0x169   : > { %v1348_v4 = vpop.permute.xlu1 %1347  ;;  %v1479_v17 = vpop.permute.xlu0 %1478  ;;  %v1719_v49 = vsel %vm1599_vm8, %v1715_v44, %v1718_v54  ;;  %v1724_v45 = vrot.slane %v1722_v8, 1  ;;  %v2254_v44 = vsel %vm2224_vm9, %v2252_v15, %v2253_v21 }
 0x16a   : > { %v4487_v42 = vsel %vm1402_vm6, %v1395_v35, %v1348_v4  ;;  %3365 = vmatmul.mubr.msk.bf16.gmra.mrb[20].mxu1 %vm1773_vm7, %v1719_v49  ;;  %v1557_v46 = vsel %vm1353_vm5, %v4806_v47, %v1479_v17  ;;  %v2258_v4 = vrot.slane %v4461_v0, 1 }
 0x16b   : > { %3425 = vmatmul.mubr.msk.bf16.gmra.mrb[8].mxu0 %vm1773_vm7, %v2242_v25  ;;  %v1732_v55 = vshll.u32 %v4487_v42, 16  ;;  %v1725_v5 = vor.u32 %v1724_v45, %v1720_v48  ;;  %v1730_v60 = vshrl.u32 %v4487_v42, 16  ;;  %v2259_v45 = vrot.slane %v4454_v33, 1 }
 0x16c   : > { %3428 = vmatprep.mubr.msk.bf16.mxu0 %vm1773_vm7, %v2245_v23 }
 0x16d   : > { %v1481_v27 = vpop.permute.xlu1 %1480  ;;  %v1512_v61 = vpop.permute.xlu0 %1511  ;;  %v1734_v43 = vrot.slane %v1732_v55, 1  ;;  %v2261_v55 = vrot.slane %v4476_v41, 1 }
 0x16e   : > { %v4499_v56 = vsel %vm1402_vm6, %v1557_v46, %v1512_v61  ;;  %v1560_v22 = vsel %vm1353_vm5, %v4807_v52, %v1481_v27  ;;  %v4811_v27 = vld [vmem:[#allocation8_spill] sm:$0xff] }
 0x16f   : > { %v1726_v40 = vshll.u32 %v4499_v56, 16  ;;  %v1735_v7 = vor.u32 %v1734_v43, %v1730_v60  ;;  %v2262_v49 = vrot.slane %v4499_v56, 1 }
 0x171   : > { %v1728_v1 = vrot.slane %v1726_v40, 1  ;;  %v1514_v6 = vpop.permute.xlu1 %1513  ;;  %v1317_v30 = vpop.permute.xlu0 %1316  ;;  %v2260_v40 = vsel %vm2224_vm9, %v2258_v4, %v2259_v45  ;;  %v2263_v33 = vsel %vm2224_vm9, %v2261_v55, %v2262_v49 }
 0x172   : > { %v4509_v34 = vsel %vm1402_vm6, %v1560_v22, %v1514_v6  ;;  %v1398_v37 = vsel %vm1353_vm5, %v4808_v20, %v1317_v30  ;;  %v2264_v6 = vrot.slane %v4487_v42, 1 }
 0x173   : > { %v1736_v18 = vshll.u32 %v4509_v34, 16  ;;  %3429 = vmatmul.mubr.msk.bf16.gmra.mrb[12].mxu0 %vm1773_vm7, %v2248_v16  ;;  %v1729_v24 = vsel %vm1599_vm8, %v1725_v5, %v1728_v1  ;;  %v2265_v52 = vrot.slane %v4509_v34, 1 }
 0x174   : > { %3368 = vmatprep.mubr.msk.bf16.mxu1 %vm1773_vm7, %v1729_v24  ;;  %3432 = vmatprep.mubr.msk.bf16.mxu0 %vm1773_vm7, %v2251_v29 }
 0x175   : > { %v1738_v12 = vrot.slane %v1736_v18, 1  ;;  %v1319_v63 = vpop.permute.xlu1 %1318  ;;  %v1350_v62 = vpop.permute.xlu0 %1349  ;;  %v2266_v16 = vsel %vm2224_vm9, %v2264_v6, %v2265_v52 }
 0x176   : > { %v4523_v58 = vsel %vm1402_vm6, %v1398_v37, %v1350_v62  ;;  %v1401_v53 = vsel %vm1353_vm5, %v4809_v13, %v1319_v63 }
 0x177   : > { %v1739_v2 = vsel %vm1599_vm8, %v1735_v7, %v1738_v12  ;;  %v1742_v11 = vshll.u32 %v4523_v58, 16  ;;  %v1740_v25 = vshrl.u32 %v4523_v58, 16  ;;  %v2267_v30 = vrot.slane %v4523_v58, 1 }
 0x178   : > { %3369 = vmatmul.mubr.msk.bf16.gmra.mrb[24].mxu1 %vm1773_vm7, %v1739_v2 }
 0x179   : > { %v1352_v32 = vpop.permute.xlu1 %1351  ;;  %v1483_v54 = vpop.permute.xlu0 %1482  ;;  %v1744_v28 = vrot.slane %v1742_v11, 1 }
 0x17a   : > { %v1434_v59 = vsel %vm1402_vm6, %v1401_v53, %v1352_v32  ;;  %v1563_v31 = vsel %vm1353_vm5, %v4810_v38, %v1483_v54 }
 0x17b   : > { %3433 = vmatmul.mubr.msk.bf16.gmra.mrb[16].mxu0 %vm1773_vm7, %v2254_v44  ;;  %v1752_v50 = vshll.u32 %v1434_v59, 16  ;;  %v1745_v47 = vor.u32 %v1744_v28, %v1740_v25  ;;  %v1750_v3 = vshrl.u32 %v1434_v59, 16  ;;  %v2270_v18 = vrot.slane %v1434_v59, 1 }
 0x17c   : > { %3436 = vmatprep.mubr.msk.bf16.mxu0 %vm1773_vm7, %v2257_v51 }
 0x17d   : > { %v1485_v35 = vpop.permute.xlu1 %1484  ;;  %v1516_v8 = vpop.permute.xlu0 %1515  ;;  %v1754_v46 = vrot.slane %v1752_v50, 1 }
 0x17e   : > { %v1596_v17 = vsel %vm1402_vm6, %v1563_v31, %v1516_v8  ;;  %v1566_v61 = vsel %vm1353_vm5, %v4811_v27, %v1485_v35 }
 0x17f   : > { %v1746_v23 = vshll.u32 %v1596_v17, 16  ;;  %v1755_v5 = vor.u32 %v1754_v46, %v1750_v3  ;;  %v2268_v22 = vrot.slane %v1596_v17, 1 }
 0x181   : > { %v1748_v9 = vrot.slane %v1746_v23, 1  ;;  %v1518_v39 = vpop.permute.xlu1 %1517  ;;  %v2269_v60 = vsel %vm2224_vm9, %v2267_v30, %v2268_v22 }
 0x182   : > { %v1598_v48 = vsel %vm1402_vm6, %v1566_v61, %v1518_v39 }
 0x183   : > { %v1756_v56 = vshll.u32 %v1598_v48, 16  ;;  %3437 = vmatmul.mubr.msk.bf16.gmra.mrb[20].mxu0 %vm1773_vm7, %v2260_v40  ;;  %v1749_v19 = vsel %vm1599_vm8, %v1745_v47, %v1748_v9  ;;  %v2271_v34 = vrot.slane %v1598_v48, 1 }
 0x184   : > { %3372 = vmatprep.mubr.msk.bf16.mxu1 %vm1773_vm7, %v1749_v19  ;;  %3440 = vmatprep.mubr.msk.bf16.mxu0 %vm1773_vm7, %v2263_v33 }
 0x185   : > { %v1758_v43 = vrot.slane %v1756_v56, 1  ;;  %v2272_v24 = vsel %vm2224_vm9, %v2270_v18, %v2271_v34 }
 0x187   : > { %v1759_v1 = vsel %vm1599_vm8, %v1755_v5, %v1758_v43 }
 0x188   : > { %3373 = vmatmul.mubr.msk.bf16.gmra.mrb[28].mxu1 %vm1773_vm7, %v1759_v1 }
 0x189   : > { %3396 = vmatprep.mubr.msk.bf16.mxu1 %vm1773_vm7, %v4403_v36 }
 0x18b   : > { %3441 = vmatmul.mubr.msk.bf16.gmra.mrb[24].mxu0 %vm1773_vm7, %v2266_v16 }
 0x18c   : > { %3444 = vmatprep.mubr.msk.bf16.mxu0 %vm1773_vm7, %v2269_v60 }
 0x190   : > { %3397 = vmatmul.mubr.msk.bf16.vlgmr.msra.gmra.mrb[16].mxu1 %vm1773_vm7, %v4423_v57 }
 0x191   : > { %3400 = vmatprep.mubr.msk.bf16.mxu1 %vm1773_vm7, %v4442_v14 }
 0x193   : > { %3445 = vmatmul.mubr.msk.bf16.gmra.mrb[28].mxu0 %vm1773_vm7, %v2272_v24 }
 0x198   : > { %3401 = vmatmul.mubr.msk.bf16.gmra.mrb[20].mxu1 %vm1773_vm7, %v4461_v0 }
 0x199   : > { %3404 = vmatprep.mubr.msk.bf16.mxu1 %vm1773_vm7, %v4476_v41 }
 0x1a0   : > { %3405 = vmatmul.mubr.msk.bf16.gmra.mrb[24].mxu1 %vm1773_vm7, %v4487_v42 }
 0x1a1   : > { %3408 = vmatprep.mubr.msk.bf16.mxu1 %vm1773_vm7, %v4523_v58 }
 0x1a8   : > { %3409 = vmatmul.mubr.msk.bf16.gmra.mrb[28].mxu1 %vm1773_vm7, %v1434_v59 }
 0x215   : > { %v3346_v36 = vpop.f32.mrb[0].mxu1 }
 0x216   : > { %v1860_v57 = vpop.f32.mrb[1].mxu1 }
 0x217   : > { %v3347_v14 = vpop.f32.mrb[2].mxu1 }
 0x218   : > { %v1863_v29 = vpop.f32.mrb[3].mxu1 }
 0x21d   : > { %v3350_v7 = vpop.f32.mrb[4].mxu1 }
 0x21e   : > { %v1876_v12 = vpop.f32.mrb[5].mxu1 }
 0x21f   : > { %v3351_v20 = vpop.f32.mrb[6].mxu1 }
 0x220   : > { %v1879_v0 = vpop.f32.mrb[7].mxu1 }
 0x225   : > { %v4581_v37 = vpop.f32.mrb[8].mxu1 }
 0x226   : > { %v4583_v41 = vpop.f32.mrb[9].mxu1 }
 0x227   : > { %v4585_v63 = vpop.f32.mrb[10].mxu1 }
 0x228   : > { %v4587_v42 = vpop.f32.mrb[11].mxu1 }
 0x22d   : > { %v4589_v62 = vpop.f32.mrb[12].mxu1 }
 0x22e   : > { %v4591_v15 = vpop.f32.mrb[13].mxu1  ;;  %v3418_v58 = vpop.f32.mrb[0].mxu0 }
 0x22f   : > { %v3452_v26 = vadd.f32 %v3418_v58, %v3346_v36  ;;  %v4593_v2 = vpop.f32.mrb[14].mxu1  ;;  %v2371_v21 = vpop.f32.mrb[1].mxu0 }
 0x230   : > { %v3453_v10 = vadd.f32 %v2371_v21, %v1860_v57  ;;  %v4601_v13 = vpop.f32.mrb[15].mxu1  ;;  %v3419_v53 = vpop.f32.mrb[2].mxu0 }
 0x231   : > { %v3254_v11 = vpack.c.bf16 %v3452_v26, %v3452_v26  ;;  %v3454_v32 = vadd.f32 %v3419_v53, %v3347_v14  ;;  %v2374_v54 = vpop.f32.mrb[3].mxu0  ;;  %v2762_v28 = vmul.f32 %v3452_v26, %v3452_v26  ;;  %v2694_v49 = vsel %vm1034_vm0, %v3452_v26, 0.0 }
 0x232   : > { %v3252_v59 = vpack.c.bf16 %v3453_v10, %v3453_v10  ;;  %v2760_v44 = vmul.f32 %v3453_v10, %v3453_v10  ;;  %v3455_v51 = vadd.f32 %v2374_v54, %v1863_v29  ;;  %v2691_v38 = vsel %vm1034_vm0, %v3453_v10, 0.0 }
 0x233   : > { %2661 = vst.msk [vmem:[%s4599_s22 + $0x8] sm:$0xf] %vm2658_vm10, %v3254_v11  ;;  %v3255_v50 = vpack.c.bf16 %v3454_v32, %v3454_v32  ;;  %v2763_v4 = vmul.f32 %v3454_v32, %v3454_v32  ;;  %v2795_v61 = vsel %vm1034_vm0, %v2762_v28, 0.0  ;;  %v2696_v48 = vsel %vm1034_vm0, %v3454_v32, 0.0 }
 0x234   : > { %2659 = vst.msk [vmem:[%s4599_s22] sm:$0xf] %vm2658_vm10, %v3252_v59  ;;  %v3253_v31 = vpack.c.bf16 %v3455_v51, %v3455_v51  ;;  %v2692_v35 = vsel %vm1034_vm0, %v3455_v51, 0.0  ;;  %v2761_v8 = vmul.f32 %v3455_v51, %v3455_v51  ;;  %v2792_v25 = vsel %vm1034_vm0, %v2760_v44, 0.0 }
 0x235   : > { %2662 = vst.msk [vmem:[%s4599_s22 + $0xc] sm:$0xf] %vm2658_vm10, %v3255_v50  ;;  %v2693_v17 = vadd.f32 %v2692_v35, %v2691_v38  ;;  %v2797_v40 = vsel %vm1034_vm0, %v2763_v4, 0.0 }
 0x236   : > { %2660 = vst.msk [vmem:[%s4599_s22 + $0x4] sm:$0xf] %vm2658_vm10, %v3253_v31  ;;  %v2793_v23 = vsel %vm1034_vm0, %v2761_v8, 0.0  ;;  %v3422_v45 = vpop.f32.mrb[4].mxu0 }
 0x237   : > { %v2695_v55 = vadd.f32 %v2694_v49, %v2693_v17  ;;  %v2794_v47 = vadd.f32 %v2793_v23, %v2792_v25  ;;  %v3456_v46 = vadd.f32 %v3422_v45, %v3350_v7  ;;  %v2387_v27 = vpop.f32.mrb[5].mxu0 }
 0x238   : > { %v3457_v9 = vadd.f32 %v2387_v27, %v1876_v12  ;;  %v3423_v39 = vpop.f32.mrb[6].mxu0 }
 0x239   : > { %v2796_v3 = vadd.f32 %v2795_v61, %v2794_v47  ;;  %v3258_v56 = vpack.c.bf16 %v3456_v46, %v3456_v46  ;;  %v2390_v19 = vpop.f32.mrb[7].mxu0  ;;  %v2697_v5 = vadd.f32 %v2696_v48, %v2695_v55  ;;  %v3458_v1 = vadd.f32 %v3423_v39, %v3351_v20 }
 0x23a   : > { %v3256_v33 = vpack.c.bf16 %v3457_v9, %v3457_v9  ;;  %v2698_v43 = vsel %vm1034_vm0, %v3457_v9, 0.0  ;;  %v2764_v52 = vmul.f32 %v3457_v9, %v3457_v9  ;;  %v3459_v6 = vadd.f32 %v2390_v19, %v1879_v0 }
 0x23b   : > { %2665 = vst.msk [vmem:[%s4599_s22 + $0x18] sm:$0xf] %vm2658_vm10, %v3258_v56  ;;  %v2798_v22 = vadd.f32 %v2797_v40, %v2796_v3  ;;  %v2699_v30 = vadd.f32 %v2698_v43, %v2697_v5  ;;  %v2766_v60 = vmul.f32 %v3456_v46, %v3456_v46  ;;  %v3259_v18 = vpack.c.bf16 %v3458_v1, %v3458_v1 }
 0x23c   : > { %2663 = vst.msk [vmem:[%s4599_s22 + $0x10] sm:$0xf] %vm2658_vm10, %v3256_v33  ;;  %v2799_v16 = vsel %vm1034_vm0, %v2764_v52, 0.0  ;;  %v3257_v24 = vpack.c.bf16 %v3459_v6, %v3459_v6  ;;  %v2700_v36 = vsel %vm1034_vm0, %v3459_v6, 0.0  ;;  %v2765_v57 = vmul.f32 %v3459_v6, %v3459_v6 }
 0x23d   : > { %v2800_v34 = vadd.f32 %v2799_v16, %v2798_v22  ;;  %2666 = vst.msk [vmem:[%s4599_s22 + $0x1c] sm:$0xf] %vm2658_vm10, %v3259_v18  ;;  %v2701_v29 = vadd.f32 %v2700_v36, %v2699_v30  ;;  %v2702_v20 = vsel %vm1034_vm0, %v3456_v46, 0.0  ;;  %v2767_v0 = vmul.f32 %v3458_v1, %v3458_v1 }
 0x23e   : > { %v3426_v14 = vpop.f32.mrb[8].mxu0  ;;  %2664 = vst.msk [vmem:[%s4599_s22 + $0x14] sm:$0xf] %vm2658_vm10, %v3257_v24  ;;  %v2801_v58 = vsel %vm1034_vm0, %v2765_v57, 0.0  ;;  %v2803_v10 = vsel %vm1034_vm0, %v2766_v60, 0.0 }
 0x23f   : > { %v3460_v7 = vadd.f32 %v3426_v14, %v4581_v37  ;;  %v2403_v12 = vpop.f32.mrb[9].mxu0  ;;  %v2703_v53 = vadd.f32 %v2702_v20, %v2701_v29  ;;  %v2802_v11 = vadd.f32 %v2801_v58, %v2800_v34  ;;  %v2704_v37 = vsel %vm1034_vm0, %v3458_v1, 0.0 }
 0x240   : > { %v3461_v26 = vadd.f32 %v2403_v12, %v4583_v41  ;;  %v3427_v21 = vpop.f32.mrb[10].mxu0  ;;  %v2805_v31 = vsel %vm1034_vm0, %v2767_v0, 0.0 }
 0x241   : > { %v3262_v32 = vpack.c.bf16 %v3460_v7, %v3460_v7  ;;  %v2406_v54 = vpop.f32.mrb[11].mxu0  ;;  %v2804_v28 = vadd.f32 %v2803_v10, %v2802_v11  ;;  %v2705_v50 = vadd.f32 %v2704_v37, %v2703_v53  ;;  %v3462_v41 = vadd.f32 %v3427_v21, %v4585_v63 }
 0x242   : > { %v3260_v59 = vpack.c.bf16 %v3461_v26, %v3461_v26  ;;  %v2706_v44 = vsel %vm1034_vm0, %v3461_v26, 0.0  ;;  %v2768_v51 = vmul.f32 %v3461_v26, %v3461_v26  ;;  %v3463_v38 = vadd.f32 %v2406_v54, %v4587_v42 }
 0x243   : > { %2669 = vst.msk [vmem:[%s4599_s22 + $0x28] sm:$0xf] %vm2658_vm10, %v3262_v32  ;;  %v2770_v8 = vmul.f32 %v3460_v7, %v3460_v7  ;;  %v2707_v4 = vadd.f32 %v2706_v44, %v2705_v50  ;;  %v2806_v17 = vadd.f32 %v2805_v31, %v2804_v28  ;;  %v3263_v49 = vpack.c.bf16 %v3462_v41, %v3462_v41 }
 0x244   : > { %2667 = vst.msk [vmem:[%s4599_s22 + $0x20] sm:$0xf] %vm2658_vm10, %v3260_v59  ;;  %v2807_v35 = vsel %vm1034_vm0, %v2768_v51, 0.0  ;;  %v3261_v25 = vpack.c.bf16 %v3463_v38, %v3463_v38  ;;  %v2708_v23 = vsel %vm1034_vm0, %v3463_v38, 0.0  ;;  %v2769_v45 = vmul.f32 %v3463_v38, %v3463_v38 }
 0x245   : > { %v2808_v47 = vadd.f32 %v2807_v35, %v2806_v17  ;;  %2670 = vst.msk [vmem:[%s4599_s22 + $0x2c] sm:$0xf] %vm2658_vm10, %v3263_v49  ;;  %v2709_v63 = vadd.f32 %v2708_v23, %v2707_v4  ;;  %v2710_v27 = vsel %vm1034_vm0, %v3460_v7, 0.0  ;;  %v2771_v61 = vmul.f32 %v3462_v41, %v3462_v41 }
 0x246   : > { %v3430_v55 = vpop.f32.mrb[12].mxu0  ;;  %2668 = vst.msk [vmem:[%s4599_s22 + $0x24] sm:$0xf] %vm2658_vm10, %v3261_v25  ;;  %v2809_v9 = vsel %vm1034_vm0, %v2769_v45, 0.0  ;;  %v2811_v40 = vsel %vm1034_vm0, %v2770_v8, 0.0 }
 0x247   : > { %v3464_v42 = vadd.f32 %v3430_v55, %v4589_v62  ;;  %v2419_v46 = vpop.f32.mrb[13].mxu0  ;;  %v2711_v3 = vadd.f32 %v2710_v27, %v2709_v63  ;;  %v2810_v56 = vadd.f32 %v2809_v9, %v2808_v47  ;;  %v2712_v62 = vsel %vm1034_vm0, %v3462_v41, 0.0 }
 0x248   : > { %v3465_v39 = vadd.f32 %v2419_v46, %v4591_v15  ;;  %v3431_v48 = vpop.f32.mrb[14].mxu0  ;;  %v2813_v30 = vsel %vm1034_vm0, %v2771_v61, 0.0 }
 0x249   : > { %v3266_v19 = vpack.c.bf16 %v3464_v42, %v3464_v42  ;;  %v2422_v33 = vpop.f32.mrb[15].mxu0  ;;  %v2812_v22 = vadd.f32 %v2811_v40, %v2810_v56  ;;  %v2713_v1 = vadd.f32 %v2712_v62, %v2711_v3  ;;  %v3466_v15 = vadd.f32 %v3431_v48, %v4593_v2 }
 0x24a   : > { %v3264_v5 = vpack.c.bf16 %v3465_v39, %v3465_v39  ;;  %v2714_v43 = vsel %vm1034_vm0, %v3465_v39, 0.0  ;;  %v2772_v52 = vmul.f32 %v3465_v39, %v3465_v39  ;;  %v3467_v6 = vadd.f32 %v2422_v33, %v4601_v13 }
 0x24b   : > { %2673 = vst.msk [vmem:[%s4599_s22 + $0x38] sm:$0xf] %vm2658_vm10, %v3266_v19  ;;  %v2715_v60 = vadd.f32 %v2714_v43, %v2713_v1  ;;  %v2814_v34 = vadd.f32 %v2813_v30, %v2812_v22  ;;  %v3267_v18 = vpack.c.bf16 %v3466_v15, %v3466_v15  ;;  %v2774_v24 = vmul.f32 %v3464_v42, %v3464_v42 }
 0x24c   : > { %2671 = vst.msk [vmem:[%s4599_s22 + $0x30] sm:$0xf] %vm2658_vm10, %v3264_v5  ;;  %v2815_v16 = vsel %vm1034_vm0, %v2772_v52, 0.0  ;;  %v3265_v36 = vpack.c.bf16 %v3467_v6, %v3467_v6  ;;  %v2716_v57 = vsel %vm1034_vm0, %v3467_v6, 0.0  ;;  %v2773_v14 = vmul.f32 %v3467_v6, %v3467_v6 }
 0x24d   : > { %v2816_v7 = vadd.f32 %v2815_v16, %v2814_v34  ;;  %2674 = vst.msk [vmem:[%s4599_s22 + $0x3c] sm:$0xf] %vm2658_vm10, %v3267_v18  ;;  %v2717_v2 = vadd.f32 %v2716_v57, %v2715_v60  ;;  %v2718_v12 = vsel %vm1034_vm0, %v3464_v42, 0.0  ;;  %v2775_v20 = vmul.f32 %v3466_v15, %v3466_v15 }
 0x24e   : > { %v3434_v29 = vpop.f32.mrb[16].mxu0  ;;  %2672 = vst.msk [vmem:[%s4599_s22 + $0x34] sm:$0xf] %vm2658_vm10, %v3265_v36  ;;  %v2817_v0 = vsel %vm1034_vm0, %v2773_v14, 0.0  ;;  %v2819_v53 = vsel %vm1034_vm0, %v2774_v24, 0.0  ;;  %v2720_v11 = vsel %vm1034_vm0, %v3466_v15, 0.0 }
 0x24f   : > { %v2435_v13 = vpop.f32.mrb[17].mxu0  ;;  %v2719_v26 = vadd.f32 %v2718_v12, %v2717_v2  ;;  %v2818_v21 = vadd.f32 %v2817_v0, %v2816_v7  ;;  %v2821_v37 = vsel %vm1034_vm0, %v2775_v20, 0.0 }
 0x250   : > { %v3435_v58 = vpop.f32.mrb[18].mxu0 }
 0x251   : > { %v2438_v10 = vpop.f32.mrb[19].mxu0  ;;  %v2820_v32 = vadd.f32 %v2819_v53, %v2818_v21  ;;  %v2721_v54 = vadd.f32 %v2720_v11, %v2719_v26 }
 0x253   : > { %v2822_v59 = vadd.f32 %v2821_v37, %v2820_v32 }
 0x256   : > { %v3438_v44 = vpop.f32.mrb[20].mxu0 }
 0x257   : > { %v2451_v51 = vpop.f32.mrb[21].mxu0 }
 0x258   : > { %v3439_v28 = vpop.f32.mrb[22].mxu0 }
 0x259   : > { %v2454_v50 = vpop.f32.mrb[23].mxu0 }
 0x25e   : > { %v4675_v41 = vpop.f32.mrb[24].mxu0 }
 0x25f   : > { %v4677_v38 = vpop.f32.mrb[25].mxu0 }
 0x260   : > { %v4679_v31 = vpop.f32.mrb[26].mxu0 }
 0x261   : > { %v4681_v35 = vpop.f32.mrb[27].mxu0 }
 0x263   : > { %v3398_v8 = vpop.f32.mrb[16].mxu1 }
 0x264   : > { %v3468_v4 = vadd.f32 %v3434_v29, %v3398_v8  ;;  %v2129_v17 = vpop.f32.mrb[17].mxu1 }
 0x265   : > { %v3469_v49 = vadd.f32 %v2435_v13, %v2129_v17  ;;  %v3399_v25 = vpop.f32.mrb[18].mxu1 }
 0x266   : > { %v3270_v23 = vpack.c.bf16 %v3468_v4, %v3468_v4  ;;  %v3470_v45 = vadd.f32 %v3435_v58, %v3399_v25  ;;  %v2132_v55 = vpop.f32.mrb[19].mxu1  ;;  %v4683_v47 = vpop.f32.mrb[28].mxu0  ;;  %v2778_v33 = vmul.f32 %v3468_v4, %v3468_v4  ;;  %v2726_v52 = vsel %vm1034_vm0, %v3468_v4, 0.0 }
 0x267   : > { %v3268_v63 = vpack.c.bf16 %v3469_v49, %v3469_v49  ;;  %v2722_v42 = vsel %vm1034_vm0, %v3469_v49, 0.0  ;;  %v2776_v46 = vmul.f32 %v3469_v49, %v3469_v49  ;;  %v3471_v27 = vadd.f32 %v2438_v10, %v2132_v55  ;;  %v4686_v61 = vpop.f32.mrb[29].mxu0 }
 0x268   : > { %2677 = vst.msk [vmem:[%s4599_s22 + $0x48] sm:$0xf] %vm2658_vm10, %v3270_v23  ;;  %v2723_v9 = vadd.f32 %v2722_v42, %v2721_v54  ;;  %v3271_v39 = vpack.c.bf16 %v3470_v45, %v3470_v45  ;;  %v4690_v48 = vpop.f32.mrb[30].mxu0  ;;  %v2779_v1 = vmul.f32 %v3470_v45, %v3470_v45  ;;  %v2728_v60 = vsel %vm1034_vm0, %v3470_v45, 0.0 }
 0x269   : > { %2675 = vst.msk [vmem:[%s4599_s22 + $0x40] sm:$0xf] %vm2658_vm10, %v3268_v63  ;;  %v2823_v40 = vsel %vm1034_vm0, %v2776_v46, 0.0  ;;  %v3269_v3 = vpack.c.bf16 %v3471_v27, %v3471_v27  ;;  %v2724_v56 = vsel %vm1034_vm0, %v3471_v27, 0.0  ;;  %v4696_v19 = vpop.f32.mrb[31].mxu0  ;;  %v2777_v43 = vmul.f32 %v3471_v27, %v3471_v27 }
 0x26a   : > { %v2824_v62 = vadd.f32 %v2823_v40, %v2822_v59  ;;  %2678 = vst.msk [vmem:[%s4599_s22 + $0x4c] sm:$0xf] %vm2658_vm10, %v3271_v39  ;;  %v2725_v5 = vadd.f32 %v2724_v56, %v2723_v9  ;;  %v2827_v36 = vsel %vm1034_vm0, %v2778_v33, 0.0  ;;  %v2829_v20 = vsel %vm1034_vm0, %v2779_v1, 0.0 }
 0x26b   : > { %2676 = vst.msk [vmem:[%s4599_s22 + $0x44] sm:$0xf] %vm2658_vm10, %v3269_v3  ;;  %v3402_v22 = vpop.f32.mrb[20].mxu1  ;;  %v2825_v6 = vsel %vm1034_vm0, %v2777_v43, 0.0 }
 0x26c   : > { %v2727_v15 = vadd.f32 %v2726_v52, %v2725_v5  ;;  %v3472_v30 = vadd.f32 %v3438_v44, %v3402_v22  ;;  %v2145_v16 = vpop.f32.mrb[21].mxu1  ;;  %v2826_v34 = vadd.f32 %v2825_v6, %v2824_v62 }
 0x26d   : > { %v3473_v18 = vadd.f32 %v2451_v51, %v2145_v16  ;;  %v3403_v24 = vpop.f32.mrb[22].mxu1 }
 0x26e   : > { %v3274_v57 = vpack.c.bf16 %v3472_v30, %v3472_v30  ;;  %v2729_v14 = vadd.f32 %v2728_v60, %v2727_v15  ;;  %v2148_v29 = vpop.f32.mrb[23].mxu1  ;;  %v2828_v7 = vadd.f32 %v2827_v36, %v2826_v34  ;;  %v3474_v58 = vadd.f32 %v3439_v28, %v3403_v24 }
 0x26f   : > { %v3272_v2 = vpack.c.bf16 %v3473_v18, %v3473_v18  ;;  %v2730_v13 = vsel %vm1034_vm0, %v3473_v18, 0.0  ;;  %v2780_v12 = vmul.f32 %v3473_v18, %v3473_v18  ;;  %v3475_v26 = vadd.f32 %v2454_v50, %v2148_v29 }
 0x270   : > { %2681 = vst.msk [vmem:[%s4599_s22 + $0x58] sm:$0xf] %vm2658_vm10, %v3274_v57  ;;  %v2731_v0 = vadd.f32 %v2730_v13, %v2729_v14  ;;  %v2830_v21 = vadd.f32 %v2829_v20, %v2828_v7  ;;  %v2782_v53 = vmul.f32 %v3472_v30, %v3472_v30  ;;  %v3275_v11 = vpack.c.bf16 %v3474_v58, %v3474_v58 }
 0x271   : > { %2679 = vst.msk [vmem:[%s4599_s22 + $0x50] sm:$0xf] %vm2658_vm10, %v3272_v2  ;;  %v2831_v10 = vsel %vm1034_vm0, %v2780_v12, 0.0  ;;  %v3273_v32 = vpack.c.bf16 %v3475_v26, %v3475_v26  ;;  %v2732_v37 = vsel %vm1034_vm0, %v3475_v26, 0.0  ;;  %v2781_v59 = vmul.f32 %v3475_v26, %v3475_v26 }
 0x272   : > { %v2832_v54 = vadd.f32 %v2831_v10, %v2830_v21  ;;  %2682 = vst.msk [vmem:[%s4599_s22 + $0x5c] sm:$0xf] %vm2658_vm10, %v3275_v11  ;;  %v2733_v51 = vadd.f32 %v2732_v37, %v2731_v0  ;;  %v2734_v8 = vsel %vm1034_vm0, %v3472_v30, 0.0  ;;  %v2783_v4 = vmul.f32 %v3474_v58, %v3474_v58 }
 0x273   : > { %v3406_v44 = vpop.f32.mrb[24].mxu1  ;;  %2680 = vst.msk [vmem:[%s4599_s22 + $0x54] sm:$0xf] %vm2658_vm10, %v3273_v32  ;;  %v2833_v17 = vsel %vm1034_vm0, %v2781_v59, 0.0  ;;  %v2835_v23 = vsel %vm1034_vm0, %v2782_v53, 0.0  ;;  %v2736_v46 = vsel %vm1034_vm0, %v3474_v58, 0.0 }
 0x274   : > { %v3476_v28 = vadd.f32 %v4675_v41, %v3406_v44  ;;  %v2161_v50 = vpop.f32.mrb[25].mxu1  ;;  %v2735_v45 = vadd.f32 %v2734_v8, %v2733_v51  ;;  %v2834_v55 = vadd.f32 %v2833_v17, %v2832_v54  ;;  %v2837_v56 = vsel %vm1034_vm0, %v2783_v4, 0.0 }
 0x275   : > { %v3477_v49 = vadd.f32 %v4677_v38, %v2161_v50  ;;  %v3407_v25 = vpop.f32.mrb[26].mxu1 }
 0x276   : > { %v3278_v63 = vpack.c.bf16 %v3476_v28, %v3476_v28  ;;  %v2164_v42 = vpop.f32.mrb[27].mxu1  ;;  %v2836_v39 = vadd.f32 %v2835_v23, %v2834_v55  ;;  %v2737_v40 = vadd.f32 %v2736_v46, %v2735_v45  ;;  %v3478_v38 = vadd.f32 %v4679_v31, %v3407_v25 }
 0x277   : > { %v3276_v41 = vpack.c.bf16 %v3477_v49, %v3477_v49  ;;  %v2738_v27 = vsel %vm1034_vm0, %v3477_v49, 0.0  ;;  %v2784_v9 = vmul.f32 %v3477_v49, %v3477_v49  ;;  %v3479_v3 = vadd.f32 %v4681_v35, %v2164_v42 }
 0x278   : > { %2685 = vst.msk [vmem:[%s4599_s22 + $0x68] sm:$0xf] %vm2658_vm10, %v3278_v63  ;;  %v2786_v62 = vmul.f32 %v3476_v28, %v3476_v28  ;;  %v2739_v5 = vadd.f32 %v2738_v27, %v2737_v40  ;;  %v2838_v43 = vadd.f32 %v2837_v56, %v2836_v39  ;;  %v3279_v52 = vpack.c.bf16 %v3478_v38, %v3478_v38 }
 0x279   : > { %2683 = vst.msk [vmem:[%s4599_s22 + $0x60] sm:$0xf] %vm2658_vm10, %v3276_v41  ;;  %v2839_v33 = vsel %vm1034_vm0, %v2784_v9, 0.0  ;;  %v3277_v22 = vpack.c.bf16 %v3479_v3, %v3479_v3  ;;  %v2740_v1 = vsel %vm1034_vm0, %v3479_v3, 0.0  ;;  %v2785_v15 = vmul.f32 %v3479_v3, %v3479_v3 }
 0x27a   : > { %v2840_v30 = vadd.f32 %v2839_v33, %v2838_v43  ;;  %2686 = vst.msk [vmem:[%s4599_s22 + $0x6c] sm:$0xf] %vm2658_vm10, %v3279_v52  ;;  %v2741_v31 = vadd.f32 %v2740_v1, %v2739_v5  ;;  %v2742_v60 = vsel %vm1034_vm0, %v3476_v28, 0.0  ;;  %v2787_v34 = vmul.f32 %v3478_v38, %v3478_v38 }
 0x27b   : > { %v3410_v6 = vpop.f32.mrb[28].mxu1  ;;  %2684 = vst.msk [vmem:[%s4599_s22 + $0x64] sm:$0xf] %vm2658_vm10, %v3277_v22  ;;  %v2841_v18 = vsel %vm1034_vm0, %v2785_v15, 0.0  ;;  %v2843_v57 = vsel %vm1034_vm0, %v2786_v62, 0.0 }
 0x27c   : > { %v3480_v35 = vadd.f32 %v4683_v47, %v3410_v6  ;;  %v2177_v16 = vpop.f32.mrb[29].mxu1  ;;  %v2743_v14 = vadd.f32 %v2742_v60, %v2741_v31  ;;  %v2842_v29 = vadd.f32 %v2841_v18, %v2840_v30  ;;  %v2744_v47 = vsel %vm1034_vm0, %v3478_v38, 0.0 }
 0x27d   : > { %v3481_v24 = vadd.f32 %v4686_v61, %v2177_v16  ;;  %v3411_v36 = vpop.f32.mrb[30].mxu1  ;;  %v2845_v21 = vsel %vm1034_vm0, %v2787_v34, 0.0 }
 0x27e   : > { %v3282_v7 = vpack.c.bf16 %v3480_v35, %v3480_v35  ;;  %v2180_v2 = vpop.f32.mrb[31].mxu1  ;;  %v2844_v0 = vadd.f32 %v2843_v57, %v2842_v29  ;;  %v2745_v58 = vadd.f32 %v2744_v47, %v2743_v14  ;;  %v3482_v61 = vadd.f32 %v4690_v48, %v3411_v36 }
 0x27f   : > { %v3280_v13 = vpack.c.bf16 %v3481_v24, %v3481_v24  ;;  %v2746_v12 = vsel %vm1034_vm0, %v3481_v24, 0.0  ;;  %v2788_v20 = vmul.f32 %v3481_v24, %v3481_v24  ;;  %v3483_v26 = vadd.f32 %v4696_v19, %v2180_v2 }
 0x280   : > { %2689 = vst.msk [vmem:[%s4599_s22 + $0x78] sm:$0xf] %vm2658_vm10, %v3282_v7  ;;  %v2747_v53 = vadd.f32 %v2746_v12, %v2745_v58  ;;  %v2846_v11 = vadd.f32 %v2845_v21, %v2844_v0  ;;  %v3283_v32 = vpack.c.bf16 %v3482_v61, %v3482_v61  ;;  %v2790_v54 = vmul.f32 %v3480_v35, %v3480_v35 }
 0x281   : > { %2687 = vst.msk [vmem:[%s4599_s22 + $0x70] sm:$0xf] %vm2658_vm10, %v3280_v13  ;;  %v2847_v10 = vsel %vm1034_vm0, %v2788_v20, 0.0  ;;  %v3281_v37 = vpack.c.bf16 %v3483_v26, %v3483_v26  ;;  %v2748_v59 = vsel %vm1034_vm0, %v3483_v26, 0.0  ;;  %v2789_v44 = vmul.f32 %v3483_v26, %v3483_v26 }
 0x282   : > { %v2848_v51 = vadd.f32 %v2847_v10, %v2846_v11  ;;  %2690 = vst.msk [vmem:[%s4599_s22 + $0x7c] sm:$0xf] %vm2658_vm10, %v3283_v32  ;;  %v2749_v48 = vadd.f32 %v2748_v59, %v2747_v53  ;;  %v2750_v19 = vsel %vm1034_vm0, %v3480_v35, 0.0  ;;  %v2791_v28 = vmul.f32 %v3482_v61, %v3482_v61 }
 0x283   : > { %2688 = vst.msk [vmem:[%s4599_s22 + $0x74] sm:$0xf] %vm2658_vm10, %v3281_v37  ;;  %v2849_v50 = vsel %vm1034_vm0, %v2789_v44, 0.0  ;;  %v2851_v17 = vsel %vm1034_vm0, %v2790_v54, 0.0  ;;  %v2752_v49 = vsel %vm1034_vm0, %v3482_v61, 0.0 }
 0x284   : > { %v2751_v8 = vadd.f32 %v2750_v19, %v2749_v48  ;;  %v2850_v4 = vadd.f32 %v2849_v50, %v2848_v51  ;;  %v2853_v45 = vsel %vm1034_vm0, %v2791_v28, 0.0 }
 0x286   : > { %v2753_v25 = vadd.f32 %v2752_v49, %v2751_v8  ;;  %v2852_v23 = vadd.f32 %v2851_v17, %v2850_v4 }
 0x288   : > { %v2754_v55 = vrot.slane %v2753_v25, 4  ;;  %v2854_v63 = vadd.f32 %v2853_v45, %v2852_v23 }
 0x28a   : > { %v2755_v42 = vadd.f32 %v2754_v55, %v2753_v25  ;;  %v2855_v46 = vrot.slane %v2854_v63, 4 }
 0x28c   : > { %v2756_v41 = vrot.slane %v2755_v42, 2  ;;  %v2856_v27 = vadd.f32 %v2855_v46, %v2854_v63 }
 0x28e   : > { %v2757_v9 = vadd.f32 %v2756_v41, %v2755_v42  ;;  %v2857_v39 = vrot.slane %v2856_v27, 2 }
 0x290   : > { %v2758_v40 = vrot.slane %v2757_v9, 1  ;;  %v2858_v38 = vadd.f32 %v2857_v39, %v2856_v27 }
 0x292   : > { %v2859_v3 = vrot.slane %v2858_v38, 1  ;;  %v2759_v56 = vadd.f32 %v2758_v40, %v2757_v9 }
 0x294   : > { %v2860_v33 = vadd.f32 %v2859_v3, %v2858_v38 }
 0x296   : > { %v2862_v62 = vsel %vm1233_vm1, %v2759_v56, %v2860_v33 }
 0x297   : > { %2864 = vst.msk [vmem:[%s756_s27] sm:$0x3] %vm2863_vm11, %v2862_v62 }
 0x298 PF: > { %s22_s19 = sadd.s32 1, %s3591_s19   ;;  %s4812_s17 = smov %s3587_s18 }
 0x299   : > { %p19_p5 = scmp.ge.s32.totalorder %s22_s19, 4   ;;  %s4813_s18 = smov %s4815_s7 }
 0x29b   :  { %21 = sbr.rel (!%p19_p5) target bundleno = 2 (0x2), region = 121 }

// kernel: decoder_block_forward.6
= control target key start
LH: loop header
LB: loop body
LE: loop exit
PB: predicated region body
PF: predicated region fallthrough
CT: control target
= control target key end

     0   :  { %s3311_s27 = smov 0   ;;  %s3313_s28 = smov 0   ;;  %s4256_s0 = inlined_call_operand.vmem [shape: bf16[2,16,16,4], index: 0, kind: input, shape index: {}, may-alias: {0,1,2}]   ;;  %s4257_s1 = inlined_call_operand.vmem [shape: bf16[2,16,16,4], index: 1, kind: input, shape index: {}, may-alias: {0,1,2}]   ;;  %s4258_s2 = inlined_call_operand.vmem [shape: bf16[2,16,16,4], index: 2, kind: input, shape index: {}, may-alias: {0,1,2}]   ;;  %s4259_s3 = inlined_call_operand.vmem [shape: bf16[3,12,4], index: 3, kind: input, shape index: {}]   ;;  %s4260_s4 = inlined_call_operand.vmem [shape: f32[1,4], index: 4, kind: input, shape index: {}]   ;;  %s4261_s5 = inlined_call_operand.vmem [shape: f32[1,4], index: 5, kind: input, shape index: {}]   ;;  %s4262_s6 = inlined_call_operand.vmem [shape: f32[1,4], index: 6, kind: input, shape index: {}]   ;;  %s4263_s7 = inlined_call_operand.vmem [shape: bf16[2,16,16,4], index: 7, kind: output, shape index: {0}]   ;;  %s4264_s8 = inlined_call_operand.vmem [shape: f32[2,1,2,4], index: 8, kind: output, shape index: {1}]  }
   0x1   :  { %s3315_s29 = smov 0  }
   0x2 LB: > { %s31_s30 = sadd.s32 1, %s3258_s28  ;;  %p2758_p0 = scmp.ge.s32.totalorder %s3262_s29, 1  ;;  %s3262_s29 = sphi %s3315_s29, %s19_s29   ;;  %s3258_s28 = sphi %s3313_s28, %s4268_s28   ;;  %s3254_s27 = sphi %s3311_s27, %s4267_s27  }
   0x3   : > { %p33_p1 = scmp.ge.s32.totalorder %s31_s30, 2  ;;  %p357_p2 = scmp.lt.s32.totalorder %s3262_s29, 3 }
   0x5   : > { %s4270_s30 = smov (%p33_p1, %s31_s30), 0  ;;  %p358_p3 = pnand %p2758_p0, %p357_p2 }
   0x6   : > { %p437_p4 = scmp.lt.s32.totalorder (!%p358_p3), %s3254_s27, 1  ;;  %v3343_v0 = vld [vmem:[%s4260_s4] ss:$0 sm:$0xff] (!%p358_p3)  ;;  %vm958_vm0 = vcmask (!%p358_p3), 1040384   ;;  %vm959_vm1 = vsmask.f32 (!%p358_p3), 256 }
   0x7   : > { %361 = sbr.rel (%p358_p3) target bundleno = 553 (0x229), region = 48  ;;  %v3352_v9 = vld [vmem:[%s4261_s5] ss:$0 sm:$0xff] (!%p358_p3)  ;;  %vm3389_vm2 = vmand (!%p358_p3), %vm958_vm0, %vm959_vm1  ;;  %s3264_s19 = smov (!%p358_p3), 4   ;;  %vm1541_vm3 = vcmask (!%p358_p3), 1045504   ;;  %vm1078_vm4 = vcmask (!%p358_p3), 31744  }
   0x8   : > { %v3361_v18 = vld [vmem:[%s4262_s6] ss:$0 sm:$0xff] (!%p358_p3)  ;;  %s3265_s20 = smov (!%p358_p3), 8   ;;  %vm1127_vm5 = vcmask (!%p358_p3), 64512   ;;  %vm1492_vm6 = vcmask (!%p358_p3), 97280   ;;  %vm1939_vm8 = vcmask (!%p358_p3), 1046528  }
   0x9   : > { %vm1323_vm7 = vsmask.f32 (!%p358_p3), 7424  ;;  %vm2368_vm9 = vcmask (!%p358_p3), 27648   ;;  %vm2573_vm10 = vcmask (!%p358_p3), 25600  }
   0xe   : > { %s4272_s27 = smov (!%p437_p4, %s3254_s27), 1 }
   0xf   : > { %s3332_s9 = sshll.u32 %s4272_s27, 7 }
  0x10   : > { %s3338_s12 = scalar_lea.vmem %s4256_s0, %s3332_s9  ;;  %s2865_s10 = sadd.s32 64, %s3332_s9 }
  0x11   : > { %v2973_v1 = vld [vmem:[%s3338_s12 + $0x8] sm:$0xff]   ;;  %v2904_v2 = vld [vmem:[%s3338_s12] sm:$0xff]   ;;  %v2974_v3 = vld [vmem:[%s3338_s12 + $0x10] sm:$0xff]   ;;  %s479_s14 = scalar_lea.vmem %s4258_s2, %s2865_s10  ;;  %s460_s16 = scalar_lea.vmem %s4257_s1, %s3332_s9 }
  0x12   : > { %v2909_v4 = vunpack.c.l.bf16 %v2973_v1  ;;  %v2910_v5 = vunpack.c.h.bf16 %v2973_v1  ;;  %v2905_v6 = vunpack.c.l.bf16 %v2904_v2  ;;  %v2906_v7 = vunpack.c.h.bf16 %v2904_v2  ;;  %v2975_v8 = vld [vmem:[%s3338_s12 + $0x18] sm:$0xff]   ;;  %v2976_v39 = vld [vmem:[%s3338_s12 + $0x20] sm:$0xff]   ;;  %v2977_v44 = vld [vmem:[%s3338_s12 + $0x28] sm:$0xff]  }
  0x13   : > { %v2913_v10 = vunpack.c.l.bf16 %v2974_v3  ;;  %v2914_v11 = vunpack.c.h.bf16 %v2974_v3  ;;  %v2917_v12 = vunpack.c.l.bf16 %v2975_v8  ;;  %v2918_v13 = vunpack.c.h.bf16 %v2975_v8 }
  0x14   : > { %v636_v14 = vsub.f32 %v2909_v4, %v3343_v0  ;;  %v637_v15 = vsub.f32 %v2910_v5, %v3343_v0  ;;  %v634_v16 = vsub.f32 %v2905_v6, %v3343_v0  ;;  %v635_v17 = vsub.f32 %v2906_v7, %v3343_v0 }
  0x15   : > { %v638_v19 = vsub.f32 %v2913_v10, %v3343_v0  ;;  %v639_v20 = vsub.f32 %v2914_v11, %v3343_v0  ;;  %v640_v21 = vsub.f32 %v2917_v12, %v3343_v0  ;;  %v641_v22 = vsub.f32 %v2918_v13, %v3343_v0  ;;  %v2978_v12 = vld [vmem:[%s3338_s12 + $0x30] sm:$0xff]  }
  0x16   : > { %v668_v23 = vmul.f32 %v3352_v9, %v636_v14  ;;  %v669_v24 = vmul.f32 %v3352_v9, %v637_v15  ;;  %v666_v25 = vmul.f32 %v3352_v9, %v634_v16  ;;  %v667_v26 = vmul.f32 %v3352_v9, %v635_v17 }
  0x17   : > { %v670_v27 = vmul.f32 %v3352_v9, %v638_v19  ;;  %v671_v28 = vmul.f32 %v3352_v9, %v639_v20  ;;  %v672_v29 = vmul.f32 %v3352_v9, %v640_v21  ;;  %v673_v30 = vmul.f32 %v3352_v9, %v641_v22 }
  0x18   : > { %v700_v31 = vadd.f32 %v3361_v18, %v668_v23  ;;  %v701_v32 = vadd.f32 %v3361_v18, %v669_v24  ;;  %v698_v33 = vadd.f32 %v3361_v18, %v666_v25  ;;  %v699_v34 = vadd.f32 %v3361_v18, %v667_v26  ;;  %v2979_v25 = vld [vmem:[%s3338_s12 + $0x38] sm:$0xff]  }
  0x19   : > { %v702_v35 = vadd.f32 %v3361_v18, %v670_v27  ;;  %v703_v36 = vadd.f32 %v3361_v18, %v671_v28  ;;  %v704_v37 = vadd.f32 %v3361_v18, %v672_v29  ;;  %v705_v38 = vadd.f32 %v3361_v18, %v673_v30 }
  0x1a   : > { %v732_v40 = vmax.f32 %v700_v31, 0.0  ;;  %v733_v41 = vmax.f32 %v701_v32, 0.0  ;;  %v730_v42 = vmax.f32 %v698_v33, 0.0  ;;  %v731_v43 = vmax.f32 %v699_v34, 0.0 }
  0x1b   : > { %v734_v45 = vmax.f32 %v702_v35, 0.0  ;;  %v735_v46 = vmax.f32 %v703_v36, 0.0  ;;  %v736_v47 = vmax.f32 %v704_v37, 0.0  ;;  %v737_v48 = vmax.f32 %v705_v38, 0.0 }
  0x1c   : > { %v763_v49 = vpack.c.bf16 %v733_v41, %v732_v40  ;;  %v762_v50 = vpack.c.bf16 %v731_v43, %v730_v42  ;;  %v2921_v51 = vunpack.c.l.bf16 %v2976_v39  ;;  %v2922_v52 = vunpack.c.h.bf16 %v2976_v39 }
  0x1d   : > { %v764_v53 = vpack.c.bf16 %v735_v46, %v734_v45  ;;  %v3385_v54 = vpack.c.bf16 %v737_v48, %v736_v47  ;;  %v2925_v55 = vunpack.c.l.bf16 %v2977_v44  ;;  %v2926_v56 = vunpack.c.h.bf16 %v2977_v44  ;;  %v2980_v48 = vld [vmem:[%s3338_s12 + $0x40] sm:$0xff]  }
  0x1e   : > { %v811_v57 = vshrl.u32 %v763_v49, 16  ;;  %v804_v58 = vshrl.u32 %v762_v50, 16  ;;  %v642_v1 = vsub.f32 %v2921_v51, %v3343_v0  ;;  %v643_v2 = vsub.f32 %v2922_v52, %v3343_v0 }
  0x1f   : > { %v818_v60 = vshrl.u32 %v764_v53, 16  ;;  %v825_v61 = vshrl.u32 %v3385_v54, 16  ;;  %v814_v4 = vshll.u32 %v763_v49, 16  ;;  %v644_v5 = vsub.f32 %v2925_v55, %v3343_v0 }
  0x20   : > { %v813_v62 = vrot.slane %v811_v57, 7  ;;  %v806_v63 = vrot.slane %v804_v58, 7  ;;  %v645_v6 = vsub.f32 %v2926_v56, %v3343_v0  ;;  %v807_v11 = vshll.u32 %v762_v50, 16 }
  0x21   : > { %v820_v3 = vrot.slane %v818_v60, 7  ;;  %v827_v10 = vrot.slane %v825_v61, 7  ;;  %v674_v14 = vmul.f32 %v3352_v9, %v642_v1  ;;  %v675_v15 = vmul.f32 %v3352_v9, %v643_v2 }
  0x22   : > { %v3400_v7 = vsel %vm3389_vm2, %v813_v62, 0  ;;  %v3404_v8 = vsel %vm3389_vm2, %v806_v63, 0  ;;  %v816_v16 = vor.u32 %v814_v4, %v813_v62  ;;  %v821_v17 = vshll.u32 %v764_v53, 16 }
  0x23   : > { %1180 = vrot.lane.b32.xlu1 %v3400_v7, %s3264_s19  ;;  %1178 = vrot.lane.b32.xlu0 %v3404_v8, %s3264_s19  ;;  %v3413_v13 = vsel %vm3389_vm2, %v820_v3, 0  ;;  %v676_v19 = vmul.f32 %v3352_v9, %v644_v5  ;;  %v677_v20 = vmul.f32 %v3352_v9, %v645_v6  ;;  %v706_v21 = vadd.f32 %v3361_v18, %v674_v14 }
  0x24   : > { %v707_v22 = vadd.f32 %v3361_v18, %v675_v15  ;;  %v2929_v23 = vunpack.c.l.bf16 %v2978_v12  ;;  %v2930_v24 = vunpack.c.h.bf16 %v2978_v12  ;;  %v3428_v26 = vsel %vm3389_vm2, %v827_v10, 0 }
  0x25   : > { %v809_v27 = vor.u32 %v807_v11, %v806_v63  ;;  %v708_v28 = vadd.f32 %v3361_v18, %v676_v19  ;;  %v709_v29 = vadd.f32 %v3361_v18, %v677_v20  ;;  %v738_v30 = vmax.f32 %v706_v21, 0.0  ;;  %v2981_v19 = vld [vmem:[%s3338_s12 + $0x48] sm:$0xff]  }
  0x26   : > { %v739_v31 = vmax.f32 %v707_v22, 0.0  ;;  %v646_v32 = vsub.f32 %v2929_v23, %v3343_v0  ;;  %v647_v33 = vsub.f32 %v2930_v24, %v3343_v0  ;;  %v828_v34 = vshll.u32 %v3385_v54, 16 }
  0x27   : > { %1213 = vrot.lane.b32.xlu1 %v3413_v13, %s3265_s20  ;;  %1211 = vrot.lane.b32.xlu0 %v3400_v7, %s3265_s20  ;;  %v2933_v35 = vunpack.c.l.bf16 %v2979_v25  ;;  %v2934_v39 = vunpack.c.h.bf16 %v2979_v25  ;;  %v3443_v40 = vsel %vm3389_vm2, 0, %v816_v16  ;;  %v823_v41 = vor.u32 %v821_v17, %v820_v3 }
  0x28   : > { %v766_v36 = vpack.c.bf16 %v739_v31, %v738_v30  ;;  %v678_v37 = vmul.f32 %v3352_v9, %v646_v32  ;;  %v679_v38 = vmul.f32 %v3352_v9, %v647_v33  ;;  %v740_v42 = vmax.f32 %v708_v28, 0.0  ;;  %v2982_v31 = vld [vmem:[%s3338_s12 + $0x50] sm:$0xff]  }
  0x29   : > { %v741_v43 = vmax.f32 %v709_v29, 0.0  ;;  %v3447_v44 = vsel %vm3389_vm2, 0, %v809_v27  ;;  %v830_v49 = vor.u32 %v828_v34, %v827_v10  ;;  %v648_v50 = vsub.f32 %v2933_v35, %v3343_v0 }
  0x2a   : > { %v832_v45 = vshrl.u32 %v766_v36, 16  ;;  %v710_v46 = vadd.f32 %v3361_v18, %v678_v37  ;;  %v711_v47 = vadd.f32 %v3361_v18, %v679_v38  ;;  %v649_v51 = vsub.f32 %v2934_v39, %v3343_v0 }
  0x2b   : > { %1184 = vrot.lane.b32.xlu1 %v3428_v26, %s3264_s19  ;;  %1182 = vrot.lane.b32.xlu0 %v3413_v13, %s3264_s19  ;;  %v3460_v52 = vsel %vm3389_vm2, 0, %v823_v41  ;;  %v767_v53 = vpack.c.bf16 %v741_v43, %v740_v42  ;;  %v2937_v54 = vunpack.c.l.bf16 %v2980_v48  ;;  %v2938_v55 = vunpack.c.h.bf16 %v2980_v48 }
  0x2c   : > { %v834_v56 = vrot.slane %v832_v45, 7  ;;  %v835_v57 = vshll.u32 %v766_v36, 16  ;;  %v742_v58 = vmax.f32 %v710_v46, 0.0  ;;  %v743_v60 = vmax.f32 %v711_v47, 0.0 }
  0x2d   : > { %v680_v61 = vmul.f32 %v3352_v9, %v648_v50  ;;  %v681_v62 = vmul.f32 %v3352_v9, %v649_v51  ;;  %v839_v63 = vshrl.u32 %v767_v53, 16  ;;  %v650_v1 = vsub.f32 %v2937_v54, %v3343_v0 }
  0x2e   : > { %v651_v2 = vsub.f32 %v2938_v55, %v3343_v0  ;;  %v3472_v3 = vsel %vm3389_vm2, 0, %v830_v49  ;;  %v837_v4 = vor.u32 %v835_v57, %v834_v56  ;;  %v768_v5 = vpack.c.bf16 %v743_v60, %v742_v58  ;;  %v2983_v55 = vld [vmem:[%s3338_s12 + $0x58] sm:$0xff]  }
  0x2f   : > { %1046 = vrot.lane.b32.xlu1 %v3443_v40, %s3265_s20  ;;  %1013 = vrot.lane.b32.xlu0 %v3447_v44, %s3264_s19  ;;  %v712_v6 = vadd.f32 %v3361_v18, %v680_v61  ;;  %v713_v10 = vadd.f32 %v3361_v18, %v681_v62  ;;  %v841_v11 = vrot.slane %v839_v63, 7  ;;  %v842_v12 = vshll.u32 %v767_v53, 16 }
  0x30   : > { %v682_v14 = vmul.f32 %v3352_v9, %v650_v1  ;;  %v683_v15 = vmul.f32 %v3352_v9, %v651_v2  ;;  %v3484_v16 = vsel %vm3389_vm2, 0, %v837_v4  ;;  %v846_v17 = vshrl.u32 %v768_v5, 16 }
  0x31   : > { %v744_v20 = vmax.f32 %v712_v6, 0.0  ;;  %v745_v21 = vmax.f32 %v713_v10, 0.0  ;;  %v3493_v22 = vsel %vm3389_vm2, %v834_v56, 0  ;;  %v844_v23 = vor.u32 %v842_v12, %v841_v11  ;;  %v2984_v12 = vld [vmem:[%s3338_s12 + $0x60] sm:$0xff]  }
  0x32   : > { %v714_v24 = vadd.f32 %v3361_v18, %v682_v14  ;;  %v715_v25 = vadd.f32 %v3361_v18, %v683_v15  ;;  %v848_v27 = vrot.slane %v846_v17, 7  ;;  %v849_v28 = vshll.u32 %v768_v5, 16 }
  0x33   : > { %1048 = vrot.lane.b32.xlu1 %v3460_v52, %s3265_s20  ;;  %1015 = vrot.lane.b32.xlu0 %v3443_v40, %s3264_s19  ;;  %v2941_v29 = vunpack.c.l.bf16 %v2981_v19  ;;  %v2942_v30 = vunpack.c.h.bf16 %v2981_v19  ;;  %v769_v32 = vpack.c.bf16 %v745_v21, %v744_v20  ;;  %v3504_v33 = vsel %vm3389_vm2, 0, %v844_v23 }
  0x34   : > { %v746_v34 = vmax.f32 %v714_v24, 0.0  ;;  %v747_v35 = vmax.f32 %v715_v25, 0.0  ;;  %v2945_v36 = vunpack.c.l.bf16 %v2982_v31  ;;  %v851_v37 = vor.u32 %v849_v28, %v848_v27 }
  0x35   : > { %v652_v38 = vsub.f32 %v2941_v29, %v3343_v0  ;;  %v653_v39 = vsub.f32 %v2942_v30, %v3343_v0  ;;  %v2946_v41 = vunpack.c.h.bf16 %v2982_v31  ;;  %v853_v42 = vshrl.u32 %v769_v32, 16 }
  0x36   : > { %v770_v43 = vpack.c.bf16 %v747_v35, %v746_v34  ;;  %v654_v45 = vsub.f32 %v2945_v36, %v3343_v0  ;;  %v3515_v46 = vsel %vm3389_vm2, 0, %v851_v37  ;;  %v3526_v50 = vsel %vm3389_vm2, %v841_v11, 0  ;;  %v3237_v35 = vld [vmem:[%s4259_s3] sm:$0x3f]   ;;  %v3238_v36 = vld [vmem:[%s4259_s3 + $0x8] sm:$0x3f]  }
  0x37   : > { %1019 = vrot.lane.b32.xlu1 %v3472_v3, %s3264_s19  ;;  %1017 = vrot.lane.b32.xlu0 %v3460_v52, %s3264_s19  ;;  %v684_v47 = vmul.f32 %v3352_v9, %v652_v38  ;;  %v685_v48 = vmul.f32 %v3352_v9, %v653_v39  ;;  %v655_v49 = vsub.f32 %v2946_v41, %v3343_v0  ;;  %v855_v51 = vrot.slane %v853_v42, 7  ;;  %v2985_v42 = vld [vmem:[%s3338_s12 + $0x68] sm:$0xff]  }
  0x38   : > { %v856_v53 = vshll.u32 %v769_v32, 16  ;;  %v860_v54 = vshrl.u32 %v770_v43, 16  ;;  %v686_v58 = vmul.f32 %v3352_v9, %v654_v45  ;;  %v3535_v61 = vsel %vm3389_vm2, %v848_v27, 0  ;;  %3208 = vmatprep.subr.msk.bf16.mxu0 %vm1541_vm3, %v3237_v35  ;;  %3207 = vmatprep.subr.msk.bf16.mxu1 %vm1541_vm3, %v3238_v36 }
  0x39   : > { %v716_v56 = vadd.f32 %v3361_v18, %v684_v47  ;;  %v717_v57 = vadd.f32 %v3361_v18, %v685_v48  ;;  %v687_v60 = vmul.f32 %v3352_v9, %v655_v49  ;;  %v2949_v62 = vunpack.c.l.bf16 %v2983_v55  ;;  %v3239_v49 = vld [vmem:[%s4259_s3 + $0x10] sm:$0x3f]  }
  0x3a   : > { %v858_v63 = vor.u32 %v856_v53, %v855_v51  ;;  %v862_v1 = vrot.slane %v860_v54, 7  ;;  %v863_v2 = vshll.u32 %v770_v43, 16  ;;  %v2950_v4 = vunpack.c.h.bf16 %v2983_v55 }
  0x3b   : > { %1052 = vrot.lane.b32.xlu1 %v3484_v16, %s3265_s20  ;;  %1050 = vrot.lane.b32.xlu0 %v3472_v3, %s3265_s20  ;;  %v748_v5 = vmax.f32 %v716_v56, 0.0  ;;  %v749_v6 = vmax.f32 %v717_v57, 0.0  ;;  %v718_v10 = vadd.f32 %v3361_v18, %v686_v58  ;;  %v719_v11 = vadd.f32 %v3361_v18, %v687_v60 }
  0x3c   : > { %v656_v14 = vsub.f32 %v2949_v62, %v3343_v0  ;;  %v3551_v15 = vsel %vm3389_vm2, 0, %v858_v63  ;;  %v657_v17 = vsub.f32 %v2950_v4, %v3343_v0  ;;  %v2953_v19 = vunpack.c.l.bf16 %v2984_v12 }
  0x3d   : > { %v2954_v20 = vunpack.c.h.bf16 %v2984_v12  ;;  %v865_v21 = vor.u32 %v863_v2, %v862_v1  ;;  %v771_v23 = vpack.c.bf16 %v749_v6, %v748_v5  ;;  %v750_v24 = vmax.f32 %v718_v10, 0.0  ;;  %v2986_v5 = vld [vmem:[%s3338_s12 + $0x70] sm:$0xff]  }
  0x3e   : > { %v751_v25 = vmax.f32 %v719_v11, 0.0  ;;  %v688_v27 = vmul.f32 %v3352_v9, %v656_v14  ;;  %v689_v28 = vmul.f32 %v3352_v9, %v657_v17  ;;  %v658_v29 = vsub.f32 %v2953_v19, %v3343_v0 }
  0x3f   : > { %1217 = vrot.lane.b32.xlu1 %v3493_v22, %s3265_s20  ;;  %1215 = vrot.lane.b32.xlu0 %v3428_v26, %s3265_s20  ;;  %v659_v30 = vsub.f32 %v2954_v20, %v3343_v0  ;;  %v3564_v31 = vsel %vm3389_vm2, 0, %v865_v21  ;;  %v867_v32 = vshrl.u32 %v771_v23, 16  ;;  %v3583_v43 = vsel %vm3389_vm2, %v855_v51, 0 }
  0x40   : > { %v772_v34 = vpack.c.bf16 %v751_v25, %v750_v24  ;;  %v720_v37 = vadd.f32 %v3361_v18, %v688_v27  ;;  %v721_v38 = vadd.f32 %v3361_v18, %v689_v28  ;;  %v690_v39 = vmul.f32 %v3352_v9, %v658_v29 }
  0x41   : > { %v691_v41 = vmul.f32 %v3352_v9, %v659_v30  ;;  %v869_v45 = vrot.slane %v867_v32, 7  ;;  %v870_v47 = vshll.u32 %v771_v23, 16  ;;  %v3592_v53 = vsel %vm3389_vm2, %v862_v1, 0 }
  0x42   : > { %v874_v48 = vshrl.u32 %v772_v34, 16  ;;  %v877_v54 = vshll.u32 %v772_v34, 16  ;;  %v2957_v55 = vunpack.c.l.bf16 %v2985_v42  ;;  %v2958_v51 = vunpack.c.h.bf16 %v2985_v42 }
  0x43   : > { %1023 = vrot.lane.b32.xlu1 %v3504_v33, %s3264_s19  ;;  %1021 = vrot.lane.b32.xlu0 %v3484_v16, %s3264_s19  ;;  %v3595_v56 = vsel %vm1541_vm3, %v3237_v35, 0  ;;  %v752_v57 = vmax.f32 %v720_v37, 0.0  ;;  %v753_v58 = vmax.f32 %v721_v38, 0.0  ;;  %v722_v60 = vadd.f32 %v3361_v18, %v690_v39  ;;  %v2987_v38 = vld [vmem:[%s3338_s12 + $0x78] sm:$0xff]  }
  0x44   : > { %v723_v62 = vadd.f32 %v3361_v18, %v691_v41  ;;  %v872_v63 = vor.u32 %v870_v47, %v869_v45  ;;  %v876_v1 = vrot.slane %v874_v48, 7  ;;  %3074 = vmatpush3.bf16.msra.mxu0 %v3595_v56  ;;  %v1543_v2 = vsel %vm1541_vm3, %v3238_v36, 0  ;;  %v2968_v47 = vld [vmem:[%s479_s14] sm:$0xff]  }
  0x45   : > { %v3606_v4 = vsel %vm1541_vm3, %v3239_v49, 0  ;;  %3040 = vmatpush3.bf16.msra.mxu1 %v1543_v2  ;;  %3210 = vmatprep.subr.msk.bf16.mxu0 %vm1541_vm3, %v3239_v49  ;;  %v660_v6 = vsub.f32 %v2957_v55, %v3343_v0  ;;  %v661_v10 = vsub.f32 %v2958_v51, %v3343_v0  ;;  %v773_v11 = vpack.c.bf16 %v753_v58, %v752_v57 }
  0x46   : > { %3209 = vmatprep.subr.msk.bf16.mxu1 %vm1541_vm3, %v3237_v35  ;;  %v754_v12 = vmax.f32 %v722_v60, 0.0  ;;  %v755_v14 = vmax.f32 %v723_v62, 0.0  ;;  %v3619_v17 = vsel %vm3389_vm2, 0, %v872_v63  ;;  %v879_v19 = vor.u32 %v877_v54, %v876_v1 }
  0x47   : > { %1056 = vrot.lane.b32.xlu1 %v3515_v46, %s3265_s20  ;;  %1054 = vrot.lane.b32.xlu0 %v3504_v33, %s3265_s20  ;;  %v2961_v20 = vunpack.c.l.bf16 %v2986_v5  ;;  %v2962_v21 = vunpack.c.h.bf16 %v2986_v5  ;;  %v692_v23 = vmul.f32 %v3352_v9, %v660_v6  ;;  %v693_v24 = vmul.f32 %v3352_v9, %v661_v10 }
  0x48   : > { %v881_v25 = vshrl.u32 %v773_v11, 16  ;;  %v774_v27 = vpack.c.bf16 %v755_v14, %v754_v12  ;;  %v3630_v28 = vsel %vm3389_vm2, 0, %v879_v19  ;;  %v884_v36 = vshll.u32 %v773_v11, 16 }
  0x49   : > { %v662_v29 = vsub.f32 %v2961_v20, %v3343_v0  ;;  %v663_v30 = vsub.f32 %v2962_v21, %v3343_v0  ;;  %v724_v32 = vadd.f32 %v3361_v18, %v692_v23  ;;  %v725_v34 = vadd.f32 %v3361_v18, %v693_v24 }
  0x4a   : > { %v883_v35 = vrot.slane %v881_v25, 7  ;;  %v888_v37 = vshrl.u32 %v774_v27, 16  ;;  %v3646_v39 = vsel %vm3389_vm2, %v869_v45, 0  ;;  %v3652_v48 = vsel %vm3389_vm2, %v876_v1, 0 }
  0x4b   : > { %1188 = vrot.lane.b32.xlu1 %v3526_v50, %s3264_s19  ;;  %1186 = vrot.lane.b32.xlu0 %v3493_v22, %s3264_s19  ;;  %v694_v41 = vmul.f32 %v3352_v9, %v662_v29  ;;  %v695_v42 = vmul.f32 %v3352_v9, %v663_v30  ;;  %v756_v49 = vmax.f32 %v724_v32, 0.0  ;;  %v757_v54 = vmax.f32 %v725_v34, 0.0  ;;  %v2972_v32 = vld [vmem:[%s460_s16 + $0x38] sm:$0xff]  }
  0x4c   : > { %v2965_v55 = vunpack.c.l.bf16 %v2987_v38  ;;  %v886_v45 = vor.u32 %v884_v36, %v883_v35  ;;  %v890_v51 = vrot.slane %v888_v37, 7  ;;  %v891_v57 = vshll.u32 %v774_v27, 16 }
  0x4d   : > { %v2966_v58 = vunpack.c.h.bf16 %v2987_v38  ;;  %v726_v60 = vadd.f32 %v3361_v18, %v694_v41  ;;  %v727_v62 = vadd.f32 %v3361_v18, %v695_v42  ;;  %v2969_v63 = vunpack.c.l.bf16 %v2968_v47 }
  0x4e   : > { %v2970_v1 = vunpack.c.h.bf16 %v2968_v47  ;;  %v775_v2 = vpack.c.bf16 %v757_v54, %v756_v49  ;;  %v3666_v5 = vsel %vm3389_vm2, 0, %v886_v45  ;;  %v893_v6 = vor.u32 %v891_v57, %v890_v51 }
  0x4f   : > { %1221 = vrot.lane.b32.xlu1 %v3535_v61, %s3265_s20  ;;  %1219 = vrot.lane.b32.xlu0 %v3526_v50, %s3265_s20  ;;  %v664_v10 = vsub.f32 %v2965_v55, %v3343_v0  ;;  %v665_v11 = vsub.f32 %v2966_v58, %v3343_v0  ;;  %v758_v12 = vmax.f32 %v726_v60, 0.0  ;;  %v759_v14 = vmax.f32 %v727_v62, 0.0 }
  0x50   : > { %v782_v19 = vsub.f32 %v2969_v63, %v3343_v0  ;;  %v783_v20 = vsub.f32 %v2970_v1, %v3343_v0  ;;  %v895_v21 = vshrl.u32 %v775_v2, 16  ;;  %v3684_v25 = vsel %vm3389_vm2, 0, %v893_v6 }
  0x51   : > { %v696_v23 = vmul.f32 %v3352_v9, %v664_v10  ;;  %v697_v24 = vmul.f32 %v3352_v9, %v665_v11  ;;  %v776_v27 = vpack.c.bf16 %v759_v14, %v758_v12  ;;  %v898_v36 = vshll.u32 %v775_v2, 16 }
  0x52   : > { %v784_v29 = vmul.f32 %v3352_v9, %v782_v19  ;;  %v785_v30 = vmul.f32 %v3352_v9, %v783_v20  ;;  %v897_v34 = vrot.slane %v895_v21, 7  ;;  %v3696_v41 = vsel %vm3389_vm2, %v883_v35, 0 }
  0x53   : > { %1027 = vrot.lane.b32.xlu1 %v3551_v15, %s3264_s19  ;;  %1025 = vrot.lane.b32.xlu0 %v3515_v46, %s3264_s19  ;;  %v728_v37 = vadd.f32 %v3361_v18, %v696_v23  ;;  %v729_v38 = vadd.f32 %v3361_v18, %v697_v24  ;;  %v902_v42 = vshrl.u32 %v776_v27, 16  ;;  %v2901_v54 = vunpack.c.l.bf16 %v2972_v32 }
  0x54   : > { %v786_v47 = vadd.f32 %v3361_v18, %v784_v29  ;;  %v787_v49 = vadd.f32 %v3361_v18, %v785_v30  ;;  %v2902_v55 = vunpack.c.h.bf16 %v2972_v32  ;;  %v3706_v45 = vsel %vm3389_vm2, %v890_v51, 0 }
  0x55   : > { %v900_v57 = vor.u32 %v898_v36, %v897_v34  ;;  %v760_v35 = vmax.f32 %v728_v37, 0.0  ;;  %v761_v58 = vmax.f32 %v729_v38, 0.0  ;;  %v904_v60 = vrot.slane %v902_v42, 7 }
  0x56   : > { %v905_v62 = vshll.u32 %v776_v27, 16  ;;  %v788_v63 = vmax.f32 %v786_v47, 0.0  ;;  %v789_v1 = vmax.f32 %v787_v49, 0.0  ;;  %v542_v2 = vsub.f32 %v2901_v54, %v3343_v0 }
  0x57   : > { %1060 = vrot.lane.b32.xlu1 %v3564_v31, %s3265_s20  ;;  %1058 = vrot.lane.b32.xlu0 %v3551_v15, %s3265_s20  ;;  %v543_v6 = vsub.f32 %v2902_v55, %v3343_v0  ;;  %v3716_v51 = vsel %vm3389_vm2, 0, %v900_v57  ;;  %v777_v11 = vpack.c.bf16 %v761_v58, %v760_v35 }
  0x58   : > { %v907_v10 = vor.u32 %v905_v62, %v904_v60  ;;  %v790_v12 = vpack.c.bf16 %v789_v1, %v788_v63  ;;  %v551_v14 = vmul.f32 %v3352_v9, %v542_v2 }
  0x59   : > { %v552_v19 = vmul.f32 %v3352_v9, %v543_v6  ;;  %v909_v20 = vshrl.u32 %v777_v11, 16  ;;  %v3736_v9 = vsel %vm3389_vm2, %v897_v34, 0  ;;  %v912_v29 = vshll.u32 %v777_v11, 16 }
  0x5a   : > { %v3726_v0 = vsel %vm3389_vm2, 0, %v907_v10  ;;  %v795_v21 = vmul.bf16 0.0, %v790_v12  ;;  %v560_v23 = vadd.f32 %v3361_v18, %v551_v14 }
  0x5b   : > { %1192 = vrot.lane.b32.xlu1 %v3583_v43, %s3264_s19  ;;  %1190 = vrot.lane.b32.xlu0 %v3535_v61, %s3264_s19  ;;  %v561_v24 = vadd.f32 %v3361_v18, %v552_v19  ;;  %v911_v27 = vrot.slane %v909_v20, 7  ;;  %v3744_v18 = vsel %vm3389_vm2, %v904_v60, 0 }
  0x5c   : > { %v916_v30 = vshrl.u32 %v795_v21, 16  ;;  %v562_v32 = vmax.f32 %v560_v23, 0.0  ;;  %v919_v42 = vshll.u32 %v795_v21, 16 }
  0x5d   : > { %v563_v36 = vmax.f32 %v561_v24, 0.0  ;;  %v914_v37 = vor.u32 %v912_v29, %v911_v27  ;;  %v995_v62 = vsel %vm3389_vm2, %v911_v27, 0 }
  0x5e   : > { %v918_v38 = vrot.slane %v916_v30, 7 }
  0x5f   : > { %1225 = vrot.lane.b32.xlu1 %v3592_v53, %s3265_s20  ;;  %1223 = vrot.lane.b32.xlu0 %v3583_v43, %s3265_s20  ;;  %v564_v34 = vpack.c.bf16 %v563_v36, %v562_v32  ;;  %v977_v47 = vsel %vm3389_vm2, 0, %v914_v37 }
  0x60   : > { %v921_v49 = vor.u32 %v919_v42, %v918_v38  ;;  %v996_v10 = vsel %vm3389_vm2, %v918_v38, 0 }
  0x61   : > { %v569_v54 = vmul.bf16 0.0, %v564_v34 }
  0x62   : > { %v978_v55 = vsel %vm3389_vm2, 0, %v921_v49 }
  0x63   : > { %1031 = vrot.lane.b32.xlu1 %v3619_v17, %s3264_s19  ;;  %1029 = vrot.lane.b32.xlu0 %v3564_v31, %s3264_s19  ;;  %v797_v35 = vshrl.u32 %v569_v54, 16  ;;  %v800_v60 = vshll.u32 %v569_v54, 16 }
  0x65   : > { %v799_v63 = vrot.slane %v797_v35, 7 }
  0x67   : > { %1064 = vrot.lane.b32.xlu1 %v3630_v28, %s3265_s20  ;;  %1062 = vrot.lane.b32.xlu0 %v3619_v17, %s3265_s20  ;;  %v802_v6 = vor.u32 %v800_v60, %v799_v63  ;;  %v979_v11 = vsel %vm3389_vm2, %v799_v63, 0 }
  0x69   : > { %v961_v19 = vsel %vm3389_vm2, 0, %v802_v6 }
  0x6b   : > { %1196 = vrot.lane.b32.xlu1 %v3646_v39, %s3264_s19  ;;  %1194 = vrot.lane.b32.xlu0 %v3592_v53, %s3264_s19 }
  0x6f   : > { %1229 = vrot.lane.b32.xlu1 %v3652_v48, %s3265_s20  ;;  %1227 = vrot.lane.b32.xlu0 %v3646_v39, %s3265_s20 }
  0x73   : > { %1035 = vrot.lane.b32.xlu1 %v3666_v5, %s3264_s19  ;;  %1033 = vrot.lane.b32.xlu0 %v3630_v28, %s3264_s19 }
  0x77   : > { %1068 = vrot.lane.b32.xlu1 %v3684_v25, %s3265_s20  ;;  %1066 = vrot.lane.b32.xlu0 %v3666_v5, %s3265_s20 }
  0x7b   : > { %1200 = vrot.lane.b32.xlu1 %v3696_v41, %s3264_s19  ;;  %1198 = vrot.lane.b32.xlu0 %v3652_v48, %s3264_s19 }
  0x7f   : > { %1233 = vrot.lane.b32.xlu1 %v3706_v45, %s3265_s20  ;;  %1231 = vrot.lane.b32.xlu0 %v3696_v41, %s3265_s20 }
  0x83   : > { %1039 = vrot.lane.b32.xlu1 %v3716_v51, %s3264_s19  ;;  %1037 = vrot.lane.b32.xlu0 %v3684_v25, %s3264_s19 }
  0x87   : > { %1072 = vrot.lane.b32.xlu1 %v3726_v0, %s3265_s20  ;;  %1070 = vrot.lane.b32.xlu0 %v3716_v51, %s3265_s20 }
  0x8b   : > { %1204 = vrot.lane.b32.xlu1 %v3736_v9, %s3264_s19  ;;  %1202 = vrot.lane.b32.xlu0 %v3706_v45, %s3264_s19 }
  0x8f   : > { %1237 = vrot.lane.b32.xlu1 %v3744_v18, %s3265_s20  ;;  %1235 = vrot.lane.b32.xlu0 %v3736_v9, %s3265_s20 }
  0x93   : > { %1043 = vrot.lane.b32.xlu1 %v977_v47, %s3264_s19  ;;  %1041 = vrot.lane.b32.xlu0 %v3726_v0, %s3264_s19 }
  0x95   : > { %v1181_v57 = vpop.permute.xlu1 %1180  ;;  %v1179_v58 = vpop.permute.xlu0 %1178 }
  0x96   : > { %v1245_v20 = vsel %vm1078_vm4, %v979_v11, %v1179_v58  ;;  %v1248_v30 = vsel %vm1078_vm4, %v3404_v8, %v1181_v57 }
  0x97   : > { %1076 = vrot.lane.b32.xlu1 %v978_v55, %s3265_s20  ;;  %1074 = vrot.lane.b32.xlu0 %v977_v47, %s3265_s20 }
  0x99   : > { %v1214_v1 = vpop.permute.xlu1 %1213  ;;  %v1212_v2 = vpop.permute.xlu0 %1211 }
  0x9a   : > { %v3774_v21 = vsel %vm1127_vm5, %v1245_v20, %v1212_v2  ;;  %v3787_v36 = vsel %vm1127_vm5, %v1248_v30, %v1214_v1 }
  0x9b   : > { %1208 = vrot.lane.b32.xlu1 %v995_v62, %s3264_s19  ;;  %1206 = vrot.lane.b32.xlu0 %v3744_v18, %s3264_s19  ;;  %v1330_v32 = vshll.u32 %v3774_v21, 16  ;;  %v1340_v49 = vshll.u32 %v3787_v36, 16  ;;  %s4072_s19 = scalar_lea.vmem %s4263_s7, %s3332_s9  ;;  %s2767_s9 = sshll.u32 %s4272_s27, 1 }
  0x9c   : > { %s502_s22 = scalar_lea.vmem %s4264_s8, %s2767_s9 }
  0x9d   : > { %v1185_v12 = vpop.permute.xlu1 %1184  ;;  %v1183_v14 = vpop.permute.xlu0 %1182  ;;  %v1332_v54 = vrot.slane %v1330_v32, 1  ;;  %v1342_v63 = vrot.slane %v1340_v49, 1 }
  0x9f   : > { %1241 = vrot.lane.b32.xlu1 %v996_v10, %s3265_s20  ;;  %1239 = vrot.lane.b32.xlu0 %v995_v62, %s3265_s20 }
  0xa1   : > { %v1047_v23 = vpop.permute.xlu1 %1046  ;;  %v1014_v24 = vpop.permute.xlu0 %1013 }
  0xa2   : > { %v1081_v27 = vsel %vm1078_vm4, %v961_v19, %v1014_v24  ;;  %v1251_v24 = vsel %vm1078_vm4, %v3400_v7, %v1183_v14 }
  0xa3   : > { %v3778_v29 = vsel %vm1127_vm5, %v1081_v27, %v1047_v23 }
  0xa4   : > { %3075 = vmatprep.mubr.msk.bf16.mxu0 %vm1492_vm6, %v3778_v29  ;;  %v1326_v59 = vshll.u32 %v3778_v29, 16  ;;  %v1324_v34 = vshrl.u32 %v3778_v29, 16 }
  0xa5   : > { %v1049_v37 = vpop.permute.xlu1 %1048  ;;  %v1016_v38 = vpop.permute.xlu0 %1015 }
  0xa6   : > { %v1084_v42 = vsel %vm1078_vm4, %v3447_v44, %v1016_v38  ;;  %v1328_v47 = vrot.slane %v1326_v59, 1 }
  0xa7   : > { %v3793_v8 = vsel %vm1127_vm5, %v1084_v42, %v1049_v37 }
  0xa8   : > { %v1336_v55 = vshll.u32 %v3793_v8, 16  ;;  %3076 = vmatmul.mubr.msk.bf16.vlgmr.msra.gmra.mrb[0].mxu0 %vm1492_vm6, %v3793_v8  ;;  %v1329_v57 = vor.u32 %v1328_v47, %v1324_v34  ;;  %v1334_v44 = vshrl.u32 %v3793_v8, 16 }
  0xa9   : > { %v1020_v35 = vpop.permute.xlu1 %1019  ;;  %v1018_v58 = vpop.permute.xlu0 %1017  ;;  %3108 = vmatpush3.bf16.msra.mxu0 %v3606_v4 }
  0xaa   : > { %v1338_v60 = vrot.slane %v1336_v55, 1  ;;  %v1333_v62 = vsel %vm1323_vm7, %v1329_v57, %v1332_v54  ;;  %v1090_v2 = vsel %vm1078_vm4, %v3460_v52, %v1020_v35  ;;  %v1087_v6 = vsel %vm1078_vm4, %v3443_v40, %v1018_v58 }
  0xab   : > { %3041 = vmatprep.mubr.msk.bf16.mxu1 %vm1492_vm6, %v1333_v62  ;;  %v1254_v40 = vsel %vm1078_vm4, %v3413_v13, %v1185_v12 }
  0xac   : > { %v1339_v1 = vor.u32 %v1338_v60, %v1334_v44 }
  0xad   : > { %v1053_v10 = vpop.permute.xlu1 %1052  ;;  %v1051_v11 = vpop.permute.xlu0 %1050 }
  0xae   : > { %v3808_v19 = vsel %vm1127_vm5, %v1090_v2, %v1053_v10  ;;  %v3811_v4 = vsel %vm1127_vm5, %v1087_v6, %v1051_v11  ;;  %v1343_v20 = vsel %vm1323_vm7, %v1339_v1, %v1342_v63 }
  0xaf   : > { %v1356_v23 = vshll.u32 %v3808_v19, 16  ;;  %3042 = vmatmul.mubr.msk.bf16.vlgmr.msra.gmra.mrb[0].mxu1 %vm1492_vm6, %v1343_v20  ;;  %3079 = vmatprep.mubr.msk.bf16.mxu0 %vm1492_vm6, %v3811_v4  ;;  %v1346_v52 = vshll.u32 %v3811_v4, 16  ;;  %v1354_v42 = vshrl.u32 %v3808_v19, 16 }
  0xb0   : > { %3080 = vmatmul.mubr.msk.bf16.gmra.mrb[4].mxu0 %vm1492_vm6, %v3808_v19  ;;  %3142 = vmatpush3.bf16.msra.mxu1 %v3595_v56  ;;  %v1344_v56 = vshrl.u32 %v3811_v4, 16 }
  0xb1   : > { %v1358_v27 = vrot.slane %v1356_v23, 1  ;;  %v1218_v30 = vpop.permute.xlu1 %1217  ;;  %v1216_v32 = vpop.permute.xlu0 %1215  ;;  %v1348_v59 = vrot.slane %v1346_v52, 1 }
  0xb2   : > { %v3827_v37 = vsel %vm1127_vm5, %v1254_v40, %v1218_v30  ;;  %v3830_v38 = vsel %vm1127_vm5, %v1251_v24, %v1216_v32 }
  0xb3   : > { %v1360_v34 = vshll.u32 %v3827_v37, 16  ;;  %v1350_v13 = vshll.u32 %v3830_v38, 16  ;;  %v1359_v12 = vor.u32 %v1358_v27, %v1354_v42  ;;  %v1349_v7 = vor.u32 %v1348_v59, %v1344_v56 }
  0xb5   : > { %v1362_v14 = vrot.slane %v1360_v34, 1  ;;  %v1352_v47 = vrot.slane %v1350_v13, 1  ;;  %v1024_v49 = vpop.permute.xlu1 %1023  ;;  %v1022_v54 = vpop.permute.xlu0 %1021 }
  0xb6   : > { %v1096_v35 = vsel %vm1078_vm4, %v3484_v16, %v1024_v49  ;;  %v1093_v58 = vsel %vm1078_vm4, %v3472_v3, %v1022_v54 }
  0xb7   : > { %v1353_v55 = vsel %vm1323_vm7, %v1349_v7, %v1352_v47  ;;  %v1363_v57 = vsel %vm1323_vm7, %v1359_v12, %v1362_v14  ;;  %v1940_v14 = vrot.slane %v3778_v29, 1 }
  0xb8   : > { %3045 = vmatprep.mubr.msk.bf16.mxu1 %vm1492_vm6, %v1353_v55 }
  0xb9   : > { %v1057_v44 = vpop.permute.xlu1 %1056  ;;  %3046 = vmatmul.mubr.msk.bf16.gmra.mrb[4].mxu1 %vm1492_vm6, %v1363_v57  ;;  %v1055_v60 = vpop.permute.xlu0 %1054  ;;  %v1941_v57 = vrot.slane %v3774_v21, 1 }
  0xba   : > { %v3845_v62 = vsel %vm1127_vm5, %v1096_v35, %v1057_v44  ;;  %v3848_v63 = vsel %vm1127_vm5, %v1093_v58, %v1055_v60  ;;  %v1943_v60 = vrot.slane %v3793_v8, 1 }
  0xbb   : > { %3083 = vmatprep.mubr.msk.bf16.mxu0 %vm1492_vm6, %v3848_v63  ;;  %v1376_v16 = vshll.u32 %v3845_v62, 16  ;;  %v1366_v3 = vshll.u32 %v3848_v63, 16  ;;  %v1374_v27 = vshrl.u32 %v3845_v62, 16  ;;  %v1364_v30 = vshrl.u32 %v3848_v63, 16 }
  0xbc   : > { %3084 = vmatmul.mubr.msk.bf16.gmra.mrb[8].mxu0 %vm1492_vm6, %v3845_v62 }
  0xbd   : > { %v1189_v1 = vpop.permute.xlu1 %1188  ;;  %v1187_v2 = vpop.permute.xlu0 %1186  ;;  %v1378_v6 = vrot.slane %v1376_v16, 1  ;;  %v1368_v10 = vrot.slane %v1366_v3, 1  ;;  %v1944_v16 = vrot.slane %v3787_v36, 1  ;;  %v1947_v3 = vrot.slane %v3830_v38, 1 }
  0xbe   : > { %v1260_v11 = vsel %vm1078_vm4, %v3493_v22, %v1189_v1  ;;  %v1257_v20 = vsel %vm1078_vm4, %v3428_v26, %v1187_v2 }
  0xbf   : > { %v1379_v22 = vor.u32 %v1378_v6, %v1374_v27  ;;  %v1369_v42 = vor.u32 %v1368_v10, %v1364_v30  ;;  %v1945_v36 = vsel %vm1939_vm8, %v1943_v60, %v1944_v16 }
  0xc1   : > { %v1222_v23 = vpop.permute.xlu1 %1221  ;;  %v1220_v52 = vpop.permute.xlu0 %1219 }
  0xc2   : > { %v3861_v40 = vsel %vm1127_vm5, %v1260_v11, %v1222_v23  ;;  %v3864_v24 = vsel %vm1127_vm5, %v1257_v20, %v1220_v52  ;;  %v1946_v23 = vrot.slane %v3811_v4, 1 }
  0xc3   : > { %v1380_v32 = vshll.u32 %v3861_v40, 16  ;;  %v1370_v59 = vshll.u32 %v3864_v24, 16 }
  0xc5   : > { %v1382_v56 = vrot.slane %v1380_v32, 1  ;;  %v1372_v26 = vrot.slane %v1370_v59, 1  ;;  %v1028_v34 = vpop.permute.xlu1 %1027  ;;  %v1026_v13 = vpop.permute.xlu0 %1025 }
  0xc6   : > { %v1102_v47 = vsel %vm1078_vm4, %v3515_v46, %v1028_v34  ;;  %v1099_v49 = vsel %vm1078_vm4, %v3504_v33, %v1026_v13  ;;  %v1942_v33 = vsel %vm1939_vm8, %v1940_v14, %v1941_v57 }
  0xc7   : > { %v1373_v12 = vsel %vm1323_vm7, %v1369_v42, %v1372_v26  ;;  %v1383_v7 = vsel %vm1323_vm7, %v1379_v22, %v1382_v56  ;;  %v1950_v26 = vrot.slane %v3827_v37, 1 }
  0xc8   : > { %3049 = vmatprep.mubr.msk.bf16.mxu1 %vm1492_vm6, %v1373_v12  ;;  %v1953_v12 = vrot.slane %v3864_v24, 1 }
  0xc9   : > { %v1061_v54 = vpop.permute.xlu1 %1060  ;;  %3050 = vmatmul.mubr.msk.bf16.gmra.mrb[8].mxu1 %vm1492_vm6, %v1383_v7  ;;  %v1059_v55 = vpop.permute.xlu0 %1058  ;;  %v1949_v7 = vrot.slane %v3808_v19, 1 }
  0xca   : > { %v3881_v35 = vsel %vm1127_vm5, %v1102_v47, %v1061_v54  ;;  %v3884_v29 = vsel %vm1127_vm5, %v1099_v49, %v1059_v55  ;;  %v1952_v54 = vrot.slane %v3848_v63, 1 }
  0xcb   : > { %3087 = vmatprep.mubr.msk.bf16.mxu0 %vm1492_vm6, %v3884_v29  ;;  %v1396_v46 = vshll.u32 %v3881_v35, 16  ;;  %v1386_v58 = vshll.u32 %v3884_v29, 16  ;;  %v1394_v38 = vshrl.u32 %v3881_v35, 16  ;;  %v1384_v27 = vshrl.u32 %v3884_v29, 16 }
  0xcc   : > { %3088 = vmatmul.mubr.msk.bf16.gmra.mrb[12].mxu0 %vm1492_vm6, %v3881_v35  ;;  %v1951_v19 = vsel %vm1939_vm8, %v1949_v7, %v1950_v26 }
  0xcd   : > { %v1193_v44 = vpop.permute.xlu1 %1192  ;;  %3109 = vmatprep.mubr.msk.bf16.mxu0 %vm1492_vm6, %v1942_v33  ;;  %v1191_v21 = vpop.permute.xlu0 %1190  ;;  %v1398_v1 = vrot.slane %v1396_v46, 1  ;;  %v1388_v2 = vrot.slane %v1386_v58, 1  ;;  %v1956_v46 = vrot.slane %v3861_v40, 1  ;;  %v1955_v58 = vrot.slane %v3845_v62, 1 }
  0xce   : > { %v1266_v6 = vsel %vm1078_vm4, %v3535_v61, %v1193_v44  ;;  %v1263_v10 = vsel %vm1078_vm4, %v3526_v50, %v1191_v21  ;;  %v1948_v50 = vsel %vm1939_vm8, %v1946_v23, %v1947_v3 }
  0xcf   : > { %v1399_v32 = vor.u32 %v1398_v1, %v1394_v38  ;;  %v1389_v4 = vor.u32 %v1388_v2, %v1384_v27  ;;  %v1957_v40 = vsel %vm1939_vm8, %v1955_v58, %v1956_v46 }
  0xd1   : > { %v1226_v11 = vpop.permute.xlu1 %1225  ;;  %v1224_v20 = vpop.permute.xlu0 %1223 }
  0xd2   : > { %v3903_v52 = vsel %vm1127_vm5, %v1266_v6, %v1226_v11  ;;  %v1304_v8 = vsel %vm1127_vm5, %v1263_v10, %v1224_v20  ;;  %v1958_v6 = vrot.slane %v3884_v29, 1 }
  0xd3   : > { %v1400_v61 = vshll.u32 %v3903_v52, 16  ;;  %v1390_v30 = vshll.u32 %v1304_v8, 16  ;;  %v1959_v44 = vrot.slane %v1304_v8, 1 }
  0xd4   : > { %3110 = vmatmul.mubr.msk.bf16.vlgmr.msra.gmra.mrb[0].mxu0 %vm1492_vm6, %v1945_v36 }
  0xd5   : > { %v1402_v59 = vrot.slane %v1400_v61, 1  ;;  %v1392_v22 = vrot.slane %v1390_v30, 1  ;;  %v1032_v42 = vpop.permute.xlu1 %1031  ;;  %3113 = vmatprep.mubr.msk.bf16.mxu0 %vm1492_vm6, %v1948_v50  ;;  %v1030_v56 = vpop.permute.xlu0 %1029  ;;  %v1962_v30 = vrot.slane %v3903_v52, 1 }
  0xd6   : > { %v1108_v14 = vsel %vm1078_vm4, %v3564_v31, %v1032_v42  ;;  %v1105_v47 = vsel %vm1078_vm4, %v3551_v15, %v1030_v56  ;;  %v1954_v31 = vsel %vm1939_vm8, %v1952_v54, %v1953_v12 }
  0xd7   : > { %v1393_v34 = vsel %vm1323_vm7, %v1389_v4, %v1392_v22  ;;  %v1403_v13 = vsel %vm1323_vm7, %v1399_v32, %v1402_v59  ;;  %v1961_v59 = vrot.slane %v3881_v35, 1 }
  0xd8   : > { %3053 = vmatprep.mubr.msk.bf16.mxu1 %vm1492_vm6, %v1393_v34 }
  0xd9   : > { %v1065_v49 = vpop.permute.xlu1 %1064  ;;  %3054 = vmatmul.mubr.msk.bf16.gmra.mrb[12].mxu1 %vm1492_vm6, %v1403_v13  ;;  %v1063_v37 = vpop.permute.xlu0 %1062  ;;  %v1963_v35 = vsel %vm1939_vm8, %v1961_v59, %v1962_v30 }
  0xda   : > { %v3926_v55 = vsel %vm1127_vm5, %v1108_v14, %v1065_v49  ;;  %v3929_v24 = vsel %vm1127_vm5, %v1105_v47, %v1063_v37 }
  0xdb   : > { %v1416_v15 = vshll.u32 %v3926_v55, 16  ;;  %v1406_v57 = vshll.u32 %v3929_v24, 16  ;;  %v1414_v62 = vshrl.u32 %v3926_v55, 16  ;;  %v1404_v20 = vshrl.u32 %v3929_v24, 16 }
  0xdc   : > { %3114 = vmatmul.mubr.msk.bf16.gmra.mrb[4].mxu0 %vm1492_vm6, %v1951_v19  ;;  %v1964_v52 = vrot.slane %v3929_v24, 1  ;;  %v1967_v49 = vrot.slane %v3926_v55, 1 }
  0xdd   : > { %v1197_v33 = vpop.permute.xlu1 %1196  ;;  %3117 = vmatprep.mubr.msk.bf16.mxu0 %vm1492_vm6, %v1954_v31  ;;  %v1195_v63 = vpop.permute.xlu0 %1194  ;;  %v1418_v21 = vrot.slane %v1416_v15, 1  ;;  %v1408_v60 = vrot.slane %v1406_v57, 1 }
  0xde   : > { %v1272_v16 = vsel %vm1078_vm4, %v3592_v53, %v1197_v33  ;;  %v1269_v3 = vsel %vm1078_vm4, %v3583_v43, %v1195_v63  ;;  %v1960_v43 = vsel %vm1939_vm8, %v1958_v6, %v1959_v44 }
  0xdf   : > { %v1419_v53 = vor.u32 %v1418_v21, %v1414_v62  ;;  %v1409_v36 = vor.u32 %v1408_v60, %v1404_v20 }
  0xe1   : > { %v1230_v1 = vpop.permute.xlu1 %1229  ;;  %v1228_v2 = vpop.permute.xlu0 %1227 }
  0xe2   : > { %v1310_v10 = vsel %vm1127_vm5, %v1272_v16, %v1230_v1  ;;  %v1308_v11 = vsel %vm1127_vm5, %v1269_v3, %v1228_v2 }
  0xe3   : > { %v1420_v23 = vshll.u32 %v1310_v10, 16  ;;  %v1410_v8 = vshll.u32 %v1308_v11, 16  ;;  %v1965_v4 = vrot.slane %v1308_v11, 1 }
  0xe4   : > { %3118 = vmatmul.mubr.msk.bf16.gmra.mrb[8].mxu0 %vm1492_vm6, %v1957_v40 }
  0xe5   : > { %v1422_v38 = vrot.slane %v1420_v23, 1  ;;  %v1412_v29 = vrot.slane %v1410_v8, 1  ;;  %v1036_v27 = vpop.permute.xlu1 %1035  ;;  %3121 = vmatprep.mubr.msk.bf16.mxu0 %vm1492_vm6, %v1960_v43  ;;  %v1034_v61 = vpop.permute.xlu0 %1033 }
  0xe6   : > { %v1114_v22 = vsel %vm1078_vm4, %v3630_v28, %v1036_v27  ;;  %v1111_v42 = vsel %vm1078_vm4, %v3619_v17, %v1034_v61  ;;  %v1966_v17 = vsel %vm1939_vm8, %v1964_v52, %v1965_v4  ;;  %v1968_v28 = vrot.slane %v1310_v10, 1 }
  0xe7   : > { %v1413_v50 = vsel %vm1323_vm7, %v1409_v36, %v1412_v29  ;;  %v1423_v32 = vsel %vm1323_vm7, %v1419_v53, %v1422_v38 }
  0xe8   : > { %3057 = vmatprep.mubr.msk.bf16.mxu1 %vm1492_vm6, %v1413_v50  ;;  %v1969_v33 = vsel %vm1939_vm8, %v1967_v49, %v1968_v28 }
  0xe9   : > { %v1069_v56 = vpop.permute.xlu1 %1068  ;;  %3058 = vmatmul.mubr.msk.bf16.gmra.mrb[16].mxu1 %vm1492_vm6, %v1423_v32  ;;  %v1067_v26 = vpop.permute.xlu0 %1066 }
  0xea   : > { %v3964_v34 = vsel %vm1127_vm5, %v1114_v22, %v1069_v56  ;;  %v3967_v13 = vsel %vm1127_vm5, %v1111_v42, %v1067_v26 }
  0xeb   : > { %v1436_v12 = vshll.u32 %v3964_v34, 16  ;;  %v1426_v7 = vshll.u32 %v3967_v13, 16  ;;  %v1434_v63 = vshrl.u32 %v3964_v34, 16  ;;  %v1424_v46 = vshrl.u32 %v3967_v13, 16 }
  0xec   : > { %3122 = vmatmul.mubr.msk.bf16.gmra.mrb[12].mxu0 %vm1492_vm6, %v1963_v35  ;;  %v1970_v21 = vrot.slane %v3967_v13, 1  ;;  %v1973_v23 = vrot.slane %v3964_v34, 1 }
  0xed   : > { %v1201_v14 = vpop.permute.xlu1 %1200  ;;  %3125 = vmatprep.mubr.msk.bf16.mxu0 %vm1492_vm6, %v1966_v17  ;;  %v1199_v47 = vpop.permute.xlu0 %1198  ;;  %v1438_v37 = vrot.slane %v1436_v12, 1  ;;  %v1428_v54 = vrot.slane %v1426_v7, 1 }
  0xee   : > { %v1278_v19 = vsel %vm1078_vm4, %v3652_v48, %v1201_v14  ;;  %v1275_v31 = vsel %vm1078_vm4, %v3646_v39, %v1199_v47 }
  0xef   : > { %v1439_v3 = vor.u32 %v1438_v37, %v1434_v63  ;;  %v1429_v39 = vor.u32 %v1428_v54, %v1424_v46 }
  0xf1   : > { %v1234_v15 = vpop.permute.xlu1 %1233  ;;  %v1232_v57 = vpop.permute.xlu0 %1231 }
  0xf2   : > { %v1314_v58 = vsel %vm1127_vm5, %v1278_v19, %v1234_v15  ;;  %v1312_v44 = vsel %vm1127_vm5, %v1275_v31, %v1232_v57 }
  0xf3   : > { %v1440_v60 = vshll.u32 %v1314_v58, 16  ;;  %v1430_v16 = vshll.u32 %v1312_v44, 16  ;;  %v1971_v48 = vrot.slane %v1312_v44, 1  ;;  %v1974_v40 = vrot.slane %v1314_v58, 1 }
  0xf4   : > { %3126 = vmatmul.mubr.msk.bf16.gmra.mrb[16].mxu0 %vm1492_vm6, %v1969_v33 }
  0xf5   : > { %v1442_v1 = vrot.slane %v1440_v60, 1  ;;  %v1432_v2 = vrot.slane %v1430_v16, 1  ;;  %v1040_v6 = vpop.permute.xlu1 %1039  ;;  %v1038_v10 = vpop.permute.xlu0 %1037  ;;  %v1972_v11 = vsel %vm1939_vm8, %v1970_v21, %v1971_v48  ;;  %v1975_v27 = vsel %vm1939_vm8, %v1973_v23, %v1974_v40 }
  0xf6   : > { %3129 = vmatprep.mubr.msk.bf16.mxu0 %vm1492_vm6, %v1972_v11  ;;  %v1120_v8 = vsel %vm1078_vm4, %v3684_v25, %v1040_v6  ;;  %v1117_v43 = vsel %vm1078_vm4, %v3666_v5, %v1038_v10 }
  0xf7   : > { %v1433_v62 = vsel %vm1323_vm7, %v1429_v39, %v1432_v2  ;;  %v1443_v20 = vsel %vm1323_vm7, %v1439_v3, %v1442_v1 }
  0xf8   : > { %3061 = vmatprep.mubr.msk.bf16.mxu1 %vm1492_vm6, %v1433_v62 }
  0xf9   : > { %v1073_v53 = vpop.permute.xlu1 %1072  ;;  %3062 = vmatmul.mubr.msk.bf16.gmra.mrb[20].mxu1 %vm1492_vm6, %v1443_v20  ;;  %v1071_v36 = vpop.permute.xlu0 %1070 }
  0xfa   : > { %v3999_v38 = vsel %vm1127_vm5, %v1120_v8, %v1073_v53  ;;  %v4002_v29 = vsel %vm1127_vm5, %v1117_v43, %v1071_v36 }
  0xfb   : > { %v1456_v61 = vshll.u32 %v3999_v38, 16  ;;  %v1446_v30 = vshll.u32 %v4002_v29, 16  ;;  %v1454_v4 = vshrl.u32 %v3999_v38, 16  ;;  %v1979_v59 = vrot.slane %v3999_v38, 1 }
  0xfc   : > { %3130 = vmatmul.mubr.msk.bf16.gmra.mrb[20].mxu0 %vm1492_vm6, %v1975_v27  ;;  %v1444_v52 = vshrl.u32 %v4002_v29, 16  ;;  %v1976_v35 = vrot.slane %v4002_v29, 1 }
  0xfd   : > { %v1205_v25 = vpop.permute.xlu1 %1204  ;;  %v1203_v5 = vpop.permute.xlu0 %1202  ;;  %v1458_v50 = vrot.slane %v1456_v61, 1  ;;  %v1448_v32 = vrot.slane %v1446_v30, 1 }
  0xfe   : > { %v1284_v22 = vsel %vm1078_vm4, %v3706_v45, %v1205_v25  ;;  %v1281_v42 = vsel %vm1078_vm4, %v3696_v41, %v1203_v5 }
  0xff   : > { %v1459_v49 = vor.u32 %v1458_v50, %v1454_v4  ;;  %v1449_v37 = vor.u32 %v1448_v32, %v1444_v52 }
 0x101   : > { %v1238_v56 = vpop.permute.xlu1 %1237  ;;  %v1236_v26 = vpop.permute.xlu0 %1235 }
 0x102   : > { %v1318_v12 = vsel %vm1127_vm5, %v1284_v22, %v1238_v56  ;;  %v1316_v17 = vsel %vm1127_vm5, %v1281_v42, %v1236_v26 }
 0x103   : > { %v1460_v28 = vshll.u32 %v1318_v12, 16  ;;  %v1980_v7 = vrot.slane %v1318_v12, 1  ;;  %v1450_v14 = vshll.u32 %v1316_v17, 16  ;;  %v1977_v47 = vrot.slane %v1316_v17, 1 }
 0x105   : > { %v1462_v45 = vrot.slane %v1460_v28, 1  ;;  %v1452_v54 = vrot.slane %v1450_v14, 1  ;;  %v1044_v19 = vpop.permute.xlu1 %1043  ;;  %v1042_v41 = vpop.permute.xlu0 %1041  ;;  %v1978_v31 = vsel %vm1939_vm8, %v1976_v35, %v1977_v47  ;;  %v1981_v15 = vsel %vm1939_vm8, %v1979_v59, %v1980_v7 }
 0x106   : > { %3133 = vmatprep.mubr.msk.bf16.mxu0 %vm1492_vm6, %v1978_v31  ;;  %v1126_v63 = vsel %vm1078_vm4, %v3726_v0, %v1044_v19  ;;  %v1123_v46 = vsel %vm1078_vm4, %v3716_v51, %v1042_v41 }
 0x107   : > { %3134 = vmatmul.mubr.msk.bf16.gmra.mrb[24].mxu0 %vm1492_vm6, %v1981_v15  ;;  %v1453_v57 = vsel %vm1323_vm7, %v1449_v37, %v1452_v54  ;;  %v1463_v33 = vsel %vm1323_vm7, %v1459_v49, %v1462_v45 }
 0x108   : > { %3065 = vmatprep.mubr.msk.bf16.mxu1 %vm1492_vm6, %v1453_v57 }
 0x109   : > { %v1077_v58 = vpop.permute.xlu1 %1076  ;;  %3066 = vmatmul.mubr.msk.bf16.gmra.mrb[24].mxu1 %vm1492_vm6, %v1463_v33  ;;  %v1075_v44 = vpop.permute.xlu0 %1074 }
 0x10a   : > { %v1159_v21 = vsel %vm1127_vm5, %v1126_v63, %v1077_v58  ;;  %v1157_v60 = vsel %vm1127_vm5, %v1123_v46, %v1075_v44 }
 0x10b   : > { %v1476_v16 = vshll.u32 %v1159_v21, 16  ;;  %v1466_v48 = vshll.u32 %v1157_v60, 16  ;;  %v1474_v6 = vshrl.u32 %v1159_v21, 16  ;;  %v1985_v10 = vrot.slane %v1159_v21, 1 }
 0x10c   : > { %v1464_v62 = vshrl.u32 %v1157_v60, 16  ;;  %v1982_v20 = vrot.slane %v1157_v60, 1 }
 0x10d   : > { %v1209_v3 = vpop.permute.xlu1 %1208  ;;  %v1207_v39 = vpop.permute.xlu0 %1206  ;;  %v1478_v1 = vrot.slane %v1476_v16, 1  ;;  %v1468_v2 = vrot.slane %v1466_v48, 1 }
 0x10e   : > { %v1290_v0 = vsel %vm1078_vm4, %v3744_v18, %v1209_v3  ;;  %v1287_v51 = vsel %vm1078_vm4, %v3736_v9, %v1207_v39 }
 0x10f   : > { %v1479_v61 = vor.u32 %v1478_v1, %v1474_v6  ;;  %v1469_v30 = vor.u32 %v1468_v2, %v1464_v62 }
 0x111   : > { %v1242_v11 = vpop.permute.xlu1 %1241  ;;  %v1240_v40 = vpop.permute.xlu0 %1239 }
 0x112   : > { %v1322_v23 = vsel %vm1127_vm5, %v1290_v0, %v1242_v11  ;;  %v1320_v8 = vsel %vm1127_vm5, %v1287_v51, %v1240_v40 }
 0x113   : > { %v1480_v43 = vshll.u32 %v1322_v23, 16  ;;  %v1986_v53 = vrot.slane %v1322_v23, 1  ;;  %v1470_v36 = vshll.u32 %v1320_v8, 16  ;;  %v1983_v27 = vrot.slane %v1320_v8, 1 }
 0x115   : > { %v1482_v25 = vrot.slane %v1480_v43, 1  ;;  %v1472_v5 = vrot.slane %v1470_v36, 1  ;;  %v1984_v18 = vsel %vm1939_vm8, %v1982_v20, %v1983_v27  ;;  %v1987_v9 = vsel %vm1939_vm8, %v1985_v10, %v1986_v53 }
 0x116   : > { %3137 = vmatprep.mubr.msk.bf16.mxu0 %vm1492_vm6, %v1984_v18 }
 0x117   : > { %3138 = vmatmul.mubr.msk.bf16.gmra.mrb[28].mxu0 %vm1492_vm6, %v1987_v9  ;;  %v1473_v50 = vsel %vm1323_vm7, %v1469_v30, %v1472_v5  ;;  %v1483_v32 = vsel %vm1323_vm7, %v1479_v61, %v1482_v25 }
 0x118   : > { %3069 = vmatprep.mubr.msk.bf16.mxu1 %vm1492_vm6, %v1473_v50 }
 0x119   : > { %3070 = vmatmul.mubr.msk.bf16.gmra.mrb[28].mxu1 %vm1492_vm6, %v1483_v32 }
 0x11a   : > { %3091 = vmatprep.mubr.msk.bf16.mxu1 %vm1492_vm6, %v3929_v24 }
 0x121   : > { %3092 = vmatmul.mubr.msk.bf16.vlgmr.msra.gmra.mrb[16].mxu1 %vm1492_vm6, %v3926_v55 }
 0x122   : > { %3095 = vmatprep.mubr.msk.bf16.mxu1 %vm1492_vm6, %v3967_v13 }
 0x129   : > { %3096 = vmatmul.mubr.msk.bf16.gmra.mrb[20].mxu1 %vm1492_vm6, %v3964_v34 }
 0x12a   : > { %3099 = vmatprep.mubr.msk.bf16.mxu1 %vm1492_vm6, %v4002_v29 }
 0x131   : > { %3100 = vmatmul.mubr.msk.bf16.gmra.mrb[24].mxu1 %vm1492_vm6, %v3999_v38 }
 0x132   : > { %3103 = vmatprep.mubr.msk.bf16.mxu1 %vm1492_vm6, %v1157_v60 }
 0x139   : > { %3104 = vmatmul.mubr.msk.bf16.gmra.mrb[28].mxu1 %vm1492_vm6, %v1159_v21 }
 0x182   : > { %v3043_v24 = vpop.f32.mrb[0].mxu1 }
 0x183   : > { %v1579_v4 = vpop.f32.mrb[1].mxu1 }
 0x184   : > { %v3044_v55 = vpop.f32.mrb[2].mxu1 }
 0x185   : > { %v1582_v59 = vpop.f32.mrb[3].mxu1 }
 0x18c   : > { %v3047_v22 = vpop.f32.mrb[4].mxu1 }
 0x18d   : > { %v1595_v13 = vpop.f32.mrb[5].mxu1 }
 0x18e   : > { %v3048_v42 = vpop.f32.mrb[6].mxu1 }
 0x18f   : > { %v1598_v56 = vpop.f32.mrb[7].mxu1 }
 0x19c   : > { %v4060_v34 = vpop.f32.mrb[8].mxu1 }
 0x19d   : > { %v4062_v26 = vpop.f32.mrb[9].mxu1 }
 0x19e   : > { %v4064_v29 = vpop.f32.mrb[10].mxu1 }
 0x19f   : > { %v4066_v38 = vpop.f32.mrb[11].mxu1 }
 0x1a7   : > { %v3111_v52 = vpop.f32.mrb[0].mxu0 }
 0x1a8   : > { %v3143_v35 = vadd.f32 %v3111_v52, %v3043_v24  ;;  %v2081_v12 = vpop.f32.mrb[1].mxu0 }
 0x1a9   : > { %v3144_v17 = vadd.f32 %v2081_v12, %v1579_v4  ;;  %v3112_v28 = vpop.f32.mrb[2].mxu0 }
 0x1aa   : > { %v2869_v7 = vpack.c.bf16 %v3143_v35, %v3143_v35  ;;  %v3145_v14 = vadd.f32 %v3112_v28, %v3044_v55  ;;  %v2084_v47 = vpop.f32.mrb[3].mxu0  ;;  %v2472_v54 = vmul.f32 %v3143_v35, %v3143_v35  ;;  %v2404_v21 = vsel %vm1078_vm4, %v3143_v35, 0.0 }
 0x1ab   : > { %v2867_v49 = vpack.c.bf16 %v3144_v17, %v3144_v17  ;;  %v2470_v37 = vmul.f32 %v3144_v17, %v3144_v17  ;;  %v3146_v45 = vadd.f32 %v2084_v47, %v1582_v59  ;;  %v2401_v31 = vsel %vm1078_vm4, %v3144_v17, 0.0 }
 0x1ac   : > { %2371 = vst.msk [vmem:[%s4072_s19 + $0x8] sm:$0xf] %vm2368_vm9, %v2869_v7  ;;  %v2870_v19 = vpack.c.bf16 %v3145_v14, %v3145_v14  ;;  %v4076_v41 = vpop.f32.mrb[12].mxu1  ;;  %v2473_v46 = vmul.f32 %v3145_v14, %v3145_v14  ;;  %v2505_v10 = vsel %vm1078_vm4, %v2472_v54, 0.0  ;;  %v2406_v11 = vsel %vm1078_vm4, %v3145_v14, 0.0 }
 0x1ad   : > { %2369 = vst.msk [vmem:[%s4072_s19] sm:$0xf] %vm2368_vm9, %v2867_v49  ;;  %v2868_v15 = vpack.c.bf16 %v3146_v45, %v3146_v45  ;;  %v2402_v57 = vsel %vm1078_vm4, %v3146_v45, 0.0  ;;  %v2471_v33 = vmul.f32 %v3146_v45, %v3146_v45  ;;  %v4082_v63 = vpop.f32.mrb[13].mxu1  ;;  %v2502_v60 = vsel %vm1078_vm4, %v2470_v37, 0.0 }
 0x1ae   : > { %2372 = vst.msk [vmem:[%s4072_s19 + $0xc] sm:$0xf] %vm2368_vm9, %v2870_v19  ;;  %v2403_v58 = vadd.f32 %v2402_v57, %v2401_v31  ;;  %v4086_v44 = vpop.f32.mrb[14].mxu1  ;;  %v2507_v40 = vsel %vm1078_vm4, %v2473_v46, 0.0 }
 0x1af   : > { %2370 = vst.msk [vmem:[%s4072_s19 + $0x4] sm:$0xf] %vm2368_vm9, %v2868_v15  ;;  %v2503_v16 = vsel %vm1078_vm4, %v2471_v33, 0.0  ;;  %v4093_v48 = vpop.f32.mrb[15].mxu1  ;;  %v3115_v3 = vpop.f32.mrb[4].mxu0 }
 0x1b0   : > { %v2405_v39 = vadd.f32 %v2404_v21, %v2403_v58  ;;  %v2504_v1 = vadd.f32 %v2503_v16, %v2502_v60  ;;  %v3147_v2 = vadd.f32 %v3115_v3, %v3047_v22  ;;  %v2097_v6 = vpop.f32.mrb[5].mxu0 }
 0x1b1   : > { %v3148_v0 = vadd.f32 %v2097_v6, %v1595_v13  ;;  %v3116_v51 = vpop.f32.mrb[6].mxu0 }
 0x1b2   : > { %v2506_v62 = vadd.f32 %v2505_v10, %v2504_v1  ;;  %v2873_v20 = vpack.c.bf16 %v3147_v2, %v3147_v2  ;;  %v2100_v23 = vpop.f32.mrb[7].mxu0  ;;  %v2407_v43 = vadd.f32 %v2406_v11, %v2405_v39  ;;  %v3149_v61 = vadd.f32 %v3116_v51, %v3048_v42 }
 0x1b3   : > { %v2871_v8 = vpack.c.bf16 %v3148_v0, %v3148_v0  ;;  %v2408_v53 = vsel %vm1078_vm4, %v3148_v0, 0.0  ;;  %v2474_v36 = vmul.f32 %v3148_v0, %v3148_v0  ;;  %v3150_v30 = vadd.f32 %v2100_v23, %v1598_v56 }
 0x1b4   : > { %2375 = vst.msk [vmem:[%s4072_s19 + $0x18] sm:$0xf] %vm2368_vm9, %v2873_v20  ;;  %v2508_v27 = vadd.f32 %v2507_v40, %v2506_v62  ;;  %v2409_v25 = vadd.f32 %v2408_v53, %v2407_v43  ;;  %v2476_v18 = vmul.f32 %v3147_v2, %v3147_v2  ;;  %v2874_v50 = vpack.c.bf16 %v3149_v61, %v3149_v61 }
 0x1b5   : > { %2373 = vst.msk [vmem:[%s4072_s19 + $0x10] sm:$0xf] %vm2368_vm9, %v2871_v8  ;;  %v2509_v5 = vsel %vm1078_vm4, %v2474_v36, 0.0  ;;  %v2872_v32 = vpack.c.bf16 %v3150_v30, %v3150_v30  ;;  %v2410_v24 = vsel %vm1078_vm4, %v3150_v30, 0.0  ;;  %v2475_v4 = vmul.f32 %v3150_v30, %v3150_v30 }
 0x1b6   : > { %v2510_v9 = vadd.f32 %v2509_v5, %v2508_v27  ;;  %2376 = vst.msk [vmem:[%s4072_s19 + $0x1c] sm:$0xf] %vm2368_vm9, %v2874_v50  ;;  %v2411_v59 = vadd.f32 %v2410_v24, %v2409_v25  ;;  %v2412_v42 = vsel %vm1078_vm4, %v3147_v2, 0.0  ;;  %v2477_v56 = vmul.f32 %v3149_v61, %v3149_v61 }
 0x1b7   : > { %v3119_v55 = vpop.f32.mrb[8].mxu0  ;;  %2374 = vst.msk [vmem:[%s4072_s19 + $0x14] sm:$0xf] %vm2368_vm9, %v2872_v32  ;;  %v2511_v52 = vsel %vm1078_vm4, %v2475_v4, 0.0  ;;  %v2513_v17 = vsel %vm1078_vm4, %v2476_v18, 0.0 }
 0x1b8   : > { %v3151_v22 = vadd.f32 %v3119_v55, %v4060_v34  ;;  %v2113_v13 = vpop.f32.mrb[9].mxu0  ;;  %v2413_v28 = vadd.f32 %v2412_v42, %v2411_v59  ;;  %v2512_v7 = vadd.f32 %v2511_v52, %v2510_v9  ;;  %v2414_v34 = vsel %vm1078_vm4, %v3149_v61, 0.0 }
 0x1b9   : > { %v3152_v35 = vadd.f32 %v2113_v13, %v4062_v26  ;;  %v3120_v12 = vpop.f32.mrb[10].mxu0  ;;  %v2515_v15 = vsel %vm1078_vm4, %v2477_v56, 0.0 }
 0x1ba   : > { %v2877_v14 = vpack.c.bf16 %v3151_v22, %v3151_v22  ;;  %v2116_v47 = vpop.f32.mrb[11].mxu0  ;;  %v2514_v54 = vadd.f32 %v2513_v17, %v2512_v7  ;;  %v2415_v19 = vadd.f32 %v2414_v34, %v2413_v28  ;;  %v3153_v26 = vadd.f32 %v3120_v12, %v4064_v29 }
 0x1bb   : > { %v2875_v49 = vpack.c.bf16 %v3152_v35, %v3152_v35  ;;  %v2416_v37 = vsel %vm1078_vm4, %v3152_v35, 0.0  ;;  %v2478_v45 = vmul.f32 %v3152_v35, %v3152_v35  ;;  %v3154_v31 = vadd.f32 %v2116_v47, %v4066_v38 }
 0x1bc   : > { %2379 = vst.msk [vmem:[%s4072_s19 + $0x28] sm:$0xf] %vm2368_vm9, %v2877_v14  ;;  %v2480_v33 = vmul.f32 %v3151_v22, %v3151_v22  ;;  %v2417_v46 = vadd.f32 %v2416_v37, %v2415_v19  ;;  %v2516_v58 = vadd.f32 %v2515_v15, %v2514_v54  ;;  %v2878_v21 = vpack.c.bf16 %v3153_v26, %v3153_v26 }
 0x1bd   : > { %2377 = vst.msk [vmem:[%s4072_s19 + $0x20] sm:$0xf] %vm2368_vm9, %v2875_v49  ;;  %v2517_v57 = vsel %vm1078_vm4, %v2478_v45, 0.0  ;;  %v2876_v60 = vpack.c.bf16 %v3154_v31, %v3154_v31  ;;  %v2418_v16 = vsel %vm1078_vm4, %v3154_v31, 0.0  ;;  %v2479_v3 = vmul.f32 %v3154_v31, %v3154_v31 }
 0x1be   : > { %v2518_v1 = vadd.f32 %v2517_v57, %v2516_v58  ;;  %2380 = vst.msk [vmem:[%s4072_s19 + $0x2c] sm:$0xf] %vm2368_vm9, %v2878_v21  ;;  %v2419_v29 = vadd.f32 %v2418_v16, %v2417_v46  ;;  %v2420_v6 = vsel %vm1078_vm4, %v3151_v22, 0.0  ;;  %v2481_v10 = vmul.f32 %v3153_v26, %v3153_v26 }
 0x1bf   : > { %v3123_v39 = vpop.f32.mrb[12].mxu0  ;;  %2378 = vst.msk [vmem:[%s4072_s19 + $0x24] sm:$0xf] %vm2368_vm9, %v2876_v60  ;;  %v2519_v0 = vsel %vm1078_vm4, %v2479_v3, 0.0  ;;  %v2521_v40 = vsel %vm1078_vm4, %v2480_v33, 0.0 }
 0x1c0   : > { %v3155_v38 = vadd.f32 %v3123_v39, %v4076_v41  ;;  %v2129_v2 = vpop.f32.mrb[13].mxu0  ;;  %v2421_v62 = vadd.f32 %v2420_v6, %v2419_v29  ;;  %v2520_v20 = vadd.f32 %v2519_v0, %v2518_v1  ;;  %v2422_v41 = vsel %vm1078_vm4, %v3153_v26, 0.0 }
 0x1c1   : > { %v3156_v51 = vadd.f32 %v2129_v2, %v4082_v63  ;;  %v3124_v11 = vpop.f32.mrb[14].mxu0  ;;  %v2523_v25 = vsel %vm1078_vm4, %v2481_v10, 0.0 }
 0x1c2   : > { %v2881_v23 = vpack.c.bf16 %v3155_v38, %v3155_v38  ;;  %v2132_v8 = vpop.f32.mrb[15].mxu0  ;;  %v2522_v27 = vadd.f32 %v2521_v40, %v2520_v20  ;;  %v2423_v61 = vadd.f32 %v2422_v41, %v2421_v62  ;;  %v3157_v63 = vadd.f32 %v3124_v11, %v4086_v44 }
 0x1c3   : > { %v2879_v43 = vpack.c.bf16 %v3156_v51, %v3156_v51  ;;  %v2424_v53 = vsel %vm1078_vm4, %v3156_v51, 0.0  ;;  %v2482_v36 = vmul.f32 %v3156_v51, %v3156_v51  ;;  %v3158_v30 = vadd.f32 %v2132_v8, %v4093_v48 }
 0x1c4   : > { %2383 = vst.msk [vmem:[%s4072_s19 + $0x38] sm:$0xf] %vm2368_vm9, %v2881_v23  ;;  %v2425_v18 = vadd.f32 %v2424_v53, %v2423_v61  ;;  %v2524_v9 = vadd.f32 %v2523_v25, %v2522_v27  ;;  %v2882_v50 = vpack.c.bf16 %v3157_v63, %v3157_v63  ;;  %v2484_v32 = vmul.f32 %v3155_v38, %v3155_v38 }
 0x1c5   : > { %2381 = vst.msk [vmem:[%s4072_s19 + $0x30] sm:$0xf] %vm2368_vm9, %v2879_v43  ;;  %v2525_v5 = vsel %vm1078_vm4, %v2482_v36, 0.0  ;;  %v2880_v24 = vpack.c.bf16 %v3158_v30, %v3158_v30  ;;  %v2426_v4 = vsel %vm1078_vm4, %v3158_v30, 0.0  ;;  %v2483_v55 = vmul.f32 %v3158_v30, %v3158_v30 }
 0x1c6   : > { %v2526_v22 = vadd.f32 %v2525_v5, %v2524_v9  ;;  %2384 = vst.msk [vmem:[%s4072_s19 + $0x3c] sm:$0xf] %vm2368_vm9, %v2882_v50  ;;  %v2427_v44 = vadd.f32 %v2426_v4, %v2425_v18  ;;  %v2428_v13 = vsel %vm1078_vm4, %v3155_v38, 0.0  ;;  %v2485_v42 = vmul.f32 %v3157_v63, %v3157_v63 }
 0x1c7   : > { %v3127_v59 = vpop.f32.mrb[16].mxu0  ;;  %2382 = vst.msk [vmem:[%s4072_s19 + $0x34] sm:$0xf] %vm2368_vm9, %v2880_v24  ;;  %v2527_v56 = vsel %vm1078_vm4, %v2483_v55, 0.0  ;;  %v2529_v28 = vsel %vm1078_vm4, %v2484_v32, 0.0  ;;  %v2430_v7 = vsel %vm1078_vm4, %v3157_v63, 0.0 }
 0x1c8   : > { %v2145_v48 = vpop.f32.mrb[17].mxu0  ;;  %v2429_v35 = vadd.f32 %v2428_v13, %v2427_v44  ;;  %v2528_v12 = vadd.f32 %v2527_v56, %v2526_v22  ;;  %v2531_v34 = vsel %vm1078_vm4, %v2485_v42, 0.0 }
 0x1c9   : > { %v3128_v52 = vpop.f32.mrb[18].mxu0 }
 0x1ca   : > { %v2148_v17 = vpop.f32.mrb[19].mxu0  ;;  %v2530_v14 = vadd.f32 %v2529_v28, %v2528_v12  ;;  %v2431_v47 = vadd.f32 %v2430_v7, %v2429_v35 }
 0x1cc   : > { %v2532_v49 = vadd.f32 %v2531_v34, %v2530_v14 }
 0x1cf   : > { %v3131_v37 = vpop.f32.mrb[20].mxu0 }
 0x1d0   : > { %v2161_v45 = vpop.f32.mrb[21].mxu0 }
 0x1d1   : > { %v3132_v54 = vpop.f32.mrb[22].mxu0 }
 0x1d2   : > { %v2164_v19 = vpop.f32.mrb[23].mxu0 }
 0x1da   : > { %v4154_v26 = vpop.f32.mrb[24].mxu0 }
 0x1db   : > { %v4156_v31 = vpop.f32.mrb[25].mxu0 }
 0x1dc   : > { %v4158_v15 = vpop.f32.mrb[26].mxu0 }
 0x1dd   : > { %v4160_v57 = vpop.f32.mrb[27].mxu0 }
 0x1ea   : > { %v4162_v33 = vpop.f32.mrb[28].mxu0 }
 0x1eb   : > { %v4164_v46 = vpop.f32.mrb[29].mxu0 }
 0x1ec   : > { %v4166_v58 = vpop.f32.mrb[30].mxu0 }
 0x1ed   : > { %v4168_v21 = vpop.f32.mrb[31].mxu0 }
 0x1f4   : > { %v3093_v60 = vpop.f32.mrb[16].mxu1 }
 0x1f5   : > { %v3159_v16 = vadd.f32 %v3127_v59, %v3093_v60  ;;  %v1844_v3 = vpop.f32.mrb[17].mxu1 }
 0x1f6   : > { %v3160_v39 = vadd.f32 %v2145_v48, %v1844_v3  ;;  %v3094_v1 = vpop.f32.mrb[18].mxu1 }
 0x1f7   : > { %v2885_v29 = vpack.c.bf16 %v3159_v16, %v3159_v16  ;;  %v3161_v38 = vadd.f32 %v3128_v52, %v3094_v1  ;;  %v1847_v2 = vpop.f32.mrb[19].mxu1  ;;  %v2488_v8 = vmul.f32 %v3159_v16, %v3159_v16  ;;  %v2436_v36 = vsel %vm1078_vm4, %v3159_v16, 0.0 }
 0x1f8   : > { %v2883_v6 = vpack.c.bf16 %v3160_v39, %v3160_v39  ;;  %v2432_v10 = vsel %vm1078_vm4, %v3160_v39, 0.0  ;;  %v2486_v0 = vmul.f32 %v3160_v39, %v3160_v39  ;;  %v3162_v51 = vadd.f32 %v2148_v17, %v1847_v2 }
 0x1f9   : > { %2387 = vst.msk [vmem:[%s4072_s19 + $0x48] sm:$0xf] %vm2368_vm9, %v2885_v29  ;;  %v2433_v11 = vadd.f32 %v2432_v10, %v2431_v47  ;;  %v2886_v40 = vpack.c.bf16 %v3161_v38, %v3161_v38  ;;  %v2489_v61 = vmul.f32 %v3161_v38, %v3161_v38  ;;  %v2438_v18 = vsel %vm1078_vm4, %v3161_v38, 0.0 }
 0x1fa   : > { %2385 = vst.msk [vmem:[%s4072_s19 + $0x40] sm:$0xf] %vm2368_vm9, %v2883_v6  ;;  %v2533_v62 = vsel %vm1078_vm4, %v2486_v0, 0.0  ;;  %v2884_v20 = vpack.c.bf16 %v3162_v51, %v3162_v51  ;;  %v2434_v23 = vsel %vm1078_vm4, %v3162_v51, 0.0  ;;  %v2487_v53 = vmul.f32 %v3162_v51, %v3162_v51 }
 0x1fb   : > { %v2534_v41 = vadd.f32 %v2533_v62, %v2532_v49  ;;  %2388 = vst.msk [vmem:[%s4072_s19 + $0x4c] sm:$0xf] %vm2368_vm9, %v2886_v40  ;;  %v2435_v43 = vadd.f32 %v2434_v23, %v2433_v11  ;;  %v2537_v24 = vsel %vm1078_vm4, %v2488_v8, 0.0  ;;  %v2539_v42 = vsel %vm1078_vm4, %v2489_v61, 0.0 }
 0x1fc   : > { %2386 = vst.msk [vmem:[%s4072_s19 + $0x44] sm:$0xf] %vm2368_vm9, %v2884_v20  ;;  %v3097_v27 = vpop.f32.mrb[20].mxu1  ;;  %v2535_v30 = vsel %vm1078_vm4, %v2487_v53, 0.0 }
 0x1fd   : > { %v2437_v63 = vadd.f32 %v2436_v36, %v2435_v43  ;;  %v3163_v25 = vadd.f32 %v3131_v37, %v3097_v27  ;;  %v1860_v5 = vpop.f32.mrb[21].mxu1  ;;  %v2536_v9 = vadd.f32 %v2535_v30, %v2534_v41 }
 0x1fe   : > { %v3164_v50 = vadd.f32 %v2161_v45, %v1860_v5  ;;  %v3098_v32 = vpop.f32.mrb[22].mxu1 }
 0x1ff   : > { %v2889_v4 = vpack.c.bf16 %v3163_v25, %v3163_v25  ;;  %v2439_v55 = vadd.f32 %v2438_v18, %v2437_v63  ;;  %v1863_v59 = vpop.f32.mrb[23].mxu1  ;;  %v2538_v22 = vadd.f32 %v2537_v24, %v2536_v9  ;;  %v3165_v52 = vadd.f32 %v3132_v54, %v3098_v32 }
 0x200   : > { %v2887_v44 = vpack.c.bf16 %v3164_v50, %v3164_v50  ;;  %v2440_v48 = vsel %vm1078_vm4, %v3164_v50, 0.0  ;;  %v2490_v13 = vmul.f32 %v3164_v50, %v3164_v50  ;;  %v3166_v35 = vadd.f32 %v2164_v19, %v1863_v59 }
 0x201   : > { %2391 = vst.msk [vmem:[%s4072_s19 + $0x58] sm:$0xf] %vm2368_vm9, %v2889_v4  ;;  %v2441_v56 = vadd.f32 %v2440_v48, %v2439_v55  ;;  %v2540_v12 = vadd.f32 %v2539_v42, %v2538_v22  ;;  %v2492_v28 = vmul.f32 %v3163_v25, %v3163_v25  ;;  %v2890_v7 = vpack.c.bf16 %v3165_v52, %v3165_v52 }
 0x202   : > { %2389 = vst.msk [vmem:[%s4072_s19 + $0x50] sm:$0xf] %vm2368_vm9, %v2887_v44  ;;  %v2541_v17 = vsel %vm1078_vm4, %v2490_v13, 0.0  ;;  %v2888_v14 = vpack.c.bf16 %v3166_v35, %v3166_v35  ;;  %v2442_v34 = vsel %vm1078_vm4, %v3166_v35, 0.0  ;;  %v2491_v49 = vmul.f32 %v3166_v35, %v3166_v35 }
 0x203   : > { %v2542_v47 = vadd.f32 %v2541_v17, %v2540_v12  ;;  %2392 = vst.msk [vmem:[%s4072_s19 + $0x5c] sm:$0xf] %vm2368_vm9, %v2890_v7  ;;  %v2443_v45 = vadd.f32 %v2442_v34, %v2441_v56  ;;  %v2444_v60 = vsel %vm1078_vm4, %v3163_v25, 0.0  ;;  %v2493_v16 = vmul.f32 %v3165_v52, %v3165_v52 }
 0x204   : > { %v3101_v37 = vpop.f32.mrb[24].mxu1  ;;  %2390 = vst.msk [vmem:[%s4072_s19 + $0x54] sm:$0xf] %vm2368_vm9, %v2888_v14  ;;  %v2543_v3 = vsel %vm1078_vm4, %v2491_v49, 0.0  ;;  %v2545_v29 = vsel %vm1078_vm4, %v2492_v28, 0.0  ;;  %v2446_v0 = vsel %vm1078_vm4, %v3165_v52, 0.0 }
 0x205   : > { %v3167_v54 = vadd.f32 %v4154_v26, %v3101_v37  ;;  %v1876_v19 = vpop.f32.mrb[25].mxu1  ;;  %v2445_v38 = vadd.f32 %v2444_v60, %v2443_v45  ;;  %v2544_v2 = vadd.f32 %v2543_v3, %v2542_v47  ;;  %v2547_v23 = vsel %vm1078_vm4, %v2493_v16, 0.0 }
 0x206   : > { %v3168_v39 = vadd.f32 %v4156_v31, %v1876_v19  ;;  %v3102_v1 = vpop.f32.mrb[26].mxu1 }
 0x207   : > { %v2893_v6 = vpack.c.bf16 %v3167_v54, %v3167_v54  ;;  %v1879_v10 = vpop.f32.mrb[27].mxu1  ;;  %v2546_v40 = vadd.f32 %v2545_v29, %v2544_v2  ;;  %v2447_v62 = vadd.f32 %v2446_v0, %v2445_v38  ;;  %v3169_v31 = vadd.f32 %v4158_v15, %v3102_v1 }
 0x208   : > { %v2891_v26 = vpack.c.bf16 %v3168_v39, %v3168_v39  ;;  %v2448_v51 = vsel %vm1078_vm4, %v3168_v39, 0.0  ;;  %v2494_v11 = vmul.f32 %v3168_v39, %v3168_v39  ;;  %v3170_v20 = vadd.f32 %v4160_v57, %v1879_v10 }
 0x209   : > { %2395 = vst.msk [vmem:[%s4072_s19 + $0x68] sm:$0xf] %vm2368_vm9, %v2893_v6  ;;  %v2496_v41 = vmul.f32 %v3167_v54, %v3167_v54  ;;  %v2449_v43 = vadd.f32 %v2448_v51, %v2447_v62  ;;  %v2548_v53 = vadd.f32 %v2547_v23, %v2546_v40  ;;  %v2894_v36 = vpack.c.bf16 %v3169_v31, %v3169_v31 }
 0x20a   : > { %2393 = vst.msk [vmem:[%s4072_s19 + $0x60] sm:$0xf] %vm2368_vm9, %v2891_v26  ;;  %v2549_v8 = vsel %vm1078_vm4, %v2494_v11, 0.0  ;;  %v2892_v27 = vpack.c.bf16 %v3170_v20, %v3170_v20  ;;  %v2450_v61 = vsel %vm1078_vm4, %v3170_v20, 0.0  ;;  %v2495_v63 = vmul.f32 %v3170_v20, %v3170_v20 }
 0x20b   : > { %v2550_v25 = vadd.f32 %v2549_v8, %v2548_v53  ;;  %2396 = vst.msk [vmem:[%s4072_s19 + $0x6c] sm:$0xf] %vm2368_vm9, %v2894_v36  ;;  %v2451_v15 = vadd.f32 %v2450_v61, %v2449_v43  ;;  %v2452_v18 = vsel %vm1078_vm4, %v3167_v54, 0.0  ;;  %v2497_v9 = vmul.f32 %v3169_v31, %v3169_v31 }
 0x20c   : > { %v3105_v30 = vpop.f32.mrb[28].mxu1  ;;  %2394 = vst.msk [vmem:[%s4072_s19 + $0x64] sm:$0xf] %vm2368_vm9, %v2892_v27  ;;  %v2551_v50 = vsel %vm1078_vm4, %v2495_v63, 0.0  ;;  %v2553_v4 = vsel %vm1078_vm4, %v2496_v41, 0.0 }
 0x20d   : > { %v3171_v57 = vadd.f32 %v4162_v33, %v3105_v30  ;;  %v1892_v5 = vpop.f32.mrb[29].mxu1  ;;  %v2453_v55 = vadd.f32 %v2452_v18, %v2451_v15  ;;  %v2552_v59 = vadd.f32 %v2551_v50, %v2550_v25  ;;  %v2454_v33 = vsel %vm1078_vm4, %v3169_v31, 0.0 }
 0x20e   : > { %v3172_v32 = vadd.f32 %v4164_v46, %v1892_v5  ;;  %v3106_v24 = vpop.f32.mrb[30].mxu1  ;;  %v2555_v12 = vsel %vm1078_vm4, %v2497_v9, 0.0 }
 0x20f   : > { %v2897_v22 = vpack.c.bf16 %v3171_v57, %v3171_v57  ;;  %v1895_v44 = vpop.f32.mrb[31].mxu1  ;;  %v2554_v56 = vadd.f32 %v2553_v4, %v2552_v59  ;;  %v2455_v52 = vadd.f32 %v2454_v33, %v2453_v55  ;;  %v3173_v46 = vadd.f32 %v4166_v58, %v3106_v24 }
 0x210   : > { %v2895_v48 = vpack.c.bf16 %v3172_v32, %v3172_v32  ;;  %v2456_v13 = vsel %vm1078_vm4, %v3172_v32, 0.0  ;;  %v2498_v42 = vmul.f32 %v3172_v32, %v3172_v32  ;;  %v3174_v35 = vadd.f32 %v4168_v21, %v1895_v44 }
 0x211   : > { %2399 = vst.msk [vmem:[%s4072_s19 + $0x78] sm:$0xf] %vm2368_vm9, %v2897_v22  ;;  %v2457_v28 = vadd.f32 %v2456_v13, %v2455_v52  ;;  %v2556_v7 = vadd.f32 %v2555_v12, %v2554_v56  ;;  %v2898_v14 = vpack.c.bf16 %v3173_v46, %v3173_v46  ;;  %v2500_v47 = vmul.f32 %v3171_v57, %v3171_v57 }
 0x212   : > { %2397 = vst.msk [vmem:[%s4072_s19 + $0x70] sm:$0xf] %vm2368_vm9, %v2895_v48  ;;  %v2557_v17 = vsel %vm1078_vm4, %v2498_v42, 0.0  ;;  %v2896_v34 = vpack.c.bf16 %v3174_v35, %v3174_v35  ;;  %v2458_v49 = vsel %vm1078_vm4, %v3174_v35, 0.0  ;;  %v2499_v37 = vmul.f32 %v3174_v35, %v3174_v35 }
 0x213   : > { %v2558_v45 = vadd.f32 %v2557_v17, %v2556_v7  ;;  %2400 = vst.msk [vmem:[%s4072_s19 + $0x7c] sm:$0xf] %vm2368_vm9, %v2898_v14  ;;  %v2459_v58 = vadd.f32 %v2458_v49, %v2457_v28  ;;  %v2460_v21 = vsel %vm1078_vm4, %v3171_v57, 0.0  ;;  %v2501_v54 = vmul.f32 %v3173_v46, %v3173_v46 }
 0x214   : > { %2398 = vst.msk [vmem:[%s4072_s19 + $0x74] sm:$0xf] %vm2368_vm9, %v2896_v34  ;;  %v2559_v19 = vsel %vm1078_vm4, %v2499_v37, 0.0  ;;  %v2561_v3 = vsel %vm1078_vm4, %v2500_v47, 0.0  ;;  %v2462_v39 = vsel %vm1078_vm4, %v3173_v46, 0.0 }
 0x215   : > { %v2461_v60 = vadd.f32 %v2460_v21, %v2459_v58  ;;  %v2560_v16 = vadd.f32 %v2559_v19, %v2558_v45  ;;  %v2563_v38 = vsel %vm1078_vm4, %v2501_v54, 0.0 }
 0x217   : > { %v2463_v1 = vadd.f32 %v2462_v39, %v2461_v60  ;;  %v2562_v29 = vadd.f32 %v2561_v3, %v2560_v16 }
 0x219   : > { %v2464_v2 = vrot.slane %v2463_v1, 4  ;;  %v2564_v6 = vadd.f32 %v2563_v38, %v2562_v29 }
 0x21b   : > { %v2465_v10 = vadd.f32 %v2464_v2, %v2463_v1  ;;  %v2565_v0 = vrot.slane %v2564_v6, 4 }
 0x21d   : > { %v2466_v26 = vrot.slane %v2465_v10, 2  ;;  %v2566_v51 = vadd.f32 %v2565_v0, %v2564_v6 }
 0x21f   : > { %v2467_v11 = vadd.f32 %v2466_v26, %v2465_v10  ;;  %v2567_v40 = vrot.slane %v2566_v51, 2 }
 0x221   : > { %v2468_v62 = vrot.slane %v2467_v11, 1  ;;  %v2568_v31 = vadd.f32 %v2567_v40, %v2566_v51 }
 0x223   : > { %v2569_v20 = vrot.slane %v2568_v31, 1  ;;  %v2469_v23 = vadd.f32 %v2468_v62, %v2467_v11 }
 0x225   : > { %v2570_v8 = vadd.f32 %v2569_v20, %v2568_v31 }
 0x227   : > { %v2572_v41 = vsel %vm958_vm0, %v2469_v23, %v2570_v8 }
 0x228   : > { %2574 = vst.msk [vmem:[%s502_s22] sm:$0x3] %vm2573_vm10, %v2572_v41 }
 0x229 PF: > { %s19_s29 = sadd.s32 1, %s3262_s29   ;;  %s4267_s27 = smov %s3258_s28 }
 0x22a   : > { %p16_p5 = scmp.ge.s32.totalorder %s19_s29, 4   ;;  %s4268_s28 = smov %s4270_s30 }
 0x22c   :  { %18 = sbr.rel (!%p16_p5) target bundleno = 2 (0x2), region = 99 }

</bundles_post_ra>
